<compile_context>
chip_gen: v7x
topology: tpu7x:2x2x1
jax: 0.10.0
libtpu: 0.0.40
codegen_flags: <defaults>
</compile_context>

<pallas_src>
import functools
import math

import jax
import jax.numpy as jnp
from jax import lax
from jax.experimental import pallas as pl
from jax.experimental.pallas import tpu as pltpu


# A @ B^T : contract the last dim of both operands (no transpose op emitted).
_NT_DIMS = (((1,), (1,)), ((), ()))

_WEIGHT_NAMES = ("w_qkv", "b_qkv", "w_ao", "b_ao", "g_ao", "be_ao",
                 "g_ln", "be_ln", "w_ff1", "b_ff1", "w_ff2", "b_ff2")


def _layer_norm(x, gamma, beta, eps):
    mu = jnp.mean(x, axis=-1, keepdims=True)
    xc = x - mu
    var = jnp.mean(xc * xc, axis=-1, keepdims=True)
    return xc * lax.rsqrt(var + eps) * gamma + beta


# --------------------------------- kernel ---------------------------------- #
def _encoder_cell_ca_kernel(*refs, num_heads, dp, hidden, ln_eps, bblk, la, lb,
                            with_mask_a, with_mask_b):
    f32, bf16 = jnp.float32, jnp.bfloat16
    hidden_p = num_heads * dp

    idx = 0
    cellA_ref = refs[idx]; idx += 1
    cellB_ref = refs[idx]; idx += 1
    maskA_ref = maskB_ref = None
    if with_mask_a:
        maskA_ref = refs[idx]; idx += 1
    if with_mask_b:
        maskB_ref = refs[idx]; idx += 1
    (w_qkv_ref, b_qkv_ref, w_ao_ref, b_ao_ref, g_ao_ref, be_ao_ref,
     g_ln_ref, be_ln_ref, w_f1_ref, b_f1_ref, w_f2_ref, b_f2_ref) = refs[idx:idx + 12]
    idx += 12
    outA_ref, outB_ref = refs[idx:idx + 2]
    ctxA_s, ctxB_s = refs[idx + 2:idx + 4]

    # Raw inputs for this batch block, flattened to (Bblk*L, hidden).
    xA = cellA_ref[...].reshape(bblk * la, hidden).astype(f32)
    xB = cellB_ref[...].reshape(bblk * lb, hidden).astype(f32)

    w_qkv = w_qkv_ref[...]
    b_qkv = b_qkv_ref[...]
    w_ao, b_ao = w_ao_ref[...], b_ao_ref[...]
    g_ao, be_ao = g_ao_ref[...], be_ao_ref[...]
    g_ln, be_ln = g_ln_ref[...], be_ln_ref[...]
    w_f1, b_f1 = w_f1_ref[...], b_f1_ref[...]
    w_f2, b_f2 = w_f2_ref[...], b_f2_ref[...]

    # Fused q/k/v projection for the whole batch block (bf16 operands, f32
    # accumulation), then one cast of the result to bf16 for the attention.
    qkvA = (jnp.dot(xA.astype(bf16), w_qkv, preferred_element_type=f32)
            + b_qkv).astype(bf16)                      # (Bblk*LA, 3*hidden_p)
    qkvB = (jnp.dot(xB.astype(bf16), w_qkv, preferred_element_type=f32)
            + b_qkv).astype(bf16)                      # (Bblk*LB, 3*hidden_p)

    def attend_one(q_side, kv_side, bias_row, scratch, row0, lq):
        # q_side/kv_side: (L, 3*hidden_p) bf16 for ONE sample.  The 1/sqrt(Dh)
        # scale is folded into the q projection; head slots are 128-aligned.
        for h in range(num_heads):
            qo = h * dp
            ko = hidden_p + h * dp
            vo = 2 * hidden_p + h * dp
            s = lax.dot_general(q_side[:, qo:qo + dp], kv_side[:, ko:ko + dp],
                                _NT_DIMS, preferred_element_type=f32)
            if bias_row is not None:
                s = s + bias_row                       # (1, Lk) -> (Lq, Lk)
            m = jnp.max(s, axis=-1, keepdims=True)
            p = jnp.exp(s - m)
            denom = jnp.sum(p, axis=-1, keepdims=True)
            ctx = jnp.dot(p.astype(bf16), kv_side[:, vo:vo + dp],
                          preferred_element_type=f32)
            ctx = ctx * pl.reciprocal(denom, approx=False)
            # 128-aligned, unmasked store of this head's context.
            scratch[row0:row0 + lq, h * dp:(h + 1) * dp] = ctx.astype(scratch.dtype)

    for i in range(bblk):
        qkvA_i = qkvA[i * la:(i + 1) * la, :]
        qkvB_i = qkvB[i * lb:(i + 1) * lb, :]
        biasA_i = biasB_i = None
        if with_mask_a:   # attend where mask == 0 (torch semantics)
            biasA_i = jnp.where(maskA_ref[i] == 0.0, 0.0, -1e30).astype(f32)  # (1, LB)
        if with_mask_b:
            biasB_i = jnp.where(maskB_ref[i] == 0.0, 0.0, -1e30).astype(f32)  # (1, LA)
        attend_one(qkvA_i, qkvB_i, biasA_i, ctxA_s, i * la, la)   # A attends to B
        attend_one(qkvB_i, qkvA_i, biasB_i, ctxB_s, i * lb, lb)   # B attends to A

    ctxA = ctxA_s[...]                                  # (Bblk*LA, hidden_p) bf16
    ctxB = ctxB_s[...]                                  # (Bblk*LB, hidden_p) bf16

    # SelfOutput: LayerNorm(dense(ctx) + raw residual)   (dropout p = 0, eval)
    attnA = _layer_norm(
        jnp.dot(ctxA, w_ao, preferred_element_type=f32) + b_ao + xA,
        g_ao, be_ao, ln_eps)
    attnB = _layer_norm(
        jnp.dot(ctxB, w_ao, preferred_element_type=f32) + b_ao + xB,
        g_ao, be_ao, ln_eps)

    def ffn(x):
        h1 = jnp.dot(x.astype(bf16), w_f1, preferred_element_type=f32) + b_f1
        h1 = jnp.maximum(h1, 0.0)                       # ReLU (dropout p = 0)
        return jnp.dot(h1.astype(bf16), w_f2, preferred_element_type=f32) + b_f2

    def branch(x_raw, attn_out):
        x1 = _layer_norm(x_raw, g_ln, be_ln, ln_eps)    # cell*_1
        x2 = x1 + attn_out                              # cell*_2
        x3 = _layer_norm(x2, g_ln, be_ln, ln_eps)       # cell*_3
        return x2 + ffn(x3)                             # cell*_layer_output

    outA_ref[...] = branch(xA, attnA).reshape(bblk, la, hidden).astype(outA_ref.dtype)
    outB_ref[...] = branch(xB, attnB).reshape(bblk, lb, hidden).astype(outB_ref.dtype)


# ------------------------- parameter packing (once) ------------------------ #
def pack_params(p, num_heads, compute_dtype=jnp.bfloat16):
    """Pre-transpose torch-layout (out, in) weights, fuse q/k/v, fold 1/sqrt(Dh)
    into q, zero-pad each head to a 128-lane slot, and cast big weights to
    bf16 for the MXU.  Biases / LayerNorm params stay f32."""
    f32 = jnp.float32
    wq = jnp.asarray(p["wq"], f32)
    hidden = wq.shape[1]
    dh = hidden // num_heads
    dp = ((dh + 127) // 128) * 128          # 128-aligned per-head slot
    hidden_p = num_heads * dp
    scale = 1.0 / math.sqrt(dh)

    def head_pad_cols(w_t, b, s):
        # w_t: (hidden_in, hidden_out); scatter each head's dh output columns
        # into its dp-wide, zero-padded slot (score-neutral padding).
        w_p = jnp.zeros((hidden, hidden_p), f32)
        b_p = jnp.zeros((hidden_p,), f32)
        bb = jnp.asarray(b, f32) * s
        for h in range(num_heads):
            w_p = w_p.at[:, h * dp:h * dp + dh].set(w_t[:, h * dh:(h + 1) * dh] * s)
            b_p = b_p.at[h * dp:h * dp + dh].set(bb[h * dh:(h + 1) * dh])
        return w_p, b_p

    wq_p, bq_p = head_pad_cols(wq.T, p["bq"], scale)
    wk_p, bk_p = head_pad_cols(jnp.asarray(p["wk"], f32).T, p["bk"], 1.0)
    wv_p, bv_p = head_pad_cols(jnp.asarray(p["wv"], f32).T, p["bv"], 1.0)

    # SelfOutput dense consumes the head-padded context: pad its input rows
    # with zeros so the padded context columns contribute nothing.
    w_ao_t = jnp.asarray(p["w_attn_out"], f32).T        # (ctx_hidden, hidden)
    w_ao_p = jnp.zeros((hidden_p, hidden), f32)
    for h in range(num_heads):
        w_ao_p = w_ao_p.at[h * dp:h * dp + dh, :].set(w_ao_t[h * dh:(h + 1) * dh, :])

    row = lambda v: jnp.asarray(v, f32).reshape(1, -1)
    return {
        "num_heads": num_heads,
        "head_pad": dp,
        "hidden": hidden,
        "w_qkv": jnp.concatenate([wq_p, wk_p, wv_p], axis=1).astype(compute_dtype),
        "b_qkv": jnp.concatenate([bq_p, bk_p, bv_p]).reshape(1, -1),   # f32
        "w_ao": w_ao_p.astype(compute_dtype),
        "b_ao": row(p["b_attn_out"]),
        "g_ao": row(p["ln_attn_gamma"]),
        "be_ao": row(p["ln_attn_beta"]),
        "g_ln": row(p["ln_gamma"]),
        "be_ln": row(p["ln_beta"]),
        "w_ff1": jnp.asarray(p["w_ff1"], f32).T.astype(compute_dtype),  # (h, inter)
        "b_ff1": row(p["b_ff1"]),
        "w_ff2": jnp.asarray(p["w_ff2"], f32).T.astype(compute_dtype),  # (inter, h)
        "b_ff2": row(p["b_ff2"]),
    }


def _normalize_mask(mask, B, Lk):
    """torch: attend where (mask == 0).  Only key-padding masks are supported;
    returned as (B, 1, Lk) float32 (bias is built inside the kernel)."""
    if mask is None:
        return None
    m = jnp.asarray(mask)
    if m.ndim == 4:
        if m.shape[1] != 1 or m.shape[2] != 1:
            # TODO(synk): per-head / per-query 4-D attention masks unsupported.
            raise NotImplementedError("only key-padding attention masks are supported")
        m = m[:, 0, 0, :]
    elif m.ndim == 3:
        if m.shape[1] != 1:
            raise NotImplementedError("only key-padding attention masks are supported")
        m = m[:, 0, :]
    if m.shape != (B, Lk):
        raise ValueError(f"expected key-padding mask of shape {(B, Lk)}, got {m.shape}")
    return m.astype(jnp.float32).reshape(B, 1, Lk)


def _choose_batch_block(B, max_bblk=8):
    """Largest divisor of B <= max_bblk that still leaves >= 2 parallel grid
    steps (so both v7x TensorCores get work)."""
    best = 1
    for cand in range(1, min(max_bblk, B) + 1):
        if B % cand:
            continue
        if B // cand >= 2 or B == 1:
            best = cand
    return best


# ------------------------------ forward pass ------------------------------- #
def encoder_cell_ca_forward(packed, cellA, cellB,
                            cellA_attention_mask=None, cellB_attention_mask=None,
                            ln_eps=1e-5, max_batch_block=8):
    B, LA, hidden = cellA.shape
    Bb, LB, hb = cellB.shape
    assert Bb == B and hb == hidden == packed["hidden"]
    num_heads = packed["num_heads"]
    dp = packed["head_pad"]
    hidden_p = num_heads * dp

    bblk = _choose_batch_block(B, max_batch_block)
    if LA % 8 or LB % 8:
        bblk = 1            # keep the in-kernel (Bblk*L, hidden) view layout-trivial
    grid = (B // bblk,)

    maskA = _normalize_mask(cellA_attention_mask, B, LB)   # masks B's keys
    maskB = _normalize_mask(cellB_attention_mask, B, LA)   # masks A's keys
    with_mask_a = maskA is not None
    with_mask_b = maskB is not None

    data_inputs = [cellA, cellB]
    data_specs = [pl.BlockSpec((bblk, LA, hidden), lambda b: (b, 0, 0)),
                  pl.BlockSpec((bblk, LB, hidden), lambda b: (b, 0, 0))]
    if with_mask_a:
        data_inputs.append(maskA)
        data_specs.append(pl.BlockSpec((bblk, 1, LB), lambda b: (b, 0, 0)))
    if with_mask_b:
        data_inputs.append(maskB)
        data_specs.append(pl.BlockSpec((bblk, 1, LA), lambda b: (b, 0, 0)))

    weight_inputs = [packed[n] for n in _WEIGHT_NAMES]

    def make_in_specs(single_buffer_weights):
        if single_buffer_weights:
            w_specs = [pl.BlockSpec(packed[n].shape, lambda b: (0, 0),
                                    pipeline_mode=pl.Buffered(1))
                       for n in _WEIGHT_NAMES]
        else:
            w_specs = [pl.BlockSpec(packed[n].shape, lambda b: (0, 0))
                       for n in _WEIGHT_NAMES]
        return data_specs + w_specs

    kernel = functools.partial(
        _encoder_cell_ca_kernel,
        num_heads=num_heads, dp=dp, hidden=hidden, ln_eps=ln_eps,
        bblk=bblk, la=LA, lb=LB,
        with_mask_a=with_mask_a, with_mask_b=with_mask_b)

    # Scoped-VMEM limit sized to estimated residency with generous headroom.
    itemsize = cellA.dtype.itemsize
    inter = packed["w_ff1"].shape[1]
    est = (sum(int(packed[n].size) * packed[n].dtype.itemsize for n in _WEIGHT_NAMES)
           + 4 * bblk * (LA + LB) * hidden * itemsize          # in/out blocks (dbl-buffered)
           + 2 * bblk * (LA + LB) * hidden_p                    # bf16 ctx scratch
           + 6 * bblk * (LA + LB) * 3 * hidden_p                # qkv f32 + bf16
           + 8 * bblk * (LA + LB) * max(inter, hidden))         # FFN / LN temps
    vmem_limit = int(min(64 * 2**20, max(32 * 2**20, 4 * est)))

    out_shapes = (jax.ShapeDtypeStruct((B, LA, hidden), cellA.dtype),
                  jax.ShapeDtypeStruct((B, LB, hidden), cellB.dtype))
    out_specs = (pl.BlockSpec((bblk, LA, hidden), lambda b: (b, 0, 0)),
                 pl.BlockSpec((bblk, LB, hidden), lambda b: (b, 0, 0)))
    scratch = [pltpu.VMEM((bblk * LA, hidden_p), jnp.bfloat16),
               pltpu.VMEM((bblk * LB, hidden_p), jnp.bfloat16)]

    def run(single_buffer_weights):
        return pl.pallas_call(
            kernel,
            out_shape=out_shapes,
            grid=grid,
            in_specs=make_in_specs(single_buffer_weights),
            out_specs=out_specs,
            scratch_shapes=scratch,
            compiler_params=pltpu.CompilerParams(
                dimension_semantics=("parallel",),
                vmem_limit_bytes=vmem_limit),
        )(*data_inputs, *weight_inputs)

    try:
        outA, outB = run(True)
    except Exception:
        # TODO(synk): drop this fallback once pl.Buffered(1) (single-buffered
        # grid-invariant weights) is guaranteed by the deployed jax version.
        outA, outB = run(False)

    # attention_probs are returned as None by the PyTorch module as well.
    return outA, outB, None, None


# --------------------------------- Demo ------------------------------------ #
if __name__ == "__main__":
    hidden_size = 32
    intermediate_size = 64
    num_heads = 4
    B, LA, LB = 2, 8, 8

    key = jax.random.PRNGKey(0)
    ks = jax.random.split(key, 20)
    bound = 1.0 / math.sqrt(hidden_size)
    bound_i = 1.0 / math.sqrt(intermediate_size)
    u = lambda k, shape, b: jax.random.uniform(k, shape, jnp.float32, -b, b)

    raw_params = {
        # CrossAttention (torch nn.Linear layout: weight (out, in), bias (out,))
        "wq": u(ks[0], (hidden_size, hidden_size), bound),
        "bq": u(ks[1], (hidden_size,), bound),
        "wk": u(ks[2], (hidden_size, hidden_size), bound),
        "bk": u(ks[3], (hidden_size,), bound),
        "wv": u(ks[4], (hidden_size, hidden_size), bound),
        "bv": u(ks[5], (hidden_size,), bound),
        # SelfOutput
        "w_attn_out": u(ks[6], (hidden_size, hidden_size), bound),
        "b_attn_out": u(ks[7], (hidden_size,), bound),
        "ln_attn_gamma": 1.0 + u(ks[8], (hidden_size,), 0.2),
        "ln_attn_beta": u(ks[9], (hidden_size,), 0.1),
        # EncoderCellCA shared LayerNorm
        "ln_gamma": 1.0 + u(ks[10], (hidden_size,), 0.2),
        "ln_beta": u(ks[11], (hidden_size,), 0.1),
        # FFN: Linear(h, inter) -> ReLU -> Dropout -> Linear(inter, h)
        "w_ff1": u(ks[12], (intermediate_size, hidden_size), bound),
        "b_ff1": u(ks[13], (intermediate_size,), bound),
        "w_ff2": u(ks[14], (hidden_size, intermediate_size), bound_i),
        "b_ff2": u(ks[15], (hidden_size,), bound_i),
    }

    cellA = jax.random.normal(ks[16], (B, LA, hidden_size), jnp.float32)
    cellB = jax.random.normal(ks[17], (B, LB, hidden_size), jnp.float32)
    # Key-padding mask for the A->B attention only (attend where mask == 0).
    maskA_demo = jnp.zeros((B, LB), jnp.float32).at[0, LB - 2:].set(1.0)

    packed = pack_params(raw_params, num_heads)

    # ---------------------- pure-JAX reference (eval mode) ----------------- #
    def ref_forward(p, xA, xB, maskA=None, maskB=None, eps=1e-5):
        hs = hidden_size // num_heads

        def ln(x, g, b):
            mu = x.mean(-1, keepdims=True)
            var = ((x - mu) ** 2).mean(-1, keepdims=True)
            return (x - mu) / jnp.sqrt(var + eps) * g + b

        lin = lambda x, w, b: x @ w.T + b

        def cross(xq, xkv, mask):
            Bq, Lq, _ = xq.shape
            Lk = xkv.shape[1]
            q = lin(xq, p["wq"], p["bq"])
            k = lin(xkv, p["wk"], p["bk"])
            v = lin(xkv, p["wv"], p["bv"])
            sh = lambda t, L: t.reshape(Bq, L, num_heads, hs).transpose(0, 2, 1, 3)
            q, k, v = sh(q, Lq), sh(k, Lk), sh(v, Lk)
            s = jnp.einsum("bhqd,bhkd->bhqk", q, k) / math.sqrt(hs)
            if mask is not None:
                s = s + jnp.where(mask[:, None, None, :] == 0, 0.0, -1e30)
            w_attn = jax.nn.softmax(s, axis=-1)
            o = jnp.einsum("bhqk,bhkd->bhqd", w_attn, v)
            return o.transpose(0, 2, 1, 3).reshape(Bq, Lq, hidden_size)

        def self_output(h, inp):
            return ln(lin(h, p["w_attn_out"], p["b_attn_out"]) + inp,
                      p["ln_attn_gamma"], p["ln_attn_beta"])

        def ffn(x):
            return lin(jax.nn.relu(lin(x, p["w_ff1"], p["b_ff1"])),
                       p["w_ff2"], p["b_ff2"])

        A_self, B_self = cross(xA, xB, maskA), cross(xB, xA, maskB)
        A_attn, B_attn = self_output(A_self, xA), self_output(B_self, xB)
        A1 = ln(xA, p["ln_gamma"], p["ln_beta"])
        B1 = ln(xB, p["ln_gamma"], p["ln_beta"])
        A2, B2 = A1 + A_attn, B1 + B_attn
        A_out = A2 + ffn(ln(A2, p["ln_gamma"], p["ln_beta"]))
        B_out = B2 + ffn(ln(B2, p["ln_gamma"], p["ln_beta"]))
        return A_out, B_out

    def check(out, ref):
        # bf16 matmul operands -> coarse absolute tolerance, tighter mean check.
        err = jnp.abs(out.astype(jnp.float32) - ref)
        assert float(err.max()) < 1e-1, float(err.max())
        assert float(err.mean()) < 2.5e-2, float(err.mean())

    # 1) no masks (module default)
    outA, outB, _, _ = encoder_cell_ca_forward(packed, cellA, cellB, None, None)
    outA, outB = jax.block_until_ready((outA, outB))
    refA, refB = ref_forward(raw_params, cellA, cellB)
    assert outA.shape == (B, LA, hidden_size) and outB.shape == (B, LB, hidden_size)
    check(outA, refA)
    check(outB, refB)

    # 2) key-padding mask on the A->B attention only
    outA_m, outB_m, _, _ = encoder_cell_ca_forward(packed, cellA, cellB,
                                                   maskA_demo, None)
    outA_m, outB_m = jax.block_until_ready((outA_m, outB_m))
    refA_m, refB_m = ref_forward(raw_params, cellA, cellB, maskA=maskA_demo)
    check(outA_m, refA_m)
    check(outB_m, refB_m)

    print("KERNEL_OK")
</pallas_src>

<mosaic_0001>
module attributes {stable_mosaic.version = 11 : i64} {
  func.func @_encoder_cell_ca_kernel(%arg0: i32, %arg1: memref<1x8x32xf32, #tpu.memory_space<vmem>>, %arg2: memref<1x8x32xf32, #tpu.memory_space<vmem>>, %arg3: memref<32x1536xbf16, #tpu.memory_space<vmem>>, %arg4: memref<1x1536xf32, #tpu.memory_space<vmem>>, %arg5: memref<512x32xbf16, #tpu.memory_space<vmem>>, %arg6: memref<1x32xf32, #tpu.memory_space<vmem>>, %arg7: memref<1x32xf32, #tpu.memory_space<vmem>>, %arg8: memref<1x32xf32, #tpu.memory_space<vmem>>, %arg9: memref<1x32xf32, #tpu.memory_space<vmem>>, %arg10: memref<1x32xf32, #tpu.memory_space<vmem>>, %arg11: memref<32x64xbf16, #tpu.memory_space<vmem>>, %arg12: memref<1x64xf32, #tpu.memory_space<vmem>>, %arg13: memref<64x32xbf16, #tpu.memory_space<vmem>>, %arg14: memref<1x32xf32, #tpu.memory_space<vmem>>, %arg15: memref<1x8x32xf32, #tpu.memory_space<vmem>>, %arg16: memref<1x8x32xf32, #tpu.memory_space<vmem>>, %arg17: memref<8x512xbf16, #tpu.memory_space<vmem>>, %arg18: memref<8x512xbf16, #tpu.memory_space<vmem>>) attributes {dimension_semantics = [#tpu.dimension_semantics<parallel>], iteration_bounds = array<i64: 2>, scalar_prefetch = 0 : i64, scratch_operands = 2 : i64, tpu.core_type = #tpu.core_type<tc>, window_params = [{transform_indices = @transform_0, window_bounds = array<i64: 1, 8, 32>}, {transform_indices = @transform_1, window_bounds = array<i64: 1, 8, 32>}, {pipeline_mode = #tpu.pipeline_mode<synchronous>, transform_indices = @transform_2, window_bounds = array<i64: 32, 1536>}, {pipeline_mode = #tpu.pipeline_mode<synchronous>, transform_indices = @transform_3, window_bounds = array<i64: 1, 1536>}, {pipeline_mode = #tpu.pipeline_mode<synchronous>, transform_indices = @transform_4, window_bounds = array<i64: 512, 32>}, {pipeline_mode = #tpu.pipeline_mode<synchronous>, transform_indices = @transform_5, window_bounds = array<i64: 1, 32>}, {pipeline_mode = #tpu.pipeline_mode<synchronous>, transform_indices = @transform_6, window_bounds = array<i64: 1, 32>}, {pipeline_mode = #tpu.pipeline_mode<synchronous>, transform_indices = @transform_7, window_bounds = array<i64: 1, 32>}, {pipeline_mode = #tpu.pipeline_mode<synchronous>, transform_indices = @transform_8, window_bounds = array<i64: 1, 32>}, {pipeline_mode = #tpu.pipeline_mode<synchronous>, transform_indices = @transform_9, window_bounds = array<i64: 1, 32>}, {pipeline_mode = #tpu.pipeline_mode<synchronous>, transform_indices = @transform_10, window_bounds = array<i64: 32, 64>}, {pipeline_mode = #tpu.pipeline_mode<synchronous>, transform_indices = @transform_11, window_bounds = array<i64: 1, 64>}, {pipeline_mode = #tpu.pipeline_mode<synchronous>, transform_indices = @transform_12, window_bounds = array<i64: 64, 32>}, {pipeline_mode = #tpu.pipeline_mode<synchronous>, transform_indices = @transform_13, window_bounds = array<i64: 1, 32>}, {transform_indices = @transform_14, window_bounds = array<i64: 1, 8, 32>}, {transform_indices = @transform_15, window_bounds = array<i64: 1, 8, 32>}]} {
    %c0 = arith.constant 0 : index
    %c0_0 = arith.constant 0 : index
    %c0_1 = arith.constant 0 : index
    %0 = vector.load %arg1[%c0, %c0_0, %c0_1] : memref<1x8x32xf32, #tpu.memory_space<vmem>>, vector<1x8x32xf32>
    %1 = vector.shape_cast %0 : vector<1x8x32xf32> to vector<8x32xf32>
    %c0_2 = arith.constant 0 : index
    %c0_3 = arith.constant 0 : index
    %c0_4 = arith.constant 0 : index
    %2 = vector.load %arg2[%c0_2, %c0_3, %c0_4] : memref<1x8x32xf32, #tpu.memory_space<vmem>>, vector<1x8x32xf32>
    %3 = vector.shape_cast %2 : vector<1x8x32xf32> to vector<8x32xf32>
    %c0_5 = arith.constant 0 : index
    %c0_6 = arith.constant 0 : index
    %4 = vector.load %arg3[%c0_5, %c0_6] : memref<32x1536xbf16, #tpu.memory_space<vmem>>, vector<32x1536xbf16>
    %c0_7 = arith.constant 0 : index
    %c0_8 = arith.constant 0 : index
    %5 = vector.load %arg4[%c0_7, %c0_8] : memref<1x1536xf32, #tpu.memory_space<vmem>>, vector<1x1536xf32>
    %c0_9 = arith.constant 0 : index
    %c0_10 = arith.constant 0 : index
    %6 = vector.load %arg5[%c0_9, %c0_10] : memref<512x32xbf16, #tpu.memory_space<vmem>>, vector<512x32xbf16>
    %c0_11 = arith.constant 0 : index
    %c0_12 = arith.constant 0 : index
    %7 = vector.load %arg6[%c0_11, %c0_12] : memref<1x32xf32, #tpu.memory_space<vmem>>, vector<1x32xf32>
    %c0_13 = arith.constant 0 : index
    %c0_14 = arith.constant 0 : index
    %8 = vector.load %arg7[%c0_13, %c0_14] : memref<1x32xf32, #tpu.memory_space<vmem>>, vector<1x32xf32>
    %c0_15 = arith.constant 0 : index
    %c0_16 = arith.constant 0 : index
    %9 = vector.load %arg8[%c0_15, %c0_16] : memref<1x32xf32, #tpu.memory_space<vmem>>, vector<1x32xf32>
    %c0_17 = arith.constant 0 : index
    %c0_18 = arith.constant 0 : index
    %10 = vector.load %arg9[%c0_17, %c0_18] : memref<1x32xf32, #tpu.memory_space<vmem>>, vector<1x32xf32>
    %c0_19 = arith.constant 0 : index
    %c0_20 = arith.constant 0 : index
    %11 = vector.load %arg10[%c0_19, %c0_20] : memref<1x32xf32, #tpu.memory_space<vmem>>, vector<1x32xf32>
    %c0_21 = arith.constant 0 : index
    %c0_22 = arith.constant 0 : index
    %12 = vector.load %arg11[%c0_21, %c0_22] : memref<32x64xbf16, #tpu.memory_space<vmem>>, vector<32x64xbf16>
    %c0_23 = arith.constant 0 : index
    %c0_24 = arith.constant 0 : index
    %13 = vector.load %arg12[%c0_23, %c0_24] : memref<1x64xf32, #tpu.memory_space<vmem>>, vector<1x64xf32>
    %c0_25 = arith.constant 0 : index
    %c0_26 = arith.constant 0 : index
    %14 = vector.load %arg13[%c0_25, %c0_26] : memref<64x32xbf16, #tpu.memory_space<vmem>>, vector<64x32xbf16>
    %c0_27 = arith.constant 0 : index
    %c0_28 = arith.constant 0 : index
    %15 = vector.load %arg14[%c0_27, %c0_28] : memref<1x32xf32, #tpu.memory_space<vmem>>, vector<1x32xf32>
    %16 = arith.truncf %1 : vector<8x32xf32> to vector<8x32xbf16>
    %cst = arith.constant dense<0.000000e+00> : vector<8x1536xf32>
    %17 = tpu.matmul %16, %4, %cst {dimension_numbers = #tpu.dot_dimension_numbers<[1], [0], [0], [1], [0, 0, 1, 1], [], []>} : vector<8x32xbf16>, vector<32x1536xbf16>, vector<8x1536xf32> -> vector<8x1536xf32>
    %18 = vector.broadcast %5 : vector<1x1536xf32> to vector<8x1536xf32>
    %19 = arith.addf %17, %18 : vector<8x1536xf32>
    %20 = arith.truncf %19 : vector<8x1536xf32> to vector<8x1536xbf16>
    %21 = arith.truncf %3 : vector<8x32xf32> to vector<8x32xbf16>
    %cst_29 = arith.constant dense<0.000000e+00> : vector<8x1536xf32>
    %22 = tpu.matmul %21, %4, %cst_29 {dimension_numbers = #tpu.dot_dimension_numbers<[1], [0], [0], [1], [0, 0, 1, 1], [], []>} : vector<8x32xbf16>, vector<32x1536xbf16>, vector<8x1536xf32> -> vector<8x1536xf32>
    %23 = vector.broadcast %5 : vector<1x1536xf32> to vector<8x1536xf32>
    %24 = arith.addf %22, %23 : vector<8x1536xf32>
    %25 = arith.truncf %24 : vector<8x1536xf32> to vector<8x1536xbf16>
    %26 = vector.extract_strided_slice %20 {offsets = [0, 0], sizes = [8, 128], strides = [1, 1]} : vector<8x1536xbf16> to vector<8x128xbf16>
    %27 = vector.extract_strided_slice %25 {offsets = [0, 512], sizes = [8, 128], strides = [1, 1]} : vector<8x1536xbf16> to vector<8x128xbf16>
    %cst_30 = arith.constant dense<0.000000e+00> : vector<8x8xf32>
    %28 = tpu.matmul %26, %27, %cst_30 {dimension_numbers = #tpu.dot_dimension_numbers<[1], [1], [0], [0], [0, 0, 1, 0], [], []>} : vector<8x128xbf16>, vector<8x128xbf16>, vector<8x8xf32> -> vector<8x8xf32>
    %cst_31 = arith.constant dense<0xFF800000> : vector<8xf32>
    %29 = vector.multi_reduction <maximumf>, %28, %cst_31 [1] : vector<8x8xf32> to vector<8xf32>
    %30 = vector.shape_cast %29 : vector<8xf32> to vector<8x1xf32>
    %31 = vector.broadcast %30 : vector<8x1xf32> to vector<8x8xf32>
    %32 = arith.subf %28, %31 : vector<8x8xf32>
    %33 = math.exp %32 : vector<8x8xf32>
    %cst_32 = arith.constant dense<0.000000e+00> : vector<8xf32>
    %34 = vector.multi_reduction <add>, %33, %cst_32 [1] : vector<8x8xf32> to vector<8xf32>
    %35 = vector.shape_cast %34 : vector<8xf32> to vector<8x1xf32>
    %36 = arith.truncf %33 : vector<8x8xf32> to vector<8x8xbf16>
    %37 = vector.extract_strided_slice %25 {offsets = [0, 1024], sizes = [8, 128], strides = [1, 1]} : vector<8x1536xbf16> to vector<8x128xbf16>
    %cst_33 = arith.constant dense<0.000000e+00> : vector<8x128xf32>
    %38 = tpu.matmul %36, %37, %cst_33 {dimension_numbers = #tpu.dot_dimension_numbers<[1], [0], [0], [1], [0, 0, 1, 1], [], []>} : vector<8x8xbf16>, vector<8x128xbf16>, vector<8x128xf32> -> vector<8x128xf32>
    %39 = tpu.reciprocal %35 : vector<8x1xf32> -> vector<8x1xf32>
    %40 = vector.broadcast %39 : vector<8x1xf32> to vector<8x128xf32>
    %41 = arith.mulf %38, %40 : vector<8x128xf32>
    %42 = arith.truncf %41 : vector<8x128xf32> to vector<8x128xbf16>
    %c0_34 = arith.constant 0 : index
    %c0_35 = arith.constant 0 : index
    %43 = vector.load %arg17[%c0_34, %c0_35] : memref<8x512xbf16, #tpu.memory_space<vmem>>, vector<8x128xbf16>
    tpu.vector_store %arg17[%c0_34, %c0_35], %42 {strides = array<i32>} : memref<8x512xbf16, #tpu.memory_space<vmem>>, vector<8x128xbf16>,
    %44 = vector.extract_strided_slice %20 {offsets = [0, 128], sizes = [8, 128], strides = [1, 1]} : vector<8x1536xbf16> to vector<8x128xbf16>
    %45 = vector.extract_strided_slice %25 {offsets = [0, 640], sizes = [8, 128], strides = [1, 1]} : vector<8x1536xbf16> to vector<8x128xbf16>
    %cst_36 = arith.constant dense<0.000000e+00> : vector<8x8xf32>
    %46 = tpu.matmul %44, %45, %cst_36 {dimension_numbers = #tpu.dot_dimension_numbers<[1], [1], [0], [0], [0, 0, 1, 0], [], []>} : vector<8x128xbf16>, vector<8x128xbf16>, vector<8x8xf32> -> vector<8x8xf32>
    %cst_37 = arith.constant dense<0xFF800000> : vector<8xf32>
    %47 = vector.multi_reduction <maximumf>, %46, %cst_37 [1] : vector<8x8xf32> to vector<8xf32>
    %48 = vector.shape_cast %47 : vector<8xf32> to vector<8x1xf32>
    %49 = vector.broadcast %48 : vector<8x1xf32> to vector<8x8xf32>
    %50 = arith.subf %46, %49 : vector<8x8xf32>
    %51 = math.exp %50 : vector<8x8xf32>
    %cst_38 = arith.constant dense<0.000000e+00> : vector<8xf32>
    %52 = vector.multi_reduction <add>, %51, %cst_38 [1] : vector<8x8xf32> to vector<8xf32>
    %53 = vector.shape_cast %52 : vector<8xf32> to vector<8x1xf32>
    %54 = arith.truncf %51 : vector<8x8xf32> to vector<8x8xbf16>
    %55 = vector.extract_strided_slice %25 {offsets = [0, 1152], sizes = [8, 128], strides = [1, 1]} : vector<8x1536xbf16> to vector<8x128xbf16>
    %cst_39 = arith.constant dense<0.000000e+00> : vector<8x128xf32>
    %56 = tpu.matmul %54, %55, %cst_39 {dimension_numbers = #tpu.dot_dimension_numbers<[1], [0], [0], [1], [0, 0, 1, 1], [], []>} : vector<8x8xbf16>, vector<8x128xbf16>, vector<8x128xf32> -> vector<8x128xf32>
    %57 = tpu.reciprocal %53 : vector<8x1xf32> -> vector<8x1xf32>
    %58 = vector.broadcast %57 : vector<8x1xf32> to vector<8x128xf32>
    %59 = arith.mulf %56, %58 : vector<8x128xf32>
    %60 = arith.truncf %59 : vector<8x128xf32> to vector<8x128xbf16>
    %c0_40 = arith.constant 0 : index
    %c128 = arith.constant 128 : index
    %61 = vector.load %arg17[%c0_40, %c128] : memref<8x512xbf16, #tpu.memory_space<vmem>>, vector<8x128xbf16>
    tpu.vector_store %arg17[%c0_40, %c128], %60 {strides = array<i32>} : memref<8x512xbf16, #tpu.memory_space<vmem>>, vector<8x128xbf16>,
    %62 = vector.extract_strided_slice %20 {offsets = [0, 256], sizes = [8, 128], strides = [1, 1]} : vector<8x1536xbf16> to vector<8x128xbf16>
    %63 = vector.extract_strided_slice %25 {offsets = [0, 768], sizes = [8, 128], strides = [1, 1]} : vector<8x1536xbf16> to vector<8x128xbf16>
    %cst_41 = arith.constant dense<0.000000e+00> : vector<8x8xf32>
    %64 = tpu.matmul %62, %63, %cst_41 {dimension_numbers = #tpu.dot_dimension_numbers<[1], [1], [0], [0], [0, 0, 1, 0], [], []>} : vector<8x128xbf16>, vector<8x128xbf16>, vector<8x8xf32> -> vector<8x8xf32>
    %cst_42 = arith.constant dense<0xFF800000> : vector<8xf32>
    %65 = vector.multi_reduction <maximumf>, %64, %cst_42 [1] : vector<8x8xf32> to vector<8xf32>
    %66 = vector.shape_cast %65 : vector<8xf32> to vector<8x1xf32>
    %67 = vector.broadcast %66 : vector<8x1xf32> to vector<8x8xf32>
    %68 = arith.subf %64, %67 : vector<8x8xf32>
    %69 = math.exp %68 : vector<8x8xf32>
    %cst_43 = arith.constant dense<0.000000e+00> : vector<8xf32>
    %70 = vector.multi_reduction <add>, %69, %cst_43 [1] : vector<8x8xf32> to vector<8xf32>
    %71 = vector.shape_cast %70 : vector<8xf32> to vector<8x1xf32>
    %72 = arith.truncf %69 : vector<8x8xf32> to vector<8x8xbf16>
    %73 = vector.extract_strided_slice %25 {offsets = [0, 1280], sizes = [8, 128], strides = [1, 1]} : vector<8x1536xbf16> to vector<8x128xbf16>
    %cst_44 = arith.constant dense<0.000000e+00> : vector<8x128xf32>
    %74 = tpu.matmul %72, %73, %cst_44 {dimension_numbers = #tpu.dot_dimension_numbers<[1], [0], [0], [1], [0, 0, 1, 1], [], []>} : vector<8x8xbf16>, vector<8x128xbf16>, vector<8x128xf32> -> vector<8x128xf32>
    %75 = tpu.reciprocal %71 : vector<8x1xf32> -> vector<8x1xf32>
    %76 = vector.broadcast %75 : vector<8x1xf32> to vector<8x128xf32>
    %77 = arith.mulf %74, %76 : vector<8x128xf32>
    %78 = arith.truncf %77 : vector<8x128xf32> to vector<8x128xbf16>
    %c0_45 = arith.constant 0 : index
    %c256 = arith.constant 256 : index
    %79 = vector.load %arg17[%c0_45, %c256] : memref<8x512xbf16, #tpu.memory_space<vmem>>, vector<8x128xbf16>
    tpu.vector_store %arg17[%c0_45, %c256], %78 {strides = array<i32>} : memref<8x512xbf16, #tpu.memory_space<vmem>>, vector<8x128xbf16>,
    %80 = vector.extract_strided_slice %20 {offsets = [0, 384], sizes = [8, 128], strides = [1, 1]} : vector<8x1536xbf16> to vector<8x128xbf16>
    %81 = vector.extract_strided_slice %25 {offsets = [0, 896], sizes = [8, 128], strides = [1, 1]} : vector<8x1536xbf16> to vector<8x128xbf16>
    %cst_46 = arith.constant dense<0.000000e+00> : vector<8x8xf32>
    %82 = tpu.matmul %80, %81, %cst_46 {dimension_numbers = #tpu.dot_dimension_numbers<[1], [1], [0], [0], [0, 0, 1, 0], [], []>} : vector<8x128xbf16>, vector<8x128xbf16>, vector<8x8xf32> -> vector<8x8xf32>
    %cst_47 = arith.constant dense<0xFF800000> : vector<8xf32>
    %83 = vector.multi_reduction <maximumf>, %82, %cst_47 [1] : vector<8x8xf32> to vector<8xf32>
    %84 = vector.shape_cast %83 : vector<8xf32> to vector<8x1xf32>
    %85 = vector.broadcast %84 : vector<8x1xf32> to vector<8x8xf32>
    %86 = arith.subf %82, %85 : vector<8x8xf32>
    %87 = math.exp %86 : vector<8x8xf32>
    %cst_48 = arith.constant dense<0.000000e+00> : vector<8xf32>
    %88 = vector.multi_reduction <add>, %87, %cst_48 [1] : vector<8x8xf32> to vector<8xf32>
    %89 = vector.shape_cast %88 : vector<8xf32> to vector<8x1xf32>
    %90 = arith.truncf %87 : vector<8x8xf32> to vector<8x8xbf16>
    %91 = vector.extract_strided_slice %25 {offsets = [0, 1408], sizes = [8, 128], strides = [1, 1]} : vector<8x1536xbf16> to vector<8x128xbf16>
    %cst_49 = arith.constant dense<0.000000e+00> : vector<8x128xf32>
    %92 = tpu.matmul %90, %91, %cst_49 {dimension_numbers = #tpu.dot_dimension_numbers<[1], [0], [0], [1], [0, 0, 1, 1], [], []>} : vector<8x8xbf16>, vector<8x128xbf16>, vector<8x128xf32> -> vector<8x128xf32>
    %93 = tpu.reciprocal %89 : vector<8x1xf32> -> vector<8x1xf32>
    %94 = vector.broadcast %93 : vector<8x1xf32> to vector<8x128xf32>
    %95 = arith.mulf %92, %94 : vector<8x128xf32>
    %96 = arith.truncf %95 : vector<8x128xf32> to vector<8x128xbf16>
    %c0_50 = arith.constant 0 : index
    %c384 = arith.constant 384 : index
    %97 = vector.load %arg17[%c0_50, %c384] : memref<8x512xbf16, #tpu.memory_space<vmem>>, vector<8x128xbf16>
    tpu.vector_store %arg17[%c0_50, %c384], %96 {strides = array<i32>} : memref<8x512xbf16, #tpu.memory_space<vmem>>, vector<8x128xbf16>,
    %98 = vector.extract_strided_slice %25 {offsets = [0, 0], sizes = [8, 128], strides = [1, 1]} : vector<8x1536xbf16> to vector<8x128xbf16>
    %99 = vector.extract_strided_slice %20 {offsets = [0, 512], sizes = [8, 128], strides = [1, 1]} : vector<8x1536xbf16> to vector<8x128xbf16>
    %cst_51 = arith.constant dense<0.000000e+00> : vector<8x8xf32>
    %100 = tpu.matmul %98, %99, %cst_51 {dimension_numbers = #tpu.dot_dimension_numbers<[1], [1], [0], [0], [0, 0, 1, 0], [], []>} : vector<8x128xbf16>, vector<8x128xbf16>, vector<8x8xf32> -> vector<8x8xf32>
    %cst_52 = arith.constant dense<0xFF800000> : vector<8xf32>
    %101 = vector.multi_reduction <maximumf>, %100, %cst_52 [1] : vector<8x8xf32> to vector<8xf32>
    %102 = vector.shape_cast %101 : vector<8xf32> to vector<8x1xf32>
    %103 = vector.broadcast %102 : vector<8x1xf32> to vector<8x8xf32>
    %104 = arith.subf %100, %103 : vector<8x8xf32>
    %105 = math.exp %104 : vector<8x8xf32>
    %cst_53 = arith.constant dense<0.000000e+00> : vector<8xf32>
    %106 = vector.multi_reduction <add>, %105, %cst_53 [1] : vector<8x8xf32> to vector<8xf32>
    %107 = vector.shape_cast %106 : vector<8xf32> to vector<8x1xf32>
    %108 = arith.truncf %105 : vector<8x8xf32> to vector<8x8xbf16>
    %109 = vector.extract_strided_slice %20 {offsets = [0, 1024], sizes = [8, 128], strides = [1, 1]} : vector<8x1536xbf16> to vector<8x128xbf16>
    %cst_54 = arith.constant dense<0.000000e+00> : vector<8x128xf32>
    %110 = tpu.matmul %108, %109, %cst_54 {dimension_numbers = #tpu.dot_dimension_numbers<[1], [0], [0], [1], [0, 0, 1, 1], [], []>} : vector<8x8xbf16>, vector<8x128xbf16>, vector<8x128xf32> -> vector<8x128xf32>
    %111 = tpu.reciprocal %107 : vector<8x1xf32> -> vector<8x1xf32>
    %112 = vector.broadcast %111 : vector<8x1xf32> to vector<8x128xf32>
    %113 = arith.mulf %110, %112 : vector<8x128xf32>
    %114 = arith.truncf %113 : vector<8x128xf32> to vector<8x128xbf16>
    %c0_55 = arith.constant 0 : index
    %c0_56 = arith.constant 0 : index
    %115 = vector.load %arg18[%c0_55, %c0_56] : memref<8x512xbf16, #tpu.memory_space<vmem>>, vector<8x128xbf16>
    tpu.vector_store %arg18[%c0_55, %c0_56], %114 {strides = array<i32>} : memref<8x512xbf16, #tpu.memory_space<vmem>>, vector<8x128xbf16>,
    %116 = vector.extract_strided_slice %25 {offsets = [0, 128], sizes = [8, 128], strides = [1, 1]} : vector<8x1536xbf16> to vector<8x128xbf16>
    %117 = vector.extract_strided_slice %20 {offsets = [0, 640], sizes = [8, 128], strides = [1, 1]} : vector<8x1536xbf16> to vector<8x128xbf16>
    %cst_57 = arith.constant dense<0.000000e+00> : vector<8x8xf32>
    %118 = tpu.matmul %116, %117, %cst_57 {dimension_numbers = #tpu.dot_dimension_numbers<[1], [1], [0], [0], [0, 0, 1, 0], [], []>} : vector<8x128xbf16>, vector<8x128xbf16>, vector<8x8xf32> -> vector<8x8xf32>
    %cst_58 = arith.constant dense<0xFF800000> : vector<8xf32>
    %119 = vector.multi_reduction <maximumf>, %118, %cst_58 [1] : vector<8x8xf32> to vector<8xf32>
    %120 = vector.shape_cast %119 : vector<8xf32> to vector<8x1xf32>
    %121 = vector.broadcast %120 : vector<8x1xf32> to vector<8x8xf32>
    %122 = arith.subf %118, %121 : vector<8x8xf32>
    %123 = math.exp %122 : vector<8x8xf32>
    %cst_59 = arith.constant dense<0.000000e+00> : vector<8xf32>
    %124 = vector.multi_reduction <add>, %123, %cst_59 [1] : vector<8x8xf32> to vector<8xf32>
    %125 = vector.shape_cast %124 : vector<8xf32> to vector<8x1xf32>
    %126 = arith.truncf %123 : vector<8x8xf32> to vector<8x8xbf16>
    %127 = vector.extract_strided_slice %20 {offsets = [0, 1152], sizes = [8, 128], strides = [1, 1]} : vector<8x1536xbf16> to vector<8x128xbf16>
    %cst_60 = arith.constant dense<0.000000e+00> : vector<8x128xf32>
    %128 = tpu.matmul %126, %127, %cst_60 {dimension_numbers = #tpu.dot_dimension_numbers<[1], [0], [0], [1], [0, 0, 1, 1], [], []>} : vector<8x8xbf16>, vector<8x128xbf16>, vector<8x128xf32> -> vector<8x128xf32>
    %129 = tpu.reciprocal %125 : vector<8x1xf32> -> vector<8x1xf32>
    %130 = vector.broadcast %129 : vector<8x1xf32> to vector<8x128xf32>
    %131 = arith.mulf %128, %130 : vector<8x128xf32>
    %132 = arith.truncf %131 : vector<8x128xf32> to vector<8x128xbf16>
    %c0_61 = arith.constant 0 : index
    %c128_62 = arith.constant 128 : index
    %133 = vector.load %arg18[%c0_61, %c128_62] : memref<8x512xbf16, #tpu.memory_space<vmem>>, vector<8x128xbf16>
    tpu.vector_store %arg18[%c0_61, %c128_62], %132 {strides = array<i32>} : memref<8x512xbf16, #tpu.memory_space<vmem>>, vector<8x128xbf16>,
    %134 = vector.extract_strided_slice %25 {offsets = [0, 256], sizes = [8, 128], strides = [1, 1]} : vector<8x1536xbf16> to vector<8x128xbf16>
    %135 = vector.extract_strided_slice %20 {offsets = [0, 768], sizes = [8, 128], strides = [1, 1]} : vector<8x1536xbf16> to vector<8x128xbf16>
    %cst_63 = arith.constant dense<0.000000e+00> : vector<8x8xf32>
    %136 = tpu.matmul %134, %135, %cst_63 {dimension_numbers = #tpu.dot_dimension_numbers<[1], [1], [0], [0], [0, 0, 1, 0], [], []>} : vector<8x128xbf16>, vector<8x128xbf16>, vector<8x8xf32> -> vector<8x8xf32>
    %cst_64 = arith.constant dense<0xFF800000> : vector<8xf32>
    %137 = vector.multi_reduction <maximumf>, %136, %cst_64 [1] : vector<8x8xf32> to vector<8xf32>
    %138 = vector.shape_cast %137 : vector<8xf32> to vector<8x1xf32>
    %139 = vector.broadcast %138 : vector<8x1xf32> to vector<8x8xf32>
    %140 = arith.subf %136, %139 : vector<8x8xf32>
    %141 = math.exp %140 : vector<8x8xf32>
    %cst_65 = arith.constant dense<0.000000e+00> : vector<8xf32>
    %142 = vector.multi_reduction <add>, %141, %cst_65 [1] : vector<8x8xf32> to vector<8xf32>
    %143 = vector.shape_cast %142 : vector<8xf32> to vector<8x1xf32>
    %144 = arith.truncf %141 : vector<8x8xf32> to vector<8x8xbf16>
    %145 = vector.extract_strided_slice %20 {offsets = [0, 1280], sizes = [8, 128], strides = [1, 1]} : vector<8x1536xbf16> to vector<8x128xbf16>
    %cst_66 = arith.constant dense<0.000000e+00> : vector<8x128xf32>
    %146 = tpu.matmul %144, %145, %cst_66 {dimension_numbers = #tpu.dot_dimension_numbers<[1], [0], [0], [1], [0, 0, 1, 1], [], []>} : vector<8x8xbf16>, vector<8x128xbf16>, vector<8x128xf32> -> vector<8x128xf32>
    %147 = tpu.reciprocal %143 : vector<8x1xf32> -> vector<8x1xf32>
    %148 = vector.broadcast %147 : vector<8x1xf32> to vector<8x128xf32>
    %149 = arith.mulf %146, %148 : vector<8x128xf32>
    %150 = arith.truncf %149 : vector<8x128xf32> to vector<8x128xbf16>
    %c0_67 = arith.constant 0 : index
    %c256_68 = arith.constant 256 : index
    %151 = vector.load %arg18[%c0_67, %c256_68] : memref<8x512xbf16, #tpu.memory_space<vmem>>, vector<8x128xbf16>
    tpu.vector_store %arg18[%c0_67, %c256_68], %150 {strides = array<i32>} : memref<8x512xbf16, #tpu.memory_space<vmem>>, vector<8x128xbf16>,
    %152 = vector.extract_strided_slice %25 {offsets = [0, 384], sizes = [8, 128], strides = [1, 1]} : vector<8x1536xbf16> to vector<8x128xbf16>
    %153 = vector.extract_strided_slice %20 {offsets = [0, 896], sizes = [8, 128], strides = [1, 1]} : vector<8x1536xbf16> to vector<8x128xbf16>
    %cst_69 = arith.constant dense<0.000000e+00> : vector<8x8xf32>
    %154 = tpu.matmul %152, %153, %cst_69 {dimension_numbers = #tpu.dot_dimension_numbers<[1], [1], [0], [0], [0, 0, 1, 0], [], []>} : vector<8x128xbf16>, vector<8x128xbf16>, vector<8x8xf32> -> vector<8x8xf32>
    %cst_70 = arith.constant dense<0xFF800000> : vector<8xf32>
    %155 = vector.multi_reduction <maximumf>, %154, %cst_70 [1] : vector<8x8xf32> to vector<8xf32>
    %156 = vector.shape_cast %155 : vector<8xf32> to vector<8x1xf32>
    %157 = vector.broadcast %156 : vector<8x1xf32> to vector<8x8xf32>
    %158 = arith.subf %154, %157 : vector<8x8xf32>
    %159 = math.exp %158 : vector<8x8xf32>
    %cst_71 = arith.constant dense<0.000000e+00> : vector<8xf32>
    %160 = vector.multi_reduction <add>, %159, %cst_71 [1] : vector<8x8xf32> to vector<8xf32>
    %161 = vector.shape_cast %160 : vector<8xf32> to vector<8x1xf32>
    %162 = arith.truncf %159 : vector<8x8xf32> to vector<8x8xbf16>
    %163 = vector.extract_strided_slice %20 {offsets = [0, 1408], sizes = [8, 128], strides = [1, 1]} : vector<8x1536xbf16> to vector<8x128xbf16>
    %cst_72 = arith.constant dense<0.000000e+00> : vector<8x128xf32>
    %164 = tpu.matmul %162, %163, %cst_72 {dimension_numbers = #tpu.dot_dimension_numbers<[1], [0], [0], [1], [0, 0, 1, 1], [], []>} : vector<8x8xbf16>, vector<8x128xbf16>, vector<8x128xf32> -> vector<8x128xf32>
    %165 = tpu.reciprocal %161 : vector<8x1xf32> -> vector<8x1xf32>
    %166 = vector.broadcast %165 : vector<8x1xf32> to vector<8x128xf32>
    %167 = arith.mulf %164, %166 : vector<8x128xf32>
    %168 = arith.truncf %167 : vector<8x128xf32> to vector<8x128xbf16>
    %c0_73 = arith.constant 0 : index
    %c384_74 = arith.constant 384 : index
    %169 = vector.load %arg18[%c0_73, %c384_74] : memref<8x512xbf16, #tpu.memory_space<vmem>>, vector<8x128xbf16>
    tpu.vector_store %arg18[%c0_73, %c384_74], %168 {strides = array<i32>} : memref<8x512xbf16, #tpu.memory_space<vmem>>, vector<8x128xbf16>,
    %c0_75 = arith.constant 0 : index
    %c0_76 = arith.constant 0 : index
    %170 = vector.load %arg17[%c0_75, %c0_76] : memref<8x512xbf16, #tpu.memory_space<vmem>>, vector<8x512xbf16>
    %c0_77 = arith.constant 0 : index
    %c0_78 = arith.constant 0 : index
    %171 = vector.load %arg18[%c0_77, %c0_78] : memref<8x512xbf16, #tpu.memory_space<vmem>>, vector<8x512xbf16>
    %cst_79 = arith.constant dense<0.000000e+00> : vector<8x32xf32>
    %172 = tpu.matmul %170, %6, %cst_79 {dimension_numbers = #tpu.dot_dimension_numbers<[1], [0], [0], [1], [0, 0, 1, 1], [], []>} : vector<8x512xbf16>, vector<512x32xbf16>, vector<8x32xf32> -> vector<8x32xf32>
    %173 = vector.broadcast %7 : vector<1x32xf32> to vector<8x32xf32>
    %174 = arith.addf %172, %173 : vector<8x32xf32>
    %175 = arith.addf %174, %1 : vector<8x32xf32>
    %cst_80 = arith.constant dense<0.000000e+00> : vector<8xf32>
    %176 = vector.multi_reduction <add>, %175, %cst_80 [1] : vector<8x32xf32> to vector<8xf32>
    %177 = vector.shape_cast %176 : vector<8xf32> to vector<8x1xf32>
    %cst_81 = arith.constant 3.200000e+01 : f32
    %178 = vector.broadcast %cst_81 : f32 to vector<8x1xf32>
    %179 = arith.divf %177, %178 : vector<8x1xf32>
    %180 = vector.broadcast %179 : vector<8x1xf32> to vector<8x32xf32>
    %181 = arith.subf %175, %180 : vector<8x32xf32>
    %182 = arith.mulf %181, %181 : vector<8x32xf32>
    %cst_82 = arith.constant dense<0.000000e+00> : vector<8xf32>
    %183 = vector.multi_reduction <add>, %182, %cst_82 [1] : vector<8x32xf32> to vector<8xf32>
    %184 = vector.shape_cast %183 : vector<8xf32> to vector<8x1xf32>
    %cst_83 = arith.constant 3.200000e+01 : f32
    %185 = vector.broadcast %cst_83 : f32 to vector<8x1xf32>
    %186 = arith.divf %184, %185 : vector<8x1xf32>
    %cst_84 = arith.constant 9.99999974E-6 : f32
    %187 = vector.broadcast %cst_84 : f32 to vector<8x1xf32>
    %188 = arith.addf %186, %187 : vector<8x1xf32>
    %189 = math.rsqrt %188 : vector<8x1xf32>
    %190 = vector.broadcast %189 : vector<8x1xf32> to vector<8x32xf32>
    %191 = arith.mulf %181, %190 : vector<8x32xf32>
    %192 = vector.broadcast %8 : vector<1x32xf32> to vector<8x32xf32>
    %193 = arith.mulf %191, %192 : vector<8x32xf32>
    %194 = vector.broadcast %9 : vector<1x32xf32> to vector<8x32xf32>
    %195 = arith.addf %193, %194 : vector<8x32xf32>
    %cst_85 = arith.constant dense<0.000000e+00> : vector<8x32xf32>
    %196 = tpu.matmul %171, %6, %cst_85 {dimension_numbers = #tpu.dot_dimension_numbers<[1], [0], [0], [1], [0, 0, 1, 1], [], []>} : vector<8x512xbf16>, vector<512x32xbf16>, vector<8x32xf32> -> vector<8x32xf32>
    %197 = vector.broadcast %7 : vector<1x32xf32> to vector<8x32xf32>
    %198 = arith.addf %196, %197 : vector<8x32xf32>
    %199 = arith.addf %198, %3 : vector<8x32xf32>
    %cst_86 = arith.constant dense<0.000000e+00> : vector<8xf32>
    %200 = vector.multi_reduction <add>, %199, %cst_86 [1] : vector<8x32xf32> to vector<8xf32>
    %201 = vector.shape_cast %200 : vector<8xf32> to vector<8x1xf32>
    %cst_87 = arith.constant 3.200000e+01 : f32
    %202 = vector.broadcast %cst_87 : f32 to vector<8x1xf32>
    %203 = arith.divf %201, %202 : vector<8x1xf32>
    %204 = vector.broadcast %203 : vector<8x1xf32> to vector<8x32xf32>
    %205 = arith.subf %199, %204 : vector<8x32xf32>
    %206 = arith.mulf %205, %205 : vector<8x32xf32>
    %cst_88 = arith.constant dense<0.000000e+00> : vector<8xf32>
    %207 = vector.multi_reduction <add>, %206, %cst_88 [1] : vector<8x32xf32> to vector<8xf32>
    %208 = vector.shape_cast %207 : vector<8xf32> to vector<8x1xf32>
    %cst_89 = arith.constant 3.200000e+01 : f32
    %209 = vector.broadcast %cst_89 : f32 to vector<8x1xf32>
    %210 = arith.divf %208, %209 : vector<8x1xf32>
    %cst_90 = arith.constant 9.99999974E-6 : f32
    %211 = vector.broadcast %cst_90 : f32 to vector<8x1xf32>
    %212 = arith.addf %210, %211 : vector<8x1xf32>
    %213 = math.rsqrt %212 : vector<8x1xf32>
    %214 = vector.broadcast %213 : vector<8x1xf32> to vector<8x32xf32>
    %215 = arith.mulf %205, %214 : vector<8x32xf32>
    %216 = vector.broadcast %8 : vector<1x32xf32> to vector<8x32xf32>
    %217 = arith.mulf %215, %216 : vector<8x32xf32>
    %218 = vector.broadcast %9 : vector<1x32xf32> to vector<8x32xf32>
    %219 = arith.addf %217, %218 : vector<8x32xf32>
    %cst_91 = arith.constant dense<0.000000e+00> : vector<8xf32>
    %220 = vector.multi_reduction <add>, %1, %cst_91 [1] : vector<8x32xf32> to vector<8xf32>
    %221 = vector.shape_cast %220 : vector<8xf32> to vector<8x1xf32>
    %cst_92 = arith.constant 3.200000e+01 : f32
    %222 = vector.broadcast %cst_92 : f32 to vector<8x1xf32>
    %223 = arith.divf %221, %222 : vector<8x1xf32>
    %224 = vector.broadcast %223 : vector<8x1xf32> to vector<8x32xf32>
    %225 = arith.subf %1, %224 : vector<8x32xf32>
    %226 = arith.mulf %225, %225 : vector<8x32xf32>
    %cst_93 = arith.constant dense<0.000000e+00> : vector<8xf32>
    %227 = vector.multi_reduction <add>, %226, %cst_93 [1] : vector<8x32xf32> to vector<8xf32>
    %228 = vector.shape_cast %227 : vector<8xf32> to vector<8x1xf32>
    %cst_94 = arith.constant 3.200000e+01 : f32
    %229 = vector.broadcast %cst_94 : f32 to vector<8x1xf32>
    %230 = arith.divf %228, %229 : vector<8x1xf32>
    %cst_95 = arith.constant 9.99999974E-6 : f32
    %231 = vector.broadcast %cst_95 : f32 to vector<8x1xf32>
    %232 = arith.addf %230, %231 : vector<8x1xf32>
    %233 = math.rsqrt %232 : vector<8x1xf32>
    %234 = vector.broadcast %233 : vector<8x1xf32> to vector<8x32xf32>
    %235 = arith.mulf %225, %234 : vector<8x32xf32>
    %236 = vector.broadcast %10 : vector<1x32xf32> to vector<8x32xf32>
    %237 = arith.mulf %235, %236 : vector<8x32xf32>
    %238 = vector.broadcast %11 : vector<1x32xf32> to vector<8x32xf32>
    %239 = arith.addf %237, %238 : vector<8x32xf32>
    %240 = arith.addf %239, %195 : vector<8x32xf32>
    %cst_96 = arith.constant dense<0.000000e+00> : vector<8xf32>
    %241 = vector.multi_reduction <add>, %240, %cst_96 [1] : vector<8x32xf32> to vector<8xf32>
    %242 = vector.shape_cast %241 : vector<8xf32> to vector<8x1xf32>
    %cst_97 = arith.constant 3.200000e+01 : f32
    %243 = vector.broadcast %cst_97 : f32 to vector<8x1xf32>
    %244 = arith.divf %242, %243 : vector<8x1xf32>
    %245 = vector.broadcast %244 : vector<8x1xf32> to vector<8x32xf32>
    %246 = arith.subf %240, %245 : vector<8x32xf32>
    %247 = arith.mulf %246, %246 : vector<8x32xf32>
    %cst_98 = arith.constant dense<0.000000e+00> : vector<8xf32>
    %248 = vector.multi_reduction <add>, %247, %cst_98 [1] : vector<8x32xf32> to vector<8xf32>
    %249 = vector.shape_cast %248 : vector<8xf32> to vector<8x1xf32>
    %cst_99 = arith.constant 3.200000e+01 : f32
    %250 = vector.broadcast %cst_99 : f32 to vector<8x1xf32>
    %251 = arith.divf %249, %250 : vector<8x1xf32>
    %cst_100 = arith.constant 9.99999974E-6 : f32
    %252 = vector.broadcast %cst_100 : f32 to vector<8x1xf32>
    %253 = arith.addf %251, %252 : vector<8x1xf32>
    %254 = math.rsqrt %253 : vector<8x1xf32>
    %255 = vector.broadcast %254 : vector<8x1xf32> to vector<8x32xf32>
    %256 = arith.mulf %246, %255 : vector<8x32xf32>
    %257 = vector.broadcast %10 : vector<1x32xf32> to vector<8x32xf32>
    %258 = arith.mulf %256, %257 : vector<8x32xf32>
    %259 = vector.broadcast %11 : vector<1x32xf32> to vector<8x32xf32>
    %260 = arith.addf %258, %259 : vector<8x32xf32>
    %261 = arith.truncf %260 : vector<8x32xf32> to vector<8x32xbf16>
    %cst_101 = arith.constant dense<0.000000e+00> : vector<8x64xf32>
    %262 = tpu.matmul %261, %12, %cst_101 {dimension_numbers = #tpu.dot_dimension_numbers<[1], [0], [0], [1], [0, 0, 1, 1], [], []>} : vector<8x32xbf16>, vector<32x64xbf16>, vector<8x64xf32> -> vector<8x64xf32>
    %263 = vector.broadcast %13 : vector<1x64xf32> to vector<8x64xf32>
    %264 = arith.addf %262, %263 : vector<8x64xf32>
    %cst_102 = arith.constant 0.000000e+00 : f32
    %265 = vector.broadcast %cst_102 : f32 to vector<8x64xf32>
    %266 = arith.maximumf %264, %265 : vector<8x64xf32>
    %267 = arith.truncf %266 : vector<8x64xf32> to vector<8x64xbf16>
    %cst_103 = arith.constant dense<0.000000e+00> : vector<8x32xf32>
    %268 = tpu.matmul %267, %14, %cst_103 {dimension_numbers = #tpu.dot_dimension_numbers<[1], [0], [0], [1], [0, 0, 1, 1], [], []>} : vector<8x64xbf16>, vector<64x32xbf16>, vector<8x32xf32> -> vector<8x32xf32>
    %269 = vector.broadcast %15 : vector<1x32xf32> to vector<8x32xf32>
    %270 = arith.addf %268, %269 : vector<8x32xf32>
    %271 = arith.addf %240, %270 : vector<8x32xf32>
    %272 = vector.shape_cast %271 : vector<8x32xf32> to vector<1x8x32xf32>
    %c0_104 = arith.constant 0 : index
    %c0_105 = arith.constant 0 : index
    %c0_106 = arith.constant 0 : index
    %273 = vector.load %arg15[%c0_104, %c0_105, %c0_106] : memref<1x8x32xf32, #tpu.memory_space<vmem>>, vector<1x8x32xf32>
    tpu.vector_store %arg15[%c0_104, %c0_105, %c0_106], %272 {strides = array<i32>} : memref<1x8x32xf32, #tpu.memory_space<vmem>>, vector<1x8x32xf32>,
    %cst_107 = arith.constant dense<0.000000e+00> : vector<8xf32>
    %274 = vector.multi_reduction <add>, %3, %cst_107 [1] : vector<8x32xf32> to vector<8xf32>
    %275 = vector.shape_cast %274 : vector<8xf32> to vector<8x1xf32>
    %cst_108 = arith.constant 3.200000e+01 : f32
    %276 = vector.broadcast %cst_108 : f32 to vector<8x1xf32>
    %277 = arith.divf %275, %276 : vector<8x1xf32>
    %278 = vector.broadcast %277 : vector<8x1xf32> to vector<8x32xf32>
    %279 = arith.subf %3, %278 : vector<8x32xf32>
    %280 = arith.mulf %279, %279 : vector<8x32xf32>
    %cst_109 = arith.constant dense<0.000000e+00> : vector<8xf32>
    %281 = vector.multi_reduction <add>, %280, %cst_109 [1] : vector<8x32xf32> to vector<8xf32>
    %282 = vector.shape_cast %281 : vector<8xf32> to vector<8x1xf32>
    %cst_110 = arith.constant 3.200000e+01 : f32
    %283 = vector.broadcast %cst_110 : f32 to vector<8x1xf32>
    %284 = arith.divf %282, %283 : vector<8x1xf32>
    %cst_111 = arith.constant 9.99999974E-6 : f32
    %285 = vector.broadcast %cst_111 : f32 to vector<8x1xf32>
    %286 = arith.addf %284, %285 : vector<8x1xf32>
    %287 = math.rsqrt %286 : vector<8x1xf32>
    %288 = vector.broadcast %287 : vector<8x1xf32> to vector<8x32xf32>
    %289 = arith.mulf %279, %288 : vector<8x32xf32>
    %290 = vector.broadcast %10 : vector<1x32xf32> to vector<8x32xf32>
    %291 = arith.mulf %289, %290 : vector<8x32xf32>
    %292 = vector.broadcast %11 : vector<1x32xf32> to vector<8x32xf32>
    %293 = arith.addf %291, %292 : vector<8x32xf32>
    %294 = arith.addf %293, %219 : vector<8x32xf32>
    %cst_112 = arith.constant dense<0.000000e+00> : vector<8xf32>
    %295 = vector.multi_reduction <add>, %294, %cst_112 [1] : vector<8x32xf32> to vector<8xf32>
    %296 = vector.shape_cast %295 : vector<8xf32> to vector<8x1xf32>
    %cst_113 = arith.constant 3.200000e+01 : f32
    %297 = vector.broadcast %cst_113 : f32 to vector<8x1xf32>
    %298 = arith.divf %296, %297 : vector<8x1xf32>
    %299 = vector.broadcast %298 : vector<8x1xf32> to vector<8x32xf32>
    %300 = arith.subf %294, %299 : vector<8x32xf32>
    %301 = arith.mulf %300, %300 : vector<8x32xf32>
    %cst_114 = arith.constant dense<0.000000e+00> : vector<8xf32>
    %302 = vector.multi_reduction <add>, %301, %cst_114 [1] : vector<8x32xf32> to vector<8xf32>
    %303 = vector.shape_cast %302 : vector<8xf32> to vector<8x1xf32>
    %cst_115 = arith.constant 3.200000e+01 : f32
    %304 = vector.broadcast %cst_115 : f32 to vector<8x1xf32>
    %305 = arith.divf %303, %304 : vector<8x1xf32>
    %cst_116 = arith.constant 9.99999974E-6 : f32
    %306 = vector.broadcast %cst_116 : f32 to vector<8x1xf32>
    %307 = arith.addf %305, %306 : vector<8x1xf32>
    %308 = math.rsqrt %307 : vector<8x1xf32>
    %309 = vector.broadcast %308 : vector<8x1xf32> to vector<8x32xf32>
    %310 = arith.mulf %300, %309 : vector<8x32xf32>
    %311 = vector.broadcast %10 : vector<1x32xf32> to vector<8x32xf32>
    %312 = arith.mulf %310, %311 : vector<8x32xf32>
    %313 = vector.broadcast %11 : vector<1x32xf32> to vector<8x32xf32>
    %314 = arith.addf %312, %313 : vector<8x32xf32>
    %315 = arith.truncf %314 : vector<8x32xf32> to vector<8x32xbf16>
    %cst_117 = arith.constant dense<0.000000e+00> : vector<8x64xf32>
    %316 = tpu.matmul %315, %12, %cst_117 {dimension_numbers = #tpu.dot_dimension_numbers<[1], [0], [0], [1], [0, 0, 1, 1], [], []>} : vector<8x32xbf16>, vector<32x64xbf16>, vector<8x64xf32> -> vector<8x64xf32>
    %317 = vector.broadcast %13 : vector<1x64xf32> to vector<8x64xf32>
    %318 = arith.addf %316, %317 : vector<8x64xf32>
    %cst_118 = arith.constant 0.000000e+00 : f32
    %319 = vector.broadcast %cst_118 : f32 to vector<8x64xf32>
    %320 = arith.maximumf %318, %319 : vector<8x64xf32>
    %321 = arith.truncf %320 : vector<8x64xf32> to vector<8x64xbf16>
    %cst_119 = arith.constant dense<0.000000e+00> : vector<8x32xf32>
    %322 = tpu.matmul %321, %14, %cst_119 {dimension_numbers = #tpu.dot_dimension_numbers<[1], [0], [0], [1], [0, 0, 1, 1], [], []>} : vector<8x64xbf16>, vector<64x32xbf16>, vector<8x32xf32> -> vector<8x32xf32>
    %323 = vector.broadcast %15 : vector<1x32xf32> to vector<8x32xf32>
    %324 = arith.addf %322, %323 : vector<8x32xf32>
    %325 = arith.addf %294, %324 : vector<8x32xf32>
    %326 = vector.shape_cast %325 : vector<8x32xf32> to vector<1x8x32xf32>
    %c0_120 = arith.constant 0 : index
    %c0_121 = arith.constant 0 : index
    %c0_122 = arith.constant 0 : index
    %327 = vector.load %arg16[%c0_120, %c0_121, %c0_122] : memref<1x8x32xf32, #tpu.memory_space<vmem>>, vector<1x8x32xf32>
    tpu.vector_store %arg16[%c0_120, %c0_121, %c0_122], %326 {strides = array<i32>} : memref<1x8x32xf32, #tpu.memory_space<vmem>>, vector<1x8x32xf32>,
    return
  }
  func.func @transform_0(%arg0: i32) -> (i32, i32, i32) {
    %c0_i32 = arith.constant 0 : i32
    %c0_i32_0 = arith.constant 0 : i32
    %c0_i32_1 = arith.constant 0 : i32
    return %arg0, %c0_i32, %c0_i32_0 : i32, i32, i32
  }
  func.func @transform_1(%arg0: i32) -> (i32, i32, i32) {
    %c0_i32 = arith.constant 0 : i32
    %c0_i32_0 = arith.constant 0 : i32
    %c0_i32_1 = arith.constant 0 : i32
    return %arg0, %c0_i32, %c0_i32_0 : i32, i32, i32
  }
  func.func @transform_2(%arg0: i32) -> (i32, i32) {
    %c0_i32 = arith.constant 0 : i32
    %c0_i32_0 = arith.constant 0 : i32
    %c0_i32_1 = arith.constant 0 : i32
    return %c0_i32, %c0_i32_0 : i32, i32
  }
  func.func @transform_3(%arg0: i32) -> (i32, i32) {
    %c0_i32 = arith.constant 0 : i32
    %c0_i32_0 = arith.constant 0 : i32
    %c0_i32_1 = arith.constant 0 : i32
    return %c0_i32, %c0_i32_0 : i32, i32
  }
  func.func @transform_4(%arg0: i32) -> (i32, i32) {
    %c0_i32 = arith.constant 0 : i32
    %c0_i32_0 = arith.constant 0 : i32
    %c0_i32_1 = arith.constant 0 : i32
    return %c0_i32, %c0_i32_0 : i32, i32
  }
  func.func @transform_5(%arg0: i32) -> (i32, i32) {
    %c0_i32 = arith.constant 0 : i32
    %c0_i32_0 = arith.constant 0 : i32
    %c0_i32_1 = arith.constant 0 : i32
    return %c0_i32, %c0_i32_0 : i32, i32
  }
  func.func @transform_6(%arg0: i32) -> (i32, i32) {
    %c0_i32 = arith.constant 0 : i32
    %c0_i32_0 = arith.constant 0 : i32
    %c0_i32_1 = arith.constant 0 : i32
    return %c0_i32, %c0_i32_0 : i32, i32
  }
  func.func @transform_7(%arg0: i32) -> (i32, i32) {
    %c0_i32 = arith.constant 0 : i32
    %c0_i32_0 = arith.constant 0 : i32
    %c0_i32_1 = arith.constant 0 : i32
    return %c0_i32, %c0_i32_0 : i32, i32
  }
  func.func @transform_8(%arg0: i32) -> (i32, i32) {
    %c0_i32 = arith.constant 0 : i32
    %c0_i32_0 = arith.constant 0 : i32
    %c0_i32_1 = arith.constant 0 : i32
    return %c0_i32, %c0_i32_0 : i32, i32
  }
  func.func @transform_9(%arg0: i32) -> (i32, i32) {
    %c0_i32 = arith.constant 0 : i32
    %c0_i32_0 = arith.constant 0 : i32
    %c0_i32_1 = arith.constant 0 : i32
    return %c0_i32, %c0_i32_0 : i32, i32
  }
  func.func @transform_10(%arg0: i32) -> (i32, i32) {
    %c0_i32 = arith.constant 0 : i32
    %c0_i32_0 = arith.constant 0 : i32
    %c0_i32_1 = arith.constant 0 : i32
    return %c0_i32, %c0_i32_0 : i32, i32
  }
  func.func @transform_11(%arg0: i32) -> (i32, i32) {
    %c0_i32 = arith.constant 0 : i32
    %c0_i32_0 = arith.constant 0 : i32
    %c0_i32_1 = arith.constant 0 : i32
    return %c0_i32, %c0_i32_0 : i32, i32
  }
  func.func @transform_12(%arg0: i32) -> (i32, i32) {
    %c0_i32 = arith.constant 0 : i32
    %c0_i32_0 = arith.constant 0 : i32
    %c0_i32_1 = arith.constant 0 : i32
    return %c0_i32, %c0_i32_0 : i32, i32
  }
  func.func @transform_13(%arg0: i32) -> (i32, i32) {
    %c0_i32 = arith.constant 0 : i32
    %c0_i32_0 = arith.constant 0 : i32
    %c0_i32_1 = arith.constant 0 : i32
    return %c0_i32, %c0_i32_0 : i32, i32
  }
  func.func @transform_14(%arg0: i32) -> (i32, i32, i32) {
    %c0_i32 = arith.constant 0 : i32
    %c0_i32_0 = arith.constant 0 : i32
    %c0_i32_1 = arith.constant 0 : i32
    return %arg0, %c0_i32, %c0_i32_0 : i32, i32, i32
  }
  func.func @transform_15(%arg0: i32) -> (i32, i32, i32) {
    %c0_i32 = arith.constant 0 : i32
    %c0_i32_0 = arith.constant 0 : i32
    %c0_i32_1 = arith.constant 0 : i32
    return %arg0, %c0_i32, %c0_i32_0 : i32, i32, i32
  }
}

module attributes {stable_mosaic.version = 11 : i64} {
  func.func @_encoder_cell_ca_kernel(%arg0: i32, %arg1: memref<1x8x32xf32, #tpu.memory_space<vmem>>, %arg2: memref<1x8x32xf32, #tpu.memory_space<vmem>>, %arg3: memref<32x1536xbf16, #tpu.memory_space<vmem>>, %arg4: memref<1x1536xf32, #tpu.memory_space<vmem>>, %arg5: memref<512x32xbf16, #tpu.memory_space<vmem>>, %arg6: memref<1x32xf32, #tpu.memory_space<vmem>>, %arg7: memref<1x32xf32, #tpu.memory_space<vmem>>, %arg8: memref<1x32xf32, #tpu.memory_space<vmem>>, %arg9: memref<1x32xf32, #tpu.memory_space<vmem>>, %arg10: memref<1x32xf32, #tpu.memory_space<vmem>>, %arg11: memref<32x64xbf16, #tpu.memory_space<vmem>>, %arg12: memref<1x64xf32, #tpu.memory_space<vmem>>, %arg13: memref<64x32xbf16, #tpu.memory_space<vmem>>, %arg14: memref<1x32xf32, #tpu.memory_space<vmem>>, %arg15: memref<1x8x32xf32, #tpu.memory_space<vmem>>, %arg16: memref<1x8x32xf32, #tpu.memory_space<vmem>>, %arg17: memref<8x512xbf16, #tpu.memory_space<vmem>>, %arg18: memref<8x512xbf16, #tpu.memory_space<vmem>>) attributes {dimension_semantics = [#tpu.dimension_semantics<parallel>], iteration_bounds = array<i64: 2>, scalar_prefetch = 0 : i64, scratch_operands = 2 : i64, tpu.core_type = #tpu.core_type<tc>, window_params = [{transform_indices = @transform_0, window_bounds = array<i64: 1, 8, 32>}, {transform_indices = @transform_1, window_bounds = array<i64: 1, 8, 32>}, {pipeline_mode = #tpu.pipeline_mode<synchronous>, transform_indices = @transform_2, window_bounds = array<i64: 32, 1536>}, {pipeline_mode = #tpu.pipeline_mode<synchronous>, transform_indices = @transform_3, window_bounds = array<i64: 1, 1536>}, {pipeline_mode = #tpu.pipeline_mode<synchronous>, transform_indices = @transform_4, window_bounds = array<i64: 512, 32>}, {pipeline_mode = #tpu.pipeline_mode<synchronous>, transform_indices = @transform_5, window_bounds = array<i64: 1, 32>}, {pipeline_mode = #tpu.pipeline_mode<synchronous>, transform_indices = @transform_6, window_bounds = array<i64: 1, 32>}, {pipeline_mode = #tpu.pipeline_mode<synchronous>, transform_indices = @transform_7, window_bounds = array<i64: 1, 32>}, {pipeline_mode = #tpu.pipeline_mode<synchronous>, transform_indices = @transform_8, window_bounds = array<i64: 1, 32>}, {pipeline_mode = #tpu.pipeline_mode<synchronous>, transform_indices = @transform_9, window_bounds = array<i64: 1, 32>}, {pipeline_mode = #tpu.pipeline_mode<synchronous>, transform_indices = @transform_10, window_bounds = array<i64: 32, 64>}, {pipeline_mode = #tpu.pipeline_mode<synchronous>, transform_indices = @transform_11, window_bounds = array<i64: 1, 64>}, {pipeline_mode = #tpu.pipeline_mode<synchronous>, transform_indices = @transform_12, window_bounds = array<i64: 64, 32>}, {pipeline_mode = #tpu.pipeline_mode<synchronous>, transform_indices = @transform_13, window_bounds = array<i64: 1, 32>}, {transform_indices = @transform_14, window_bounds = array<i64: 1, 8, 32>}, {transform_indices = @transform_15, window_bounds = array<i64: 1, 8, 32>}]} {
    %c0 = arith.constant 0 : index
    %c0_0 = arith.constant 0 : index
    %c0_1 = arith.constant 0 : index
    %0 = vector.load %arg1[%c0, %c0_0, %c0_1] : memref<1x8x32xf32, #tpu.memory_space<vmem>>, vector<1x8x32xf32>
    %1 = vector.shape_cast %0 : vector<1x8x32xf32> to vector<8x32xf32>
    %c0_2 = arith.constant 0 : index
    %c0_3 = arith.constant 0 : index
    %c0_4 = arith.constant 0 : index
    %2 = vector.load %arg2[%c0_2, %c0_3, %c0_4] : memref<1x8x32xf32, #tpu.memory_space<vmem>>, vector<1x8x32xf32>
    %3 = vector.shape_cast %2 : vector<1x8x32xf32> to vector<8x32xf32>
    %c0_5 = arith.constant 0 : index
    %c0_6 = arith.constant 0 : index
    %4 = vector.load %arg3[%c0_5, %c0_6] : memref<32x1536xbf16, #tpu.memory_space<vmem>>, vector<32x1536xbf16>
    %c0_7 = arith.constant 0 : index
    %c0_8 = arith.constant 0 : index
    %5 = vector.load %arg4[%c0_7, %c0_8] : memref<1x1536xf32, #tpu.memory_space<vmem>>, vector<1x1536xf32>
    %c0_9 = arith.constant 0 : index
    %c0_10 = arith.constant 0 : index
    %6 = vector.load %arg5[%c0_9, %c0_10] : memref<512x32xbf16, #tpu.memory_space<vmem>>, vector<512x32xbf16>
    %c0_11 = arith.constant 0 : index
    %c0_12 = arith.constant 0 : index
    %7 = vector.load %arg6[%c0_11, %c0_12] : memref<1x32xf32, #tpu.memory_space<vmem>>, vector<1x32xf32>
    %c0_13 = arith.constant 0 : index
    %c0_14 = arith.constant 0 : index
    %8 = vector.load %arg7[%c0_13, %c0_14] : memref<1x32xf32, #tpu.memory_space<vmem>>, vector<1x32xf32>
    %c0_15 = arith.constant 0 : index
    %c0_16 = arith.constant 0 : index
    %9 = vector.load %arg8[%c0_15, %c0_16] : memref<1x32xf32, #tpu.memory_space<vmem>>, vector<1x32xf32>
    %c0_17 = arith.constant 0 : index
    %c0_18 = arith.constant 0 : index
    %10 = vector.load %arg9[%c0_17, %c0_18] : memref<1x32xf32, #tpu.memory_space<vmem>>, vector<1x32xf32>
    %c0_19 = arith.constant 0 : index
    %c0_20 = arith.constant 0 : index
    %11 = vector.load %arg10[%c0_19, %c0_20] : memref<1x32xf32, #tpu.memory_space<vmem>>, vector<1x32xf32>
    %c0_21 = arith.constant 0 : index
    %c0_22 = arith.constant 0 : index
    %12 = vector.load %arg11[%c0_21, %c0_22] : memref<32x64xbf16, #tpu.memory_space<vmem>>, vector<32x64xbf16>
    %c0_23 = arith.constant 0 : index
    %c0_24 = arith.constant 0 : index
    %13 = vector.load %arg12[%c0_23, %c0_24] : memref<1x64xf32, #tpu.memory_space<vmem>>, vector<1x64xf32>
    %c0_25 = arith.constant 0 : index
    %c0_26 = arith.constant 0 : index
    %14 = vector.load %arg13[%c0_25, %c0_26] : memref<64x32xbf16, #tpu.memory_space<vmem>>, vector<64x32xbf16>
    %c0_27 = arith.constant 0 : index
    %c0_28 = arith.constant 0 : index
    %15 = vector.load %arg14[%c0_27, %c0_28] : memref<1x32xf32, #tpu.memory_space<vmem>>, vector<1x32xf32>
    %16 = arith.truncf %1 : vector<8x32xf32> to vector<8x32xbf16>
    %cst = arith.constant dense<0.000000e+00> : vector<8x1536xf32>
    %17 = tpu.matmul %16, %4, %cst {dimension_numbers = #tpu.dot_dimension_numbers<[1], [0], [0], [1], [0, 0, 1, 1], [], []>} : vector<8x32xbf16>, vector<32x1536xbf16>, vector<8x1536xf32> -> vector<8x1536xf32>
    %18 = vector.broadcast %5 : vector<1x1536xf32> to vector<8x1536xf32>
    %19 = arith.addf %17, %18 : vector<8x1536xf32>
    %20 = arith.truncf %19 : vector<8x1536xf32> to vector<8x1536xbf16>
    %21 = arith.truncf %3 : vector<8x32xf32> to vector<8x32xbf16>
    %cst_29 = arith.constant dense<0.000000e+00> : vector<8x1536xf32>
    %22 = tpu.matmul %21, %4, %cst_29 {dimension_numbers = #tpu.dot_dimension_numbers<[1], [0], [0], [1], [0, 0, 1, 1], [], []>} : vector<8x32xbf16>, vector<32x1536xbf16>, vector<8x1536xf32> -> vector<8x1536xf32>
    %23 = vector.broadcast %5 : vector<1x1536xf32> to vector<8x1536xf32>
    %24 = arith.addf %22, %23 : vector<8x1536xf32>
    %25 = arith.truncf %24 : vector<8x1536xf32> to vector<8x1536xbf16>
    %26 = vector.extract_strided_slice %20 {offsets = [0, 0], sizes = [8, 128], strides = [1, 1]} : vector<8x1536xbf16> to vector<8x128xbf16>
    %27 = vector.extract_strided_slice %25 {offsets = [0, 512], sizes = [8, 128], strides = [1, 1]} : vector<8x1536xbf16> to vector<8x128xbf16>
    %cst_30 = arith.constant dense<0.000000e+00> : vector<8x8xf32>
    %28 = tpu.matmul %26, %27, %cst_30 {dimension_numbers = #tpu.dot_dimension_numbers<[1], [1], [0], [0], [0, 0, 1, 0], [], []>} : vector<8x128xbf16>, vector<8x128xbf16>, vector<8x8xf32> -> vector<8x8xf32>
    %cst_31 = arith.constant dense<0xFF800000> : vector<8xf32>
    %29 = vector.multi_reduction <maximumf>, %28, %cst_31 [1] : vector<8x8xf32> to vector<8xf32>
    %30 = vector.shape_cast %29 : vector<8xf32> to vector<8x1xf32>
    %31 = vector.broadcast %30 : vector<8x1xf32> to vector<8x8xf32>
    %32 = arith.subf %28, %31 : vector<8x8xf32>
    %33 = math.exp %32 : vector<8x8xf32>
    %cst_32 = arith.constant dense<0.000000e+00> : vector<8xf32>
    %34 = vector.multi_reduction <add>, %33, %cst_32 [1] : vector<8x8xf32> to vector<8xf32>
    %35 = vector.shape_cast %34 : vector<8xf32> to vector<8x1xf32>
    %36 = arith.truncf %33 : vector<8x8xf32> to vector<8x8xbf16>
    %37 = vector.extract_strided_slice %25 {offsets = [0, 1024], sizes = [8, 128], strides = [1, 1]} : vector<8x1536xbf16> to vector<8x128xbf16>
    %cst_33 = arith.constant dense<0.000000e+00> : vector<8x128xf32>
    %38 = tpu.matmul %36, %37, %cst_33 {dimension_numbers = #tpu.dot_dimension_numbers<[1], [0], [0], [1], [0, 0, 1, 1], [], []>} : vector<8x8xbf16>, vector<8x128xbf16>, vector<8x128xf32> -> vector<8x128xf32>
    %39 = tpu.reciprocal %35 : vector<8x1xf32> -> vector<8x1xf32>
    %40 = vector.broadcast %39 : vector<8x1xf32> to vector<8x128xf32>
    %41 = arith.mulf %38, %40 : vector<8x128xf32>
    %42 = arith.truncf %41 : vector<8x128xf32> to vector<8x128xbf16>
    %c0_34 = arith.constant 0 : index
    %c0_35 = arith.constant 0 : index
    %43 = vector.load %arg17[%c0_34, %c0_35] : memref<8x512xbf16, #tpu.memory_space<vmem>>, vector<8x128xbf16>
    tpu.vector_store %arg17[%c0_34, %c0_35], %42 {strides = array<i32>} : memref<8x512xbf16, #tpu.memory_space<vmem>>, vector<8x128xbf16>,
    %44 = vector.extract_strided_slice %20 {offsets = [0, 128], sizes = [8, 128], strides = [1, 1]} : vector<8x1536xbf16> to vector<8x128xbf16>
    %45 = vector.extract_strided_slice %25 {offsets = [0, 640], sizes = [8, 128], strides = [1, 1]} : vector<8x1536xbf16> to vector<8x128xbf16>
    %cst_36 = arith.constant dense<0.000000e+00> : vector<8x8xf32>
    %46 = tpu.matmul %44, %45, %cst_36 {dimension_numbers = #tpu.dot_dimension_numbers<[1], [1], [0], [0], [0, 0, 1, 0], [], []>} : vector<8x128xbf16>, vector<8x128xbf16>, vector<8x8xf32> -> vector<8x8xf32>
    %cst_37 = arith.constant dense<0xFF800000> : vector<8xf32>
    %47 = vector.multi_reduction <maximumf>, %46, %cst_37 [1] : vector<8x8xf32> to vector<8xf32>
    %48 = vector.shape_cast %47 : vector<8xf32> to vector<8x1xf32>
    %49 = vector.broadcast %48 : vector<8x1xf32> to vector<8x8xf32>
    %50 = arith.subf %46, %49 : vector<8x8xf32>
    %51 = math.exp %50 : vector<8x8xf32>
    %cst_38 = arith.constant dense<0.000000e+00> : vector<8xf32>
    %52 = vector.multi_reduction <add>, %51, %cst_38 [1] : vector<8x8xf32> to vector<8xf32>
    %53 = vector.shape_cast %52 : vector<8xf32> to vector<8x1xf32>
    %54 = arith.truncf %51 : vector<8x8xf32> to vector<8x8xbf16>
    %55 = vector.extract_strided_slice %25 {offsets = [0, 1152], sizes = [8, 128], strides = [1, 1]} : vector<8x1536xbf16> to vector<8x128xbf16>
    %cst_39 = arith.constant dense<0.000000e+00> : vector<8x128xf32>
    %56 = tpu.matmul %54, %55, %cst_39 {dimension_numbers = #tpu.dot_dimension_numbers<[1], [0], [0], [1], [0, 0, 1, 1], [], []>} : vector<8x8xbf16>, vector<8x128xbf16>, vector<8x128xf32> -> vector<8x128xf32>
    %57 = tpu.reciprocal %53 : vector<8x1xf32> -> vector<8x1xf32>
    %58 = vector.broadcast %57 : vector<8x1xf32> to vector<8x128xf32>
    %59 = arith.mulf %56, %58 : vector<8x128xf32>
    %60 = arith.truncf %59 : vector<8x128xf32> to vector<8x128xbf16>
    %c0_40 = arith.constant 0 : index
    %c128 = arith.constant 128 : index
    %61 = vector.load %arg17[%c0_40, %c128] : memref<8x512xbf16, #tpu.memory_space<vmem>>, vector<8x128xbf16>
    tpu.vector_store %arg17[%c0_40, %c128], %60 {strides = array<i32>} : memref<8x512xbf16, #tpu.memory_space<vmem>>, vector<8x128xbf16>,
    %62 = vector.extract_strided_slice %20 {offsets = [0, 256], sizes = [8, 128], strides = [1, 1]} : vector<8x1536xbf16> to vector<8x128xbf16>
    %63 = vector.extract_strided_slice %25 {offsets = [0, 768], sizes = [8, 128], strides = [1, 1]} : vector<8x1536xbf16> to vector<8x128xbf16>
    %cst_41 = arith.constant dense<0.000000e+00> : vector<8x8xf32>
    %64 = tpu.matmul %62, %63, %cst_41 {dimension_numbers = #tpu.dot_dimension_numbers<[1], [1], [0], [0], [0, 0, 1, 0], [], []>} : vector<8x128xbf16>, vector<8x128xbf16>, vector<8x8xf32> -> vector<8x8xf32>
    %cst_42 = arith.constant dense<0xFF800000> : vector<8xf32>
    %65 = vector.multi_reduction <maximumf>, %64, %cst_42 [1] : vector<8x8xf32> to vector<8xf32>
    %66 = vector.shape_cast %65 : vector<8xf32> to vector<8x1xf32>
    %67 = vector.broadcast %66 : vector<8x1xf32> to vector<8x8xf32>
    %68 = arith.subf %64, %67 : vector<8x8xf32>
    %69 = math.exp %68 : vector<8x8xf32>
    %cst_43 = arith.constant dense<0.000000e+00> : vector<8xf32>
    %70 = vector.multi_reduction <add>, %69, %cst_43 [1] : vector<8x8xf32> to vector<8xf32>
    %71 = vector.shape_cast %70 : vector<8xf32> to vector<8x1xf32>
    %72 = arith.truncf %69 : vector<8x8xf32> to vector<8x8xbf16>
    %73 = vector.extract_strided_slice %25 {offsets = [0, 1280], sizes = [8, 128], strides = [1, 1]} : vector<8x1536xbf16> to vector<8x128xbf16>
    %cst_44 = arith.constant dense<0.000000e+00> : vector<8x128xf32>
    %74 = tpu.matmul %72, %73, %cst_44 {dimension_numbers = #tpu.dot_dimension_numbers<[1], [0], [0], [1], [0, 0, 1, 1], [], []>} : vector<8x8xbf16>, vector<8x128xbf16>, vector<8x128xf32> -> vector<8x128xf32>
    %75 = tpu.reciprocal %71 : vector<8x1xf32> -> vector<8x1xf32>
    %76 = vector.broadcast %75 : vector<8x1xf32> to vector<8x128xf32>
    %77 = arith.mulf %74, %76 : vector<8x128xf32>
    %78 = arith.truncf %77 : vector<8x128xf32> to vector<8x128xbf16>
    %c0_45 = arith.constant 0 : index
    %c256 = arith.constant 256 : index
    %79 = vector.load %arg17[%c0_45, %c256] : memref<8x512xbf16, #tpu.memory_space<vmem>>, vector<8x128xbf16>
    tpu.vector_store %arg17[%c0_45, %c256], %78 {strides = array<i32>} : memref<8x512xbf16, #tpu.memory_space<vmem>>, vector<8x128xbf16>,
    %80 = vector.extract_strided_slice %20 {offsets = [0, 384], sizes = [8, 128], strides = [1, 1]} : vector<8x1536xbf16> to vector<8x128xbf16>
    %81 = vector.extract_strided_slice %25 {offsets = [0, 896], sizes = [8, 128], strides = [1, 1]} : vector<8x1536xbf16> to vector<8x128xbf16>
    %cst_46 = arith.constant dense<0.000000e+00> : vector<8x8xf32>
    %82 = tpu.matmul %80, %81, %cst_46 {dimension_numbers = #tpu.dot_dimension_numbers<[1], [1], [0], [0], [0, 0, 1, 0], [], []>} : vector<8x128xbf16>, vector<8x128xbf16>, vector<8x8xf32> -> vector<8x8xf32>
    %cst_47 = arith.constant dense<0xFF800000> : vector<8xf32>
    %83 = vector.multi_reduction <maximumf>, %82, %cst_47 [1] : vector<8x8xf32> to vector<8xf32>
    %84 = vector.shape_cast %83 : vector<8xf32> to vector<8x1xf32>
    %85 = vector.broadcast %84 : vector<8x1xf32> to vector<8x8xf32>
    %86 = arith.subf %82, %85 : vector<8x8xf32>
    %87 = math.exp %86 : vector<8x8xf32>
    %cst_48 = arith.constant dense<0.000000e+00> : vector<8xf32>
    %88 = vector.multi_reduction <add>, %87, %cst_48 [1] : vector<8x8xf32> to vector<8xf32>
    %89 = vector.shape_cast %88 : vector<8xf32> to vector<8x1xf32>
    %90 = arith.truncf %87 : vector<8x8xf32> to vector<8x8xbf16>
    %91 = vector.extract_strided_slice %25 {offsets = [0, 1408], sizes = [8, 128], strides = [1, 1]} : vector<8x1536xbf16> to vector<8x128xbf16>
    %cst_49 = arith.constant dense<0.000000e+00> : vector<8x128xf32>
    %92 = tpu.matmul %90, %91, %cst_49 {dimension_numbers = #tpu.dot_dimension_numbers<[1], [0], [0], [1], [0, 0, 1, 1], [], []>} : vector<8x8xbf16>, vector<8x128xbf16>, vector<8x128xf32> -> vector<8x128xf32>
    %93 = tpu.reciprocal %89 : vector<8x1xf32> -> vector<8x1xf32>
    %94 = vector.broadcast %93 : vector<8x1xf32> to vector<8x128xf32>
    %95 = arith.mulf %92, %94 : vector<8x128xf32>
    %96 = arith.truncf %95 : vector<8x128xf32> to vector<8x128xbf16>
    %c0_50 = arith.constant 0 : index
    %c384 = arith.constant 384 : index
    %97 = vector.load %arg17[%c0_50, %c384] : memref<8x512xbf16, #tpu.memory_space<vmem>>, vector<8x128xbf16>
    tpu.vector_store %arg17[%c0_50, %c384], %96 {strides = array<i32>} : memref<8x512xbf16, #tpu.memory_space<vmem>>, vector<8x128xbf16>,
    %98 = vector.extract_strided_slice %25 {offsets = [0, 0], sizes = [8, 128], strides = [1, 1]} : vector<8x1536xbf16> to vector<8x128xbf16>
    %99 = vector.extract_strided_slice %20 {offsets = [0, 512], sizes = [8, 128], strides = [1, 1]} : vector<8x1536xbf16> to vector<8x128xbf16>
    %cst_51 = arith.constant dense<0.000000e+00> : vector<8x8xf32>
    %100 = tpu.matmul %98, %99, %cst_51 {dimension_numbers = #tpu.dot_dimension_numbers<[1], [1], [0], [0], [0, 0, 1, 0], [], []>} : vector<8x128xbf16>, vector<8x128xbf16>, vector<8x8xf32> -> vector<8x8xf32>
    %cst_52 = arith.constant dense<0xFF800000> : vector<8xf32>
    %101 = vector.multi_reduction <maximumf>, %100, %cst_52 [1] : vector<8x8xf32> to vector<8xf32>
    %102 = vector.shape_cast %101 : vector<8xf32> to vector<8x1xf32>
    %103 = vector.broadcast %102 : vector<8x1xf32> to vector<8x8xf32>
    %104 = arith.subf %100, %103 : vector<8x8xf32>
    %105 = math.exp %104 : vector<8x8xf32>
    %cst_53 = arith.constant dense<0.000000e+00> : vector<8xf32>
    %106 = vector.multi_reduction <add>, %105, %cst_53 [1] : vector<8x8xf32> to vector<8xf32>
    %107 = vector.shape_cast %106 : vector<8xf32> to vector<8x1xf32>
    %108 = arith.truncf %105 : vector<8x8xf32> to vector<8x8xbf16>
    %109 = vector.extract_strided_slice %20 {offsets = [0, 1024], sizes = [8, 128], strides = [1, 1]} : vector<8x1536xbf16> to vector<8x128xbf16>
    %cst_54 = arith.constant dense<0.000000e+00> : vector<8x128xf32>
    %110 = tpu.matmul %108, %109, %cst_54 {dimension_numbers = #tpu.dot_dimension_numbers<[1], [0], [0], [1], [0, 0, 1, 1], [], []>} : vector<8x8xbf16>, vector<8x128xbf16>, vector<8x128xf32> -> vector<8x128xf32>
    %111 = tpu.reciprocal %107 : vector<8x1xf32> -> vector<8x1xf32>
    %112 = vector.broadcast %111 : vector<8x1xf32> to vector<8x128xf32>
    %113 = arith.mulf %110, %112 : vector<8x128xf32>
    %114 = arith.truncf %113 : vector<8x128xf32> to vector<8x128xbf16>
    %c0_55 = arith.constant 0 : index
    %c0_56 = arith.constant 0 : index
    %115 = vector.load %arg18[%c0_55, %c0_56] : memref<8x512xbf16, #tpu.memory_space<vmem>>, vector<8x128xbf16>
    tpu.vector_store %arg18[%c0_55, %c0_56], %114 {strides = array<i32>} : memref<8x512xbf16, #tpu.memory_space<vmem>>, vector<8x128xbf16>,
    %116 = vector.extract_strided_slice %25 {offsets = [0, 128], sizes = [8, 128], strides = [1, 1]} : vector<8x1536xbf16> to vector<8x128xbf16>
    %117 = vector.extract_strided_slice %20 {offsets = [0, 640], sizes = [8, 128], strides = [1, 1]} : vector<8x1536xbf16> to vector<8x128xbf16>
    %cst_57 = arith.constant dense<0.000000e+00> : vector<8x8xf32>
    %118 = tpu.matmul %116, %117, %cst_57 {dimension_numbers = #tpu.dot_dimension_numbers<[1], [1], [0], [0], [0, 0, 1, 0], [], []>} : vector<8x128xbf16>, vector<8x128xbf16>, vector<8x8xf32> -> vector<8x8xf32>
    %cst_58 = arith.constant dense<0xFF800000> : vector<8xf32>
    %119 = vector.multi_reduction <maximumf>, %118, %cst_58 [1] : vector<8x8xf32> to vector<8xf32>
    %120 = vector.shape_cast %119 : vector<8xf32> to vector<8x1xf32>
    %121 = vector.broadcast %120 : vector<8x1xf32> to vector<8x8xf32>
    %122 = arith.subf %118, %121 : vector<8x8xf32>
    %123 = math.exp %122 : vector<8x8xf32>
    %cst_59 = arith.constant dense<0.000000e+00> : vector<8xf32>
    %124 = vector.multi_reduction <add>, %123, %cst_59 [1] : vector<8x8xf32> to vector<8xf32>
    %125 = vector.shape_cast %124 : vector<8xf32> to vector<8x1xf32>
    %126 = arith.truncf %123 : vector<8x8xf32> to vector<8x8xbf16>
    %127 = vector.extract_strided_slice %20 {offsets = [0, 1152], sizes = [8, 128], strides = [1, 1]} : vector<8x1536xbf16> to vector<8x128xbf16>
    %cst_60 = arith.constant dense<0.000000e+00> : vector<8x128xf32>
    %128 = tpu.matmul %126, %127, %cst_60 {dimension_numbers = #tpu.dot_dimension_numbers<[1], [0], [0], [1], [0, 0, 1, 1], [], []>} : vector<8x8xbf16>, vector<8x128xbf16>, vector<8x128xf32> -> vector<8x128xf32>
    %129 = tpu.reciprocal %125 : vector<8x1xf32> -> vector<8x1xf32>
    %130 = vector.broadcast %129 : vector<8x1xf32> to vector<8x128xf32>
    %131 = arith.mulf %128, %130 : vector<8x128xf32>
    %132 = arith.truncf %131 : vector<8x128xf32> to vector<8x128xbf16>
    %c0_61 = arith.constant 0 : index
    %c128_62 = arith.constant 128 : index
    %133 = vector.load %arg18[%c0_61, %c128_62] : memref<8x512xbf16, #tpu.memory_space<vmem>>, vector<8x128xbf16>
    tpu.vector_store %arg18[%c0_61, %c128_62], %132 {strides = array<i32>} : memref<8x512xbf16, #tpu.memory_space<vmem>>, vector<8x128xbf16>,
    %134 = vector.extract_strided_slice %25 {offsets = [0, 256], sizes = [8, 128], strides = [1, 1]} : vector<8x1536xbf16> to vector<8x128xbf16>
    %135 = vector.extract_strided_slice %20 {offsets = [0, 768], sizes = [8, 128], strides = [1, 1]} : vector<8x1536xbf16> to vector<8x128xbf16>
    %cst_63 = arith.constant dense<0.000000e+00> : vector<8x8xf32>
    %136 = tpu.matmul %134, %135, %cst_63 {dimension_numbers = #tpu.dot_dimension_numbers<[1], [1], [0], [0], [0, 0, 1, 0], [], []>} : vector<8x128xbf16>, vector<8x128xbf16>, vector<8x8xf32> -> vector<8x8xf32>
    %cst_64 = arith.constant dense<0xFF800000> : vector<8xf32>
    %137 = vector.multi_reduction <maximumf>, %136, %cst_64 [1] : vector<8x8xf32> to vector<8xf32>
    %138 = vector.shape_cast %137 : vector<8xf32> to vector<8x1xf32>
    %139 = vector.broadcast %138 : vector<8x1xf32> to vector<8x8xf32>
    %140 = arith.subf %136, %139 : vector<8x8xf32>
    %141 = math.exp %140 : vector<8x8xf32>
    %cst_65 = arith.constant dense<0.000000e+00> : vector<8xf32>
    %142 = vector.multi_reduction <add>, %141, %cst_65 [1] : vector<8x8xf32> to vector<8xf32>
    %143 = vector.shape_cast %142 : vector<8xf32> to vector<8x1xf32>
    %144 = arith.truncf %141 : vector<8x8xf32> to vector<8x8xbf16>
    %145 = vector.extract_strided_slice %20 {offsets = [0, 1280], sizes = [8, 128], strides = [1, 1]} : vector<8x1536xbf16> to vector<8x128xbf16>
    %cst_66 = arith.constant dense<0.000000e+00> : vector<8x128xf32>
    %146 = tpu.matmul %144, %145, %cst_66 {dimension_numbers = #tpu.dot_dimension_numbers<[1], [0], [0], [1], [0, 0, 1, 1], [], []>} : vector<8x8xbf16>, vector<8x128xbf16>, vector<8x128xf32> -> vector<8x128xf32>
    %147 = tpu.reciprocal %143 : vector<8x1xf32> -> vector<8x1xf32>
    %148 = vector.broadcast %147 : vector<8x1xf32> to vector<8x128xf32>
    %149 = arith.mulf %146, %148 : vector<8x128xf32>
    %150 = arith.truncf %149 : vector<8x128xf32> to vector<8x128xbf16>
    %c0_67 = arith.constant 0 : index
    %c256_68 = arith.constant 256 : index
    %151 = vector.load %arg18[%c0_67, %c256_68] : memref<8x512xbf16, #tpu.memory_space<vmem>>, vector<8x128xbf16>
    tpu.vector_store %arg18[%c0_67, %c256_68], %150 {strides = array<i32>} : memref<8x512xbf16, #tpu.memory_space<vmem>>, vector<8x128xbf16>,
    %152 = vector.extract_strided_slice %25 {offsets = [0, 384], sizes = [8, 128], strides = [1, 1]} : vector<8x1536xbf16> to vector<8x128xbf16>
    %153 = vector.extract_strided_slice %20 {offsets = [0, 896], sizes = [8, 128], strides = [1, 1]} : vector<8x1536xbf16> to vector<8x128xbf16>
    %cst_69 = arith.constant dense<0.000000e+00> : vector<8x8xf32>
    %154 = tpu.matmul %152, %153, %cst_69 {dimension_numbers = #tpu.dot_dimension_numbers<[1], [1], [0], [0], [0, 0, 1, 0], [], []>} : vector<8x128xbf16>, vector<8x128xbf16>, vector<8x8xf32> -> vector<8x8xf32>
    %cst_70 = arith.constant dense<0xFF800000> : vector<8xf32>
    %155 = vector.multi_reduction <maximumf>, %154, %cst_70 [1] : vector<8x8xf32> to vector<8xf32>
    %156 = vector.shape_cast %155 : vector<8xf32> to vector<8x1xf32>
    %157 = vector.broadcast %156 : vector<8x1xf32> to vector<8x8xf32>
    %158 = arith.subf %154, %157 : vector<8x8xf32>
    %159 = math.exp %158 : vector<8x8xf32>
    %cst_71 = arith.constant dense<0.000000e+00> : vector<8xf32>
    %160 = vector.multi_reduction <add>, %159, %cst_71 [1] : vector<8x8xf32> to vector<8xf32>
    %161 = vector.shape_cast %160 : vector<8xf32> to vector<8x1xf32>
    %162 = arith.truncf %159 : vector<8x8xf32> to vector<8x8xbf16>
    %163 = vector.extract_strided_slice %20 {offsets = [0, 1408], sizes = [8, 128], strides = [1, 1]} : vector<8x1536xbf16> to vector<8x128xbf16>
    %cst_72 = arith.constant dense<0.000000e+00> : vector<8x128xf32>
    %164 = tpu.matmul %162, %163, %cst_72 {dimension_numbers = #tpu.dot_dimension_numbers<[1], [0], [0], [1], [0, 0, 1, 1], [], []>} : vector<8x8xbf16>, vector<8x128xbf16>, vector<8x128xf32> -> vector<8x128xf32>
    %165 = tpu.reciprocal %161 : vector<8x1xf32> -> vector<8x1xf32>
    %166 = vector.broadcast %165 : vector<8x1xf32> to vector<8x128xf32>
    %167 = arith.mulf %164, %166 : vector<8x128xf32>
    %168 = arith.truncf %167 : vector<8x128xf32> to vector<8x128xbf16>
    %c0_73 = arith.constant 0 : index
    %c384_74 = arith.constant 384 : index
    %169 = vector.load %arg18[%c0_73, %c384_74] : memref<8x512xbf16, #tpu.memory_space<vmem>>, vector<8x128xbf16>
    tpu.vector_store %arg18[%c0_73, %c384_74], %168 {strides = array<i32>} : memref<8x512xbf16, #tpu.memory_space<vmem>>, vector<8x128xbf16>,
    %c0_75 = arith.constant 0 : index
    %c0_76 = arith.constant 0 : index
    %170 = vector.load %arg17[%c0_75, %c0_76] : memref<8x512xbf16, #tpu.memory_space<vmem>>, vector<8x512xbf16>
    %c0_77 = arith.constant 0 : index
    %c0_78 = arith.constant 0 : index
    %171 = vector.load %arg18[%c0_77, %c0_78] : memref<8x512xbf16, #tpu.memory_space<vmem>>, vector<8x512xbf16>
    %cst_79 = arith.constant dense<0.000000e+00> : vector<8x32xf32>
    %172 = tpu.matmul %170, %6, %cst_79 {dimension_numbers = #tpu.dot_dimension_numbers<[1], [0], [0], [1], [0, 0, 1, 1], [], []>} : vector<8x512xbf16>, vector<512x32xbf16>, vector<8x32xf32> -> vector<8x32xf32>
    %173 = vector.broadcast %7 : vector<1x32xf32> to vector<8x32xf32>
    %174 = arith.addf %172, %173 : vector<8x32xf32>
    %175 = arith.addf %174, %1 : vector<8x32xf32>
    %cst_80 = arith.constant dense<0.000000e+00> : vector<8xf32>
    %176 = vector.multi_reduction <add>, %175, %cst_80 [1] : vector<8x32xf32> to vector<8xf32>
    %177 = vector.shape_cast %176 : vector<8xf32> to vector<8x1xf32>
    %cst_81 = arith.constant 3.200000e+01 : f32
    %178 = vector.broadcast %cst_81 : f32 to vector<8x1xf32>
    %179 = arith.divf %177, %178 : vector<8x1xf32>
    %180 = vector.broadcast %179 : vector<8x1xf32> to vector<8x32xf32>
    %181 = arith.subf %175, %180 : vector<8x32xf32>
    %182 = arith.mulf %181, %181 : vector<8x32xf32>
    %cst_82 = arith.constant dense<0.000000e+00> : vector<8xf32>
    %183 = vector.multi_reduction <add>, %182, %cst_82 [1] : vector<8x32xf32> to vector<8xf32>
    %184 = vector.shape_cast %183 : vector<8xf32> to vector<8x1xf32>
    %cst_83 = arith.constant 3.200000e+01 : f32
    %185 = vector.broadcast %cst_83 : f32 to vector<8x1xf32>
    %186 = arith.divf %184, %185 : vector<8x1xf32>
    %cst_84 = arith.constant 9.99999974E-6 : f32
    %187 = vector.broadcast %cst_84 : f32 to vector<8x1xf32>
    %188 = arith.addf %186, %187 : vector<8x1xf32>
    %189 = math.rsqrt %188 : vector<8x1xf32>
    %190 = vector.broadcast %189 : vector<8x1xf32> to vector<8x32xf32>
    %191 = arith.mulf %181, %190 : vector<8x32xf32>
    %192 = vector.broadcast %8 : vector<1x32xf32> to vector<8x32xf32>
    %193 = arith.mulf %191, %192 : vector<8x32xf32>
    %194 = vector.broadcast %9 : vector<1x32xf32> to vector<8x32xf32>
    %195 = arith.addf %193, %194 : vector<8x32xf32>
    %cst_85 = arith.constant dense<0.000000e+00> : vector<8x32xf32>
    %196 = tpu.matmul %171, %6, %cst_85 {dimension_numbers = #tpu.dot_dimension_numbers<[1], [0], [0], [1], [0, 0, 1, 1], [], []>} : vector<8x512xbf16>, vector<512x32xbf16>, vector<8x32xf32> -> vector<8x32xf32>
    %197 = vector.broadcast %7 : vector<1x32xf32> to vector<8x32xf32>
    %198 = arith.addf %196, %197 : vector<8x32xf32>
    %199 = arith.addf %198, %3 : vector<8x32xf32>
    %cst_86 = arith.constant dense<0.000000e+00> : vector<8xf32>
    %200 = vector.multi_reduction <add>, %199, %cst_86 [1] : vector<8x32xf32> to vector<8xf32>
    %201 = vector.shape_cast %200 : vector<8xf32> to vector<8x1xf32>
    %cst_87 = arith.constant 3.200000e+01 : f32
    %202 = vector.broadcast %cst_87 : f32 to vector<8x1xf32>
    %203 = arith.divf %201, %202 : vector<8x1xf32>
    %204 = vector.broadcast %203 : vector<8x1xf32> to vector<8x32xf32>
    %205 = arith.subf %199, %204 : vector<8x32xf32>
    %206 = arith.mulf %205, %205 : vector<8x32xf32>
    %cst_88 = arith.constant dense<0.000000e+00> : vector<8xf32>
    %207 = vector.multi_reduction <add>, %206, %cst_88 [1] : vector<8x32xf32> to vector<8xf32>
    %208 = vector.shape_cast %207 : vector<8xf32> to vector<8x1xf32>
    %cst_89 = arith.constant 3.200000e+01 : f32
    %209 = vector.broadcast %cst_89 : f32 to vector<8x1xf32>
    %210 = arith.divf %208, %209 : vector<8x1xf32>
    %cst_90 = arith.constant 9.99999974E-6 : f32
    %211 = vector.broadcast %cst_90 : f32 to vector<8x1xf32>
    %212 = arith.addf %210, %211 : vector<8x1xf32>
    %213 = math.rsqrt %212 : vector<8x1xf32>
    %214 = vector.broadcast %213 : vector<8x1xf32> to vector<8x32xf32>
    %215 = arith.mulf %205, %214 : vector<8x32xf32>
    %216 = vector.broadcast %8 : vector<1x32xf32> to vector<8x32xf32>
    %217 = arith.mulf %215, %216 : vector<8x32xf32>
    %218 = vector.broadcast %9 : vector<1x32xf32> to vector<8x32xf32>
    %219 = arith.addf %217, %218 : vector<8x32xf32>
    %cst_91 = arith.constant dense<0.000000e+00> : vector<8xf32>
    %220 = vector.multi_reduction <add>, %1, %cst_91 [1] : vector<8x32xf32> to vector<8xf32>
    %221 = vector.shape_cast %220 : vector<8xf32> to vector<8x1xf32>
    %cst_92 = arith.constant 3.200000e+01 : f32
    %222 = vector.broadcast %cst_92 : f32 to vector<8x1xf32>
    %223 = arith.divf %221, %222 : vector<8x1xf32>
    %224 = vector.broadcast %223 : vector<8x1xf32> to vector<8x32xf32>
    %225 = arith.subf %1, %224 : vector<8x32xf32>
    %226 = arith.mulf %225, %225 : vector<8x32xf32>
    %cst_93 = arith.constant dense<0.000000e+00> : vector<8xf32>
    %227 = vector.multi_reduction <add>, %226, %cst_93 [1] : vector<8x32xf32> to vector<8xf32>
    %228 = vector.shape_cast %227 : vector<8xf32> to vector<8x1xf32>
    %cst_94 = arith.constant 3.200000e+01 : f32
    %229 = vector.broadcast %cst_94 : f32 to vector<8x1xf32>
    %230 = arith.divf %228, %229 : vector<8x1xf32>
    %cst_95 = arith.constant 9.99999974E-6 : f32
    %231 = vector.broadcast %cst_95 : f32 to vector<8x1xf32>
    %232 = arith.addf %230, %231 : vector<8x1xf32>
    %233 = math.rsqrt %232 : vector<8x1xf32>
    %234 = vector.broadcast %233 : vector<8x1xf32> to vector<8x32xf32>
    %235 = arith.mulf %225, %234 : vector<8x32xf32>
    %236 = vector.broadcast %10 : vector<1x32xf32> to vector<8x32xf32>
    %237 = arith.mulf %235, %236 : vector<8x32xf32>
    %238 = vector.broadcast %11 : vector<1x32xf32> to vector<8x32xf32>
    %239 = arith.addf %237, %238 : vector<8x32xf32>
    %240 = arith.addf %239, %195 : vector<8x32xf32>
    %cst_96 = arith.constant dense<0.000000e+00> : vector<8xf32>
    %241 = vector.multi_reduction <add>, %240, %cst_96 [1] : vector<8x32xf32> to vector<8xf32>
    %242 = vector.shape_cast %241 : vector<8xf32> to vector<8x1xf32>
    %cst_97 = arith.constant 3.200000e+01 : f32
    %243 = vector.broadcast %cst_97 : f32 to vector<8x1xf32>
    %244 = arith.divf %242, %243 : vector<8x1xf32>
    %245 = vector.broadcast %244 : vector<8x1xf32> to vector<8x32xf32>
    %246 = arith.subf %240, %245 : vector<8x32xf32>
    %247 = arith.mulf %246, %246 : vector<8x32xf32>
    %cst_98 = arith.constant dense<0.000000e+00> : vector<8xf32>
    %248 = vector.multi_reduction <add>, %247, %cst_98 [1] : vector<8x32xf32> to vector<8xf32>
    %249 = vector.shape_cast %248 : vector<8xf32> to vector<8x1xf32>
    %cst_99 = arith.constant 3.200000e+01 : f32
    %250 = vector.broadcast %cst_99 : f32 to vector<8x1xf32>
    %251 = arith.divf %249, %250 : vector<8x1xf32>
    %cst_100 = arith.constant 9.99999974E-6 : f32
    %252 = vector.broadcast %cst_100 : f32 to vector<8x1xf32>
    %253 = arith.addf %251, %252 : vector<8x1xf32>
    %254 = math.rsqrt %253 : vector<8x1xf32>
    %255 = vector.broadcast %254 : vector<8x1xf32> to vector<8x32xf32>
    %256 = arith.mulf %246, %255 : vector<8x32xf32>
    %257 = vector.broadcast %10 : vector<1x32xf32> to vector<8x32xf32>
    %258 = arith.mulf %256, %257 : vector<8x32xf32>
    %259 = vector.broadcast %11 : vector<1x32xf32> to vector<8x32xf32>
    %260 = arith.addf %258, %259 : vector<8x32xf32>
    %261 = arith.truncf %260 : vector<8x32xf32> to vector<8x32xbf16>
    %cst_101 = arith.constant dense<0.000000e+00> : vector<8x64xf32>
    %262 = tpu.matmul %261, %12, %cst_101 {dimension_numbers = #tpu.dot_dimension_numbers<[1], [0], [0], [1], [0, 0, 1, 1], [], []>} : vector<8x32xbf16>, vector<32x64xbf16>, vector<8x64xf32> -> vector<8x64xf32>
    %263 = vector.broadcast %13 : vector<1x64xf32> to vector<8x64xf32>
    %264 = arith.addf %262, %263 : vector<8x64xf32>
    %cst_102 = arith.constant 0.000000e+00 : f32
    %265 = vector.broadcast %cst_102 : f32 to vector<8x64xf32>
    %266 = arith.maximumf %264, %265 : vector<8x64xf32>
    %267 = arith.truncf %266 : vector<8x64xf32> to vector<8x64xbf16>
    %cst_103 = arith.constant dense<0.000000e+00> : vector<8x32xf32>
    %268 = tpu.matmul %267, %14, %cst_103 {dimension_numbers = #tpu.dot_dimension_numbers<[1], [0], [0], [1], [0, 0, 1, 1], [], []>} : vector<8x64xbf16>, vector<64x32xbf16>, vector<8x32xf32> -> vector<8x32xf32>
    %269 = vector.broadcast %15 : vector<1x32xf32> to vector<8x32xf32>
    %270 = arith.addf %268, %269 : vector<8x32xf32>
    %271 = arith.addf %240, %270 : vector<8x32xf32>
    %272 = vector.shape_cast %271 : vector<8x32xf32> to vector<1x8x32xf32>
    %c0_104 = arith.constant 0 : index
    %c0_105 = arith.constant 0 : index
    %c0_106 = arith.constant 0 : index
    %273 = vector.load %arg15[%c0_104, %c0_105, %c0_106] : memref<1x8x32xf32, #tpu.memory_space<vmem>>, vector<1x8x32xf32>
    tpu.vector_store %arg15[%c0_104, %c0_105, %c0_106], %272 {strides = array<i32>} : memref<1x8x32xf32, #tpu.memory_space<vmem>>, vector<1x8x32xf32>,
    %cst_107 = arith.constant dense<0.000000e+00> : vector<8xf32>
    %274 = vector.multi_reduction <add>, %3, %cst_107 [1] : vector<8x32xf32> to vector<8xf32>
    %275 = vector.shape_cast %274 : vector<8xf32> to vector<8x1xf32>
    %cst_108 = arith.constant 3.200000e+01 : f32
    %276 = vector.broadcast %cst_108 : f32 to vector<8x1xf32>
    %277 = arith.divf %275, %276 : vector<8x1xf32>
    %278 = vector.broadcast %277 : vector<8x1xf32> to vector<8x32xf32>
    %279 = arith.subf %3, %278 : vector<8x32xf32>
    %280 = arith.mulf %279, %279 : vector<8x32xf32>
    %cst_109 = arith.constant dense<0.000000e+00> : vector<8xf32>
    %281 = vector.multi_reduction <add>, %280, %cst_109 [1] : vector<8x32xf32> to vector<8xf32>
    %282 = vector.shape_cast %281 : vector<8xf32> to vector<8x1xf32>
    %cst_110 = arith.constant 3.200000e+01 : f32
    %283 = vector.broadcast %cst_110 : f32 to vector<8x1xf32>
    %284 = arith.divf %282, %283 : vector<8x1xf32>
    %cst_111 = arith.constant 9.99999974E-6 : f32
    %285 = vector.broadcast %cst_111 : f32 to vector<8x1xf32>
    %286 = arith.addf %284, %285 : vector<8x1xf32>
    %287 = math.rsqrt %286 : vector<8x1xf32>
    %288 = vector.broadcast %287 : vector<8x1xf32> to vector<8x32xf32>
    %289 = arith.mulf %279, %288 : vector<8x32xf32>
    %290 = vector.broadcast %10 : vector<1x32xf32> to vector<8x32xf32>
    %291 = arith.mulf %289, %290 : vector<8x32xf32>
    %292 = vector.broadcast %11 : vector<1x32xf32> to vector<8x32xf32>
    %293 = arith.addf %291, %292 : vector<8x32xf32>
    %294 = arith.addf %293, %219 : vector<8x32xf32>
    %cst_112 = arith.constant dense<0.000000e+00> : vector<8xf32>
    %295 = vector.multi_reduction <add>, %294, %cst_112 [1] : vector<8x32xf32> to vector<8xf32>
    %296 = vector.shape_cast %295 : vector<8xf32> to vector<8x1xf32>
    %cst_113 = arith.constant 3.200000e+01 : f32
    %297 = vector.broadcast %cst_113 : f32 to vector<8x1xf32>
    %298 = arith.divf %296, %297 : vector<8x1xf32>
    %299 = vector.broadcast %298 : vector<8x1xf32> to vector<8x32xf32>
    %300 = arith.subf %294, %299 : vector<8x32xf32>
    %301 = arith.mulf %300, %300 : vector<8x32xf32>
    %cst_114 = arith.constant dense<0.000000e+00> : vector<8xf32>
    %302 = vector.multi_reduction <add>, %301, %cst_114 [1] : vector<8x32xf32> to vector<8xf32>
    %303 = vector.shape_cast %302 : vector<8xf32> to vector<8x1xf32>
    %cst_115 = arith.constant 3.200000e+01 : f32
    %304 = vector.broadcast %cst_115 : f32 to vector<8x1xf32>
    %305 = arith.divf %303, %304 : vector<8x1xf32>
    %cst_116 = arith.constant 9.99999974E-6 : f32
    %306 = vector.broadcast %cst_116 : f32 to vector<8x1xf32>
    %307 = arith.addf %305, %306 : vector<8x1xf32>
    %308 = math.rsqrt %307 : vector<8x1xf32>
    %309 = vector.broadcast %308 : vector<8x1xf32> to vector<8x32xf32>
    %310 = arith.mulf %300, %309 : vector<8x32xf32>
    %311 = vector.broadcast %10 : vector<1x32xf32> to vector<8x32xf32>
    %312 = arith.mulf %310, %311 : vector<8x32xf32>
    %313 = vector.broadcast %11 : vector<1x32xf32> to vector<8x32xf32>
    %314 = arith.addf %312, %313 : vector<8x32xf32>
    %315 = arith.truncf %314 : vector<8x32xf32> to vector<8x32xbf16>
    %cst_117 = arith.constant dense<0.000000e+00> : vector<8x64xf32>
    %316 = tpu.matmul %315, %12, %cst_117 {dimension_numbers = #tpu.dot_dimension_numbers<[1], [0], [0], [1], [0, 0, 1, 1], [], []>} : vector<8x32xbf16>, vector<32x64xbf16>, vector<8x64xf32> -> vector<8x64xf32>
    %317 = vector.broadcast %13 : vector<1x64xf32> to vector<8x64xf32>
    %318 = arith.addf %316, %317 : vector<8x64xf32>
    %cst_118 = arith.constant 0.000000e+00 : f32
    %319 = vector.broadcast %cst_118 : f32 to vector<8x64xf32>
    %320 = arith.maximumf %318, %319 : vector<8x64xf32>
    %321 = arith.truncf %320 : vector<8x64xf32> to vector<8x64xbf16>
    %cst_119 = arith.constant dense<0.000000e+00> : vector<8x32xf32>
    %322 = tpu.matmul %321, %14, %cst_119 {dimension_numbers = #tpu.dot_dimension_numbers<[1], [0], [0], [1], [0, 0, 1, 1], [], []>} : vector<8x64xbf16>, vector<64x32xbf16>, vector<8x32xf32> -> vector<8x32xf32>
    %323 = vector.broadcast %15 : vector<1x32xf32> to vector<8x32xf32>
    %324 = arith.addf %322, %323 : vector<8x32xf32>
    %325 = arith.addf %294, %324 : vector<8x32xf32>
    %326 = vector.shape_cast %325 : vector<8x32xf32> to vector<1x8x32xf32>
    %c0_120 = arith.constant 0 : index
    %c0_121 = arith.constant 0 : index
    %c0_122 = arith.constant 0 : index
    %327 = vector.load %arg16[%c0_120, %c0_121, %c0_122] : memref<1x8x32xf32, #tpu.memory_space<vmem>>, vector<1x8x32xf32>
    tpu.vector_store %arg16[%c0_120, %c0_121, %c0_122], %326 {strides = array<i32>} : memref<1x8x32xf32, #tpu.memory_space<vmem>>, vector<1x8x32xf32>,
    return
  }
  func.func @transform_0(%arg0: i32) -> (i32, i32, i32) {
    %c0_i32 = arith.constant 0 : i32
    %c0_i32_0 = arith.constant 0 : i32
    %c0_i32_1 = arith.constant 0 : i32
    return %arg0, %c0_i32, %c0_i32_0 : i32, i32, i32
  }
  func.func @transform_1(%arg0: i32) -> (i32, i32, i32) {
    %c0_i32 = arith.constant 0 : i32
    %c0_i32_0 = arith.constant 0 : i32
    %c0_i32_1 = arith.constant 0 : i32
    return %arg0, %c0_i32, %c0_i32_0 : i32, i32, i32
  }
  func.func @transform_2(%arg0: i32) -> (i32, i32) {
    %c0_i32 = arith.constant 0 : i32
    %c0_i32_0 = arith.constant 0 : i32
    %c0_i32_1 = arith.constant 0 : i32
    return %c0_i32, %c0_i32_0 : i32, i32
  }
  func.func @transform_3(%arg0: i32) -> (i32, i32) {
    %c0_i32 = arith.constant 0 : i32
    %c0_i32_0 = arith.constant 0 : i32
    %c0_i32_1 = arith.constant 0 : i32
    return %c0_i32, %c0_i32_0 : i32, i32
  }
  func.func @transform_4(%arg0: i32) -> (i32, i32) {
    %c0_i32 = arith.constant 0 : i32
    %c0_i32_0 = arith.constant 0 : i32
    %c0_i32_1 = arith.constant 0 : i32
    return %c0_i32, %c0_i32_0 : i32, i32
  }
  func.func @transform_5(%arg0: i32) -> (i32, i32) {
    %c0_i32 = arith.constant 0 : i32
    %c0_i32_0 = arith.constant 0 : i32
    %c0_i32_1 = arith.constant 0 : i32
    return %c0_i32, %c0_i32_0 : i32, i32
  }
  func.func @transform_6(%arg0: i32) -> (i32, i32) {
    %c0_i32 = arith.constant 0 : i32
    %c0_i32_0 = arith.constant 0 : i32
    %c0_i32_1 = arith.constant 0 : i32
    return %c0_i32, %c0_i32_0 : i32, i32
  }
  func.func @transform_7(%arg0: i32) -> (i32, i32) {
    %c0_i32 = arith.constant 0 : i32
    %c0_i32_0 = arith.constant 0 : i32
    %c0_i32_1 = arith.constant 0 : i32
    return %c0_i32, %c0_i32_0 : i32, i32
  }
  func.func @transform_8(%arg0: i32) -> (i32, i32) {
    %c0_i32 = arith.constant 0 : i32
    %c0_i32_0 = arith.constant 0 : i32
    %c0_i32_1 = arith.constant 0 : i32
    return %c0_i32, %c0_i32_0 : i32, i32
  }
  func.func @transform_9(%arg0: i32) -> (i32, i32) {
    %c0_i32 = arith.constant 0 : i32
    %c0_i32_0 = arith.constant 0 : i32
    %c0_i32_1 = arith.constant 0 : i32
    return %c0_i32, %c0_i32_0 : i32, i32
  }
  func.func @transform_10(%arg0: i32) -> (i32, i32) {
    %c0_i32 = arith.constant 0 : i32
    %c0_i32_0 = arith.constant 0 : i32
    %c0_i32_1 = arith.constant 0 : i32
    return %c0_i32, %c0_i32_0 : i32, i32
  }
  func.func @transform_11(%arg0: i32) -> (i32, i32) {
    %c0_i32 = arith.constant 0 : i32
    %c0_i32_0 = arith.constant 0 : i32
    %c0_i32_1 = arith.constant 0 : i32
    return %c0_i32, %c0_i32_0 : i32, i32
  }
  func.func @transform_12(%arg0: i32) -> (i32, i32) {
    %c0_i32 = arith.constant 0 : i32
    %c0_i32_0 = arith.constant 0 : i32
    %c0_i32_1 = arith.constant 0 : i32
    return %c0_i32, %c0_i32_0 : i32, i32
  }
  func.func @transform_13(%arg0: i32) -> (i32, i32) {
    %c0_i32 = arith.constant 0 : i32
    %c0_i32_0 = arith.constant 0 : i32
    %c0_i32_1 = arith.constant 0 : i32
    return %c0_i32, %c0_i32_0 : i32, i32
  }
  func.func @transform_14(%arg0: i32) -> (i32, i32, i32) {
    %c0_i32 = arith.constant 0 : i32
    %c0_i32_0 = arith.constant 0 : i32
    %c0_i32_1 = arith.constant 0 : i32
    return %arg0, %c0_i32, %c0_i32_0 : i32, i32, i32
  }
  func.func @transform_15(%arg0: i32) -> (i32, i32, i32) {
    %c0_i32 = arith.constant 0 : i32
    %c0_i32_0 = arith.constant 0 : i32
    %c0_i32_1 = arith.constant 0 : i32
    return %arg0, %c0_i32, %c0_i32_0 : i32, i32, i32
  }
}

</mosaic_0001>

<bundles_post_ra>
// kernel: tpu_custom_call.1
= control target key start
LH: loop header
LB: loop body
LE: loop exit
PB: predicated region body
PF: predicated region fallthrough
CT: control target
= control target key end

     0   :  { %s4572_s0 = inlined_call_operand.vmem [shape: f32[2,8,32], index: 0, kind: input, shape index: {}]   ;;  %s4573_s1 = inlined_call_operand.vmem [shape: f32[2,8,32], index: 1, kind: input, shape index: {}]   ;;  %s4574_s2 = inlined_call_operand.vmem [shape: bf16[32,1536], index: 2, kind: input, shape index: {}]   ;;  %s4575_s3 = inlined_call_operand.vmem [shape: f32[1,1536], index: 3, kind: input, shape index: {}]   ;;  %s4576_s4 = inlined_call_operand.vmem [shape: bf16[512,32], index: 4, kind: input, shape index: {}]   ;;  %s4577_s5 = inlined_call_operand.vmem [shape: f32[1,32], index: 5, kind: input, shape index: {}]   ;;  %s4578_s6 = inlined_call_operand.vmem [shape: f32[1,32], index: 6, kind: input, shape index: {}]   ;;  %s4579_s7 = inlined_call_operand.vmem [shape: f32[1,32], index: 7, kind: input, shape index: {}]   ;;  %s4580_s8 = inlined_call_operand.vmem [shape: f32[1,32], index: 8, kind: input, shape index: {}]   ;;  %s4581_s9 = inlined_call_operand.vmem [shape: f32[1,32], index: 9, kind: input, shape index: {}]   ;;  %s4582_s10 = inlined_call_operand.vmem [shape: bf16[32,64], index: 10, kind: input, shape index: {}]   ;;  %s4583_s11 = inlined_call_operand.vmem [shape: f32[1,64], index: 11, kind: input, shape index: {}]   ;;  %s4584_s12 = inlined_call_operand.vmem [shape: bf16[64,32], index: 12, kind: input, shape index: {}]   ;;  %s4585_s13 = inlined_call_operand.vmem [shape: f32[1,32], index: 13, kind: input, shape index: {}]   ;;  %s4586_s14 = inlined_call_operand.hbm [shape: f32[2,8,32], index: 14, kind: output, shape index: {0}]   ;;  %s4587_s15 = inlined_call_operand.hbm [shape: f32[2,8,32], index: 15, kind: output, shape index: {1}]  }
   0x1   :  { %4595 = sst [smem:[#allocation15_spill]] %s4572_s0 }
   0x2   :  { %21 = vsyncpa [#allocation5], 0 }
   0x3   :  { %23 = vsyncpa [#allocation5 + $0x1], 0 }
   0x4   :  { %24 = vsyncpa [#allocation7], 0 }
   0x5   :  { %26 = vsyncpa [#allocation7 + $0x1], 0  ;;  %s3757_s18 = smov 0   ;;  %s3759_s19 = smov 0  }
   0x6   :  { %s3761_s20 = smov 0   ;;  %s3763_s21 = smov 0  }
   0x7 LB: > { %4596 = sst [smem:[#allocation10_spill]] %s3658_s18  ;;  %s3778_s22 = sadd.s32 4294967295, %s3670_s21   ;;  %s3670_s21 = sphi %s3763_s21, %s4608_s21   ;;  %s3666_s20 = sphi %s3761_s20, %s4610_s20   ;;  %s3662_s19 = sphi %s3759_s19, %s4612_s19   ;;  %s3658_s18 = sphi %s3757_s18, %s4611_s18  }
   0x8   : > { %4597 = sst [smem:[#allocation11_spill]] %s3666_s20  ;;  %s3014_s23 = sadd.s32 4294967294, %s3670_s21  }
   0x9   : > { %s3782_s24 = sadd.s32 1, %s3670_s21   ;;  %s343_s25 = sadd.s32 1, %s3666_s20 }
   0xa   : > { %4598 = sst [smem:[#allocation12_spill]] %s3782_s24  ;;  %s340_s26 = ssub.s32 %s3670_s21, %s3782_s24 }
   0xb   : > { %p353_p0 = scmp.ne.s32.totalorder %s3666_s20, %s3662_s19  ;;  %p341_p1 = scmp.eq.s32.totalorder %s340_s26, 0 }
   0xc   : > { %p354_p2 = scmp.eq.s32.totalorder %s3778_s22, 1  ;;  %p359_p3 = scmp.ne.s32.totalorder %s3662_s19, %s3658_s18 }
   0xd   : > { %p360_p4 = scmp.eq.s32.totalorder %s3014_s23, 1  ;;  %p3017_p7 = scmp.ge.s32.totalorder %s3670_s21, 1 }
   0xe   : > { %s3793_s27 = scalar_select %p341_p1, %s3666_s20, %s343_s25  }
   0xf   : > { %p3795_p5 = por %p354_p2, %p353_p0  ;;  %p3799_p6 = por %p360_p4, %p359_p3 }
  0x10   : > { %4599 = sst [smem:[#allocation13_spill]] %s3793_s27  ;;  %p454_p8 = scmp.lt.s32.totalorder %s3670_s21, 3 }
  0x11   : > { %s4601_s29 = scalar_select %p3799_p6, 1, 0 }
  0x12   : > { %p455_p9 = pnand %p3017_p7, %p454_p8 }
  0x13   : > { %4602 = sst [smem:[#allocation14_spill]] %s4601_s29  ;;  %v3448_v0 = vld [vmem:[%s4574_s2 + $0x4] ss:$48 sps:$4 sm:$0xff] (!%p455_p9)   ;;  %p510_p10 = scmp.lt.s32.totalorder (!%p455_p9), %s3778_s22, 1  ;;  %v3672_v2 = vmov (!%p455_p9), 0   ;;  %vm813_vm0 = vcmask (!%p455_p9), 261120   ;;  %v633_v29 = vlaneseq (!%p455_p9) }
  0x14   : > { %458 = sbr.rel (%p455_p9) target bundleno = 2233 (0x8b9), region = 76  ;;  %v3812_v1 = vld [vmem:[%s4574_s2 + $0x14] ss:$48 sps:$4 sm:$0xff] (!%p455_p9)   ;;  %849 = vmatprep.mubr.bf16.mxu1 (!%p455_p9), %v3672_v2  ;;  %931 = vmatprep.mubr.bf16.mxu0 (!%p455_p9), %v3672_v2  ;;  %v3452_v3 = vld [vmem:[%s4574_s2] ss:$48 sps:$4 sm:$0xff] (!%p455_p9)   ;;  %s4603_s0 = sld [smem:[#allocation15_spill]] (!%p455_p9) }
  0x15   : > { %817 = vmatprep.subr.bf16.mxu1 (!%p455_p9), %v3448_v0  ;;  %v3822_v4 = vld [vmem:[%s4574_s2 + $0x10] ss:$48 sps:$4 sm:$0xff] (!%p455_p9)   ;;  %899 = vmatprep.subr.bf16.mxu0 (!%p455_p9), %v3812_v1  ;;  %v3454_v5 = vld [vmem:[%s4574_s2 + $0x64] ss:$48 sps:$4 sm:$0xff] (!%p455_p9)   ;;  %v3853_v10 = vld [vmem:[%s4574_s2 + $0x8] ss:$48 sps:$4 sm:$0xff] (!%p455_p9)  }
  0x16   : > { %818 = vmatpush1.bf16.msra.mxu1 (!%p455_p9), %v3452_v3  ;;  %900 = vmatpush1.bf16.msra.mxu0 (!%p455_p9), %v3822_v4  ;;  %v3456_v6 = vld [vmem:[%s4574_s2 + $0x74] ss:$48 sps:$4 sm:$0xff] (!%p455_p9)   ;;  %v3458_v7 = vld [vmem:[%s4574_s2 + $0x60] ss:$48 sps:$4 sm:$0xff] (!%p455_p9)   ;;  %v3462_v11 = vld [vmem:[%s4574_s2 + $0xc] ss:$48 sps:$4 sm:$0xff] (!%p455_p9)  }
  0x17   : > { %819 = vmatprep.subr.bf16.mxu1 (!%p455_p9), %v3454_v5  ;;  %v3459_v8 = vld [vmem:[%s4574_s2 + $0x70] ss:$48 sps:$4 sm:$0xff] (!%p455_p9)   ;;  %901 = vmatprep.subr.bf16.mxu0 (!%p455_p9), %v3456_v6  ;;  %v3465_v14 = vld [vmem:[%s4574_s2 + $0x24] ss:$48 sps:$4 sm:$0xff] (!%p455_p9)   ;;  %v3468_v15 = vld [vmem:[%s4574_s2 + $0x6c] ss:$48 sps:$4 sm:$0xff] (!%p455_p9)  }
  0x18   : > { %v3463_v13 = vld [vmem:[%s4574_s2 + $0x20] ss:$48 sps:$4 sm:$0xff] (!%p455_p9)   ;;  %v3471_v16 = vld [vmem:[%s4574_s2 + $0x84] ss:$48 sps:$4 sm:$0xff] (!%p455_p9)   ;;  %v3466_v17 = vld [vmem:[%s4574_s2 + $0x68] ss:$48 sps:$4 sm:$0xff] (!%p455_p9)  }
  0x19   : > { %v3469_v18 = vld [vmem:[%s4574_s2 + $0x80] ss:$48 sps:$4 sm:$0xff] (!%p455_p9)   ;;  %v3474_v19 = vld [vmem:[%s4574_s2 + $0x1c] ss:$48 sps:$4 sm:$0xff] (!%p455_p9)   ;;  %v3472_v20 = vld [vmem:[%s4574_s2 + $0x18] ss:$48 sps:$4 sm:$0xff] (!%p455_p9)  }
  0x1a   : > { %820 = vmatpush1.bf16.msra.mxu1 (!%p455_p9), %v3458_v7  ;;  %902 = vmatpush1.bf16.msra.mxu0 (!%p455_p9), %v3459_v8  ;;  %v3477_v21 = vld [vmem:[%s4574_s2 + $0x7c] ss:$48 sps:$4 sm:$0xff] (!%p455_p9)   ;;  %v3475_v22 = vld [vmem:[%s4574_s2 + $0x78] ss:$48 sps:$4 sm:$0xff] (!%p455_p9)   ;;  %v3938_v30 = vshrl.u32 (!%p455_p9), %v633_v29, 7  ;;  %v3673_v38 = vmov (!%p455_p9), 0.0  }
  0x1b   : > { %s3825_s27 = scalar_select %p510_p10, %s3778_s22, 1  ;;  %858 = vmatprep.subr.bf16.mxu1 %v3462_v11  ;;  %981 = vmatprep.subr.bf16.mxu0 %v3465_v14  ;;  %v3480_v24 = vld [vmem:[%s4574_s2 + $0x2c] ss:$48 sps:$4 sm:$0xff]   ;;  %v3478_v25 = vld [vmem:[%s4574_s2 + $0x28] ss:$48 sps:$4 sm:$0xff]   ;;  %vm3674_vm1 = vmmov 0  }
  0x1c   : > { %v3483_v27 = vld [vmem:[%s4574_s2 + $0x8c] ss:$48 sps:$4 sm:$0xff]   ;;  %v3481_v28 = vld [vmem:[%s4574_s2 + $0x88] ss:$48 sps:$4 sm:$0xff]   ;;  %v639_v31 = vsub.s32 1, %v3938_v30  ;;  %v643_v34 = vsub.s32 2, %v3938_v30 }
  0x1d   : > { %s3020_s20 = sshll.u32 %s3825_s27, 3  ;;  %v546_v32 = vld [vmem:[%s4575_s3 + $0x8] sm:$0xf]  ;;  %v647_v36 = vsub.s32 3, %v3938_v30  ;;  %v635_v45 = vsub.s32 0, %v3938_v30  ;;  %vm1391_vm2 = vcmask 1043456  }
  0x1e   : > { %s3847_s18 = scalar_lea.vmem %s4603_s0, %s3020_s20  ;;  %s3889_s24 = scalar_lea.vmem %s4573_s1, %s3020_s20  ;;  %v3946_v33 = vrot.slane %v546_v32, %v639_v31  ;;  %v3951_v35 = vrot.slane %v546_v32, %v643_v34  ;;  %vm1377_vm3 = vcmask 64512   ;;  %vm2711_vm4 = vcmask 523264  }
  0x1f   : > { %v519_v9 = vld [vmem:[%s3847_s18] sm:$0xff]  ;;  %v3956_v37 = vrot.slane %v546_v32, %v647_v36  ;;  %v668_v48 = vrot.slane %v546_v32, %v635_v45  ;;  %v659_v32 = vsub.s32 6, %v3938_v30  ;;  %s4594_s27 = sshll.u32 %s3778_s22, 7  ;;  %s3675_s26 = smov [#allocation4]  }
  0x20   : > { %v630_v12 = vpack.c.bf16 %v519_v9, %v519_v9  ;;  %v3901_v23 = vld [vmem:[%s3889_s24] sm:$0xff] }
  0x21   : > { %v1075_v26 = vpack.c.bf16 %v3901_v23, %v3901_v23 }
  0x22   : > { %3046 = vmatmul.mubr.msk.bf16.vlgmr.msra.gmra.mrb[0].mxu1 %vm813_vm0, %v630_v12  ;;  %3048 = vmatmul.mubr.msk.bf16.vlgmr.msra.gmra.mrb[0].mxu0 %vm813_vm0, %v630_v12 }
  0x23   : > { %859 = vmatpush1.bf16.msra.mxu1 %v3853_v10  ;;  %982 = vmatpush1.bf16.msra.mxu0 %v3463_v13 }
  0x24   : > { %860 = vmatprep.subr.bf16.mxu1 %v3468_v15  ;;  %983 = vmatprep.subr.bf16.mxu0 %v3471_v16 }
  0x25   : > { %890 = vmatprep.mubr.bf16.mxu1 %v3672_v2  ;;  %1013 = vmatprep.mubr.bf16.mxu0 %v3672_v2 }
  0x27   : > { %861 = vmatpush1.bf16.msra.mxu1 %v3466_v17  ;;  %984 = vmatpush1.bf16.msra.mxu0 %v3469_v18 }
  0x28   : > { %940 = vmatprep.subr.bf16.mxu1 %v3474_v19  ;;  %1079 = vmatprep.subr.bf16.mxu0 %v3448_v0 }
  0x2a   : > { %3047 = vmatmul.mubr.msk.bf16.vlgmr.msra.gmra.mrb[4].mxu1 %vm813_vm0, %v630_v12  ;;  %3050 = vmatmul.mubr.msk.bf16.vlgmr.msra.gmra.mrb[4].mxu0 %vm813_vm0, %v630_v12 }
  0x2b   : > { %941 = vmatpush1.bf16.msra.mxu1 %v3472_v20  ;;  %1080 = vmatpush1.bf16.msra.mxu0 %v3452_v3 }
  0x2c   : > { %942 = vmatprep.subr.bf16.mxu1 %v3477_v21  ;;  %1081 = vmatprep.subr.bf16.mxu0 %v3454_v5 }
  0x2d   : > { %972 = vmatprep.mubr.bf16.mxu1 %v3672_v2  ;;  %1111 = vmatprep.mubr.bf16.mxu0 %v3672_v2 }
  0x2f   : > { %943 = vmatpush1.bf16.msra.mxu1 %v3475_v22  ;;  %1082 = vmatpush1.bf16.msra.mxu0 %v3458_v7 }
  0x30   : > { %1022 = vmatprep.subr.bf16.mxu1 %v3480_v24  ;;  %1161 = vmatprep.subr.bf16.mxu0 %v3812_v1  ;;  %v651_v1 = vsub.s32 4, %v3938_v30 }
  0x32   : > { %3049 = vmatmul.mubr.msk.bf16.vlgmr.msra.gmra.mrb[8].mxu1 %vm813_vm0, %v630_v12  ;;  %3052 = vmatmul.mubr.msk.bf16.vlgmr.msra.gmra.mrb[8].mxu0 %vm813_vm0, %v1075_v26 }
  0x33   : > { %1023 = vmatpush1.bf16.msra.mxu1 %v3478_v25  ;;  %1162 = vmatpush1.bf16.msra.mxu0 %v3822_v4  ;;  %v3992_v4 = vld [vmem:[%s4575_s3] sm:$0xff] }
  0x34   : > { %1024 = vmatprep.subr.bf16.mxu1 %v3483_v27  ;;  %1163 = vmatprep.subr.bf16.mxu0 %v3456_v6  ;;  %v3995_v5 = vrot.slane %v3992_v4, %v651_v1 }
  0x35   : > { %1054 = vmatprep.mubr.bf16.mxu1 %v3672_v2  ;;  %1193 = vmatprep.mubr.bf16.mxu0 %v3672_v2 }
  0x37   : > { %1025 = vmatpush1.bf16.msra.mxu1 %v3481_v28  ;;  %1164 = vmatpush1.bf16.msra.mxu0 %v3459_v8  ;;  %v655_v8 = vsub.s32 5, %v3938_v30 }
  0x38   : > { %1120 = vmatprep.subr.bf16.mxu1 %v3462_v11  ;;  %1243 = vmatprep.subr.bf16.mxu0 %v3465_v14 }
  0x3a   : > { %3051 = vmatmul.mubr.msk.bf16.vlgmr.msra.gmra.mrb[12].mxu1 %vm813_vm0, %v630_v12  ;;  %3054 = vmatmul.mubr.msk.bf16.vlgmr.msra.gmra.mrb[12].mxu0 %vm813_vm0, %v1075_v26 }
  0x3b   : > { %1121 = vmatpush1.bf16.msra.mxu1 %v3853_v10  ;;  %1152 = vmatprep.mubr.bf16.mxu1 %v3672_v2 }
  0x3c   : > { %1122 = vmatprep.subr.bf16.mxu1 %v3468_v15  ;;  %1244 = vmatpush1.bf16.msra.mxu0 %v3463_v13  ;;  %v4003_v13 = vrot.slane %v3992_v4, %v635_v45 }
  0x3d   : > { %1245 = vmatprep.subr.bf16.mxu0 %v3471_v16  ;;  %1275 = vmatprep.mubr.bf16.mxu0 %v3672_v2 }
  0x3f   : > { %1123 = vmatpush1.bf16.msra.mxu1 %v3466_v17 }
  0x40   : > { %1202 = vmatprep.subr.bf16.mxu1 %v3474_v19  ;;  %1246 = vmatpush1.bf16.msra.mxu0 %v3469_v18 }
  0x41   : > { %3265 = vmatprep.subr.bf16.mxu0 %v3673_v38 }
  0x42   : > { %3053 = vmatmul.mubr.msk.bf16.vlgmr.msra.gmra.mrb[16].mxu1 %vm813_vm0, %v1075_v26 }
  0x43   : > { %1203 = vmatpush1.bf16.msra.mxu1 %v3472_v20  ;;  %1234 = vmatprep.mubr.bf16.mxu1 %v3672_v2  ;;  %v656_v20 = vrot.slane %v3992_v4, %v655_v8 }
  0x44   : > { %1204 = vmatprep.subr.bf16.mxu1 %v3477_v21  ;;  %3056 = vmatmul.mubr.msk.bf16.vlgmr.msra.gmra.mrb[16].mxu0 %vm813_vm0, %v1075_v26 }
  0x45   : > { %3267 = vmatprep.mubr.msk.bf16.mxu0 %vm3674_vm1, %v3673_v38 }
  0x47   : > { %1205 = vmatpush1.bf16.msra.mxu1 %v3475_v22 }
  0x48   : > { %1284 = vmatprep.subr.bf16.mxu1 %v3480_v24 }
  0x4a   : > { %3055 = vmatmul.mubr.msk.bf16.vlgmr.msra.gmra.mrb[20].mxu1 %vm813_vm0, %v1075_v26 }
  0x4b   : > { %1285 = vmatpush1.bf16.msra.mxu1 %v3478_v25  ;;  %1316 = vmatprep.mubr.bf16.mxu1 %v3672_v2 }
  0x4c   : > { %1286 = vmatprep.subr.bf16.mxu1 %v3483_v27  ;;  %v640_v27 = vrot.slane %v3992_v4, %v639_v31 }
  0x4f   : > { %1287 = vmatpush1.bf16.msra.mxu1 %v3481_v28 }
  0x50   : > { %3271 = vmatprep.subr.bf16.mxu1 %v3673_v38 }
  0x52   : > { %3057 = vmatmul.mubr.msk.bf16.vlgmr.msra.gmra.mrb[24].mxu1 %vm813_vm0, %v1075_v26 }
  0x53   : > { %3273 = vmatprep.mubr.msk.bf16.mxu1 %vm3674_vm1, %v3673_v38 }
  0xf5   : > { %v851_v39 = vpop.f32.mrb[0].mxu1  ;;  %v3964_v40 = vpop.f32.mrb[0].mxu0 }
  0xf6   : > { %v3966_v41 = vpop.f32.mrb[1].mxu1  ;;  %v3968_v42 = vpop.f32.mrb[1].mxu0  ;;  %v852_v21 = vadd.f32 %v851_v39, %v4003_v13 }
  0xf7   : > { %v855_v43 = vpop.f32.mrb[2].mxu1  ;;  %v937_v44 = vpop.f32.mrb[2].mxu0  ;;  %v854_v31 = vadd.f32 %v3966_v41, %v640_v27  ;;  %v644_v41 = vrot.slane %v3992_v4, %v643_v34  ;;  %v648_v34 = vrot.slane %v3992_v4, %v647_v36  ;;  %v936_v36 = vadd.f32 %v3968_v42, %v656_v20 }
  0xf8   : > { %v856_v46 = vpop.f32.mrb[3].mxu1  ;;  %v938_v47 = vpop.f32.mrb[3].mxu0  ;;  %v1063_v26 = vpack.c.bf16 %v852_v21, %v852_v21 }
  0xfd   : > { %v3971_v49 = vpop.f32.mrb[4].mxu1  ;;  %v1015_v50 = vpop.f32.mrb[4].mxu0 }
  0xfe   : > { %v3973_v51 = vadd.f32 %v1015_v50, %v668_v48  ;;  %v3975_v52 = vpop.f32.mrb[5].mxu1  ;;  %v1017_v53 = vpop.f32.mrb[5].mxu0 }
  0xff   : > { %v3978_v54 = vadd.f32 %v1017_v53, %v3946_v33  ;;  %v896_v55 = vpop.f32.mrb[6].mxu1  ;;  %v1019_v56 = vpop.f32.mrb[6].mxu0 }
 0x100   : > { %v897_v57 = vpop.f32.mrb[7].mxu1  ;;  %v1020_v58 = vpop.f32.mrb[7].mxu0  ;;  %v660_v55 = vrot.slane %v3992_v4, %v659_v32 }
 0x105   : > { %v3980_v59 = vpop.f32.mrb[8].mxu1  ;;  %v3982_v60 = vpop.f32.mrb[8].mxu0 }
 0x106   : > { %v3984_v61 = vpop.f32.mrb[9].mxu1  ;;  %v3986_v62 = vpop.f32.mrb[9].mxu0 }
 0x107   : > { %v978_v63 = vpop.f32.mrb[10].mxu1  ;;  %v1117_v0 = vpop.f32.mrb[10].mxu0 }
 0x108   : > { %v979_v2 = vpop.f32.mrb[11].mxu1  ;;  %v1118_v3 = vpop.f32.mrb[11].mxu0  ;;  %v1064_v63 = vpack.c.bf16 %v854_v31, %v854_v31 }
 0x10d   : > { %v1056_v6 = vpop.f32.mrb[12].mxu1  ;;  %v1195_v7 = vpop.f32.mrb[12].mxu0 }
 0x10e   : > { %v3999_v9 = vadd.f32 %v1056_v6, %v3951_v35  ;;  %v1196_v10 = vadd.f32 %v1195_v7, %v3995_v5  ;;  %v1058_v11 = vpop.f32.mrb[13].mxu1  ;;  %v1197_v12 = vpop.f32.mrb[13].mxu0  ;;  %v893_v6 = vadd.f32 %v3971_v49, %v644_v41  ;;  %v934_v49 = vadd.f32 %v3964_v40, %v3995_v5 }
 0x10f   : > { %v4006_v14 = vadd.f32 %v1058_v11, %v3956_v37  ;;  %v1060_v15 = vpop.f32.mrb[14].mxu1  ;;  %v1199_v16 = vpop.f32.mrb[14].mxu0  ;;  %v1198_v22 = vadd.f32 %v1197_v12, %v656_v20  ;;  %v895_v11 = vadd.f32 %v3975_v52, %v648_v34  ;;  %v1116_v40 = vadd.f32 %v3986_v62, %v640_v27 }
 0x110   : > { %v1329_v17 = vpack.c.bf16 %v1196_v10, %v1196_v10  ;;  %v1061_v18 = vpop.f32.mrb[15].mxu1  ;;  %v1200_v19 = vpop.f32.mrb[15].mxu0  ;;  %v1065_v8 = vpack.c.bf16 %v893_v6, %v893_v6  ;;  %v1067_v15 = vpack.c.bf16 %v934_v49, %v934_v49  ;;  %v975_v5 = vadd.f32 %v3980_v59, %v660_v55 }
 0x111   : > { %v1330_v43 = vpack.c.bf16 %v1198_v22, %v1198_v22  ;;  %v1066_v12 = vpack.c.bf16 %v895_v11, %v895_v11  ;;  %v1326_v16 = vpack.c.bf16 %v1116_v40, %v1116_v40 }
 0x112   : > { %3266 = vmatpush3.bf16.xpose.msra.mxu0 %v1329_v17  ;;  %v1069_v17 = vpack.c.bf16 %v975_v5, %v975_v5 }
 0x113   : > { %3277 = vmatprep.subr.bf16.mxu0 %v3673_v38 }
 0x115   : > { %v4011_v24 = vpop.f32.mrb[16].mxu1 }
 0x116   : > { %v4013_v25 = vpop.f32.mrb[17].mxu1  ;;  %v1155_v42 = vadd.f32 %v4011_v24, %v644_v41 }
 0x117   : > { %v1158_v28 = vpop.f32.mrb[18].mxu1  ;;  %v1277_v29 = vpop.f32.mrb[16].mxu0  ;;  %v1157_v59 = vadd.f32 %v4013_v25, %v648_v34 }
 0x118   : > { %v1159_v44 = vpop.f32.mrb[19].mxu1  ;;  %v1278_v45 = vadd.f32 %v1277_v29, %v668_v48  ;;  %v1279_v39 = vpop.f32.mrb[17].mxu0 }
 0x119   : > { %3268 = vmatmul.mubr.bf16.vlgmr.msra.gmra.mrb[20].mxu0 %v1063_v26  ;;  %v4020_v46 = vadd.f32 %v1279_v39, %v3946_v33  ;;  %v1281_v47 = vpop.f32.mrb[18].mxu0  ;;  %v663_v33 = vsub.s32 7, %v3938_v30  ;;  %v1114_v30 = vadd.f32 %v3982_v60, %v4003_v13  ;;  %v1327_v13 = vpack.c.bf16 %v1155_v42, %v1155_v42 }
 0x11a   : > { %3278 = vmatpush3.bf16.xpose.msra.mxu0 %v1330_v43  ;;  %3279 = vmatprep.mubr.msk.bf16.mxu0 %vm3674_vm1, %v3673_v38  ;;  %v1333_v50 = vpack.c.bf16 %v1278_v45, %v1278_v45  ;;  %v1282_v53 = vpop.f32.mrb[19].mxu0  ;;  %v1328_v62 = vpack.c.bf16 %v1157_v59, %v1157_v59 }
 0x11b   : > { %3289 = vmatprep.subr.bf16.mxu0 %v3673_v38  ;;  %v664_v3 = vrot.slane %v3992_v4, %v663_v33  ;;  %v1325_v52 = vpack.c.bf16 %v1114_v30, %v1114_v30  ;;  %v1068_v4 = vpack.c.bf16 %v936_v36, %v936_v36 }
 0x11c   : > { %v1393_v48 = vsel %vm1391_vm2, %v1333_v50, 0 }
 0x11d   : > { %v1236_v56 = vpop.f32.mrb[20].mxu1  ;;  %3272 = vmatpush3.bf16.msra.mxu1 %v1393_v48  ;;  %v977_v60 = vadd.f32 %v3984_v61, %v664_v3 }
 0x11e   : > { %v1237_v57 = vadd.f32 %v1236_v56, %v660_v55  ;;  %v1238_v58 = vpop.f32.mrb[21].mxu1  ;;  %3283 = vmatprep.subr.bf16.mxu1 %v3673_v38 }
 0x11f   : > { %v1240_v0 = vpop.f32.mrb[22].mxu1  ;;  %v1239_v7 = vadd.f32 %v1238_v58, %v664_v3  ;;  %v1070_v18 = vpack.c.bf16 %v977_v60, %v977_v60  ;;  %v1334_v60 = vpack.c.bf16 %v4020_v46, %v4020_v46 }
 0x120   : > { %v1331_v1 = vpack.c.bf16 %v1237_v57, %v1237_v57  ;;  %v1241_v2 = vpop.f32.mrb[23].mxu1 }
 0x121   : > { %3280 = vmatmul.mubr.bf16.vlgmr.msra.gmra.mrb[24].mxu0 %v1064_v63  ;;  %v1332_v10 = vpack.c.bf16 %v1239_v7, %v1239_v7 }
 0x122   : > { %3290 = vmatpush3.bf16.xpose.msra.mxu0 %v1331_v1  ;;  %3291 = vmatprep.mubr.msk.bf16.mxu0 %vm3674_vm1, %v3673_v38 }
 0x123   : > { %3301 = vmatprep.subr.bf16.mxu0 %v3673_v38 }
 0x125   : > { %v1318_v58 = vpop.f32.mrb[24].mxu1 }
 0x126   : > { %v1319_v63 = vadd.f32 %v1318_v58, %v3951_v35  ;;  %v1320_v41 = vpop.f32.mrb[25].mxu1 }
 0x127   : > { %v4079_v0 = vadd.f32 %v1320_v41, %v3956_v37  ;;  %v1322_v1 = vpop.f32.mrb[26].mxu1 }
 0x128   : > { %v1323_v2 = vpop.f32.mrb[27].mxu1 }
 0x129   : > { %3292 = vmatmul.mubr.bf16.vlgmr.msra.gmra.mrb[28].mxu0 %v1065_v8 }
 0x12a   : > { %3302 = vmatpush3.bf16.xpose.msra.mxu0 %v1332_v10  ;;  %3303 = vmatprep.mubr.msk.bf16.mxu0 %vm3674_vm1, %v3673_v38 }
 0x12b   : > { %3313 = vmatprep.subr.bf16.mxu0 %v3673_v38 }
 0x131   : > { %3304 = vmatmul.mubr.bf16.vlgmr.msra.gmra.mrb[32].mxu0 %v1066_v12 }
 0x132   : > { %3314 = vmatpush3.bf16.xpose.msra.mxu0 %v1067_v15  ;;  %3315 = vmatprep.mubr.msk.bf16.mxu0 %vm3674_vm1, %v3673_v38 }
 0x133   : > { %3325 = vmatprep.subr.bf16.mxu0 %v3673_v38 }
 0x139   : > { %3316 = vmatmul.mubr.bf16.vlgmr.msra.gmra.mrb[36].mxu0 %v1325_v52 }
 0x13a   : > { %3326 = vmatpush3.bf16.xpose.msra.mxu0 %v1068_v4  ;;  %3327 = vmatprep.mubr.msk.bf16.mxu0 %vm3674_vm1, %v3673_v38 }
 0x13b   : > { %3337 = vmatprep.subr.bf16.mxu0 %v3673_v38 }
 0x141   : > { %3328 = vmatmul.mubr.bf16.vlgmr.msra.gmra.mrb[40].mxu0 %v1326_v16 }
 0x142   : > { %3338 = vmatpush3.bf16.xpose.msra.mxu0 %v1069_v17  ;;  %3339 = vmatprep.mubr.msk.bf16.mxu0 %vm3674_vm1, %v3673_v38 }
 0x143   : > { %3349 = vmatprep.subr.bf16.mxu0 %v3673_v38 }
 0x149   : > { %3340 = vmatmul.mubr.bf16.vlgmr.msra.gmra.mrb[44].mxu0 %v1327_v13 }
 0x14a   : > { %3350 = vmatpush3.bf16.xpose.msra.mxu0 %v1070_v18  ;;  %3351 = vmatprep.mubr.msk.bf16.mxu0 %vm3674_vm1, %v3673_v38 }
 0x151   : > { %3352 = vmatmul.mubr.bf16.vlgmr.msra.gmra.mrb[48].mxu0 %v1328_v62 }
 0x1ec   : > { %v1371_v19 = vpop.f32.mrb[20].mxu0 }
 0x1ed   : > { %v3269_v20 = vpop.f32.mrb[21].mxu0  ;;  %v1378_v21 = vsel %vm1377_vm3, %v1371_v19, -inf }
 0x1ee   : > { %1379 = vmax.xlane.f32.xlu0 %v1378_v21  ;;  %v1374_v22 = vpop.f32.mrb[22].mxu0  ;;  %v1493_v21 = vsel %vm1391_vm2, %v1334_v60, 0  ;;  %v4189_v60 = vld [vmem:[%s4576_s4 + $0x58] sm:$0xff]  }
 0x1ef   : > { %v3270_v24 = vpop.f32.mrb[23].mxu0  ;;  %v1335_v22 = vpack.c.bf16 %v1319_v63, %v1319_v63 }
 0x1f1   : > { %v1593_v24 = vsel %vm1391_vm2, %v1335_v22, 0  ;;  %v4232_v22 = vld [vmem:[%s4576_s4 + $0x28] sm:$0xff]  }
 0x1f4   : > { %v1473_v61 = vpop.f32.mrb[24].mxu0 }
 0x1f5   : > { %v3281_v26 = vpop.f32.mrb[25].mxu0  ;;  %v1479_v27 = vsel %vm1377_vm3, %v1473_v61, -inf }
 0x1f6   : > { %1480 = vmax.xlane.f32.xlu0 %v1479_v27  ;;  %v1476_v28 = vpop.f32.mrb[26].mxu0 }
 0x1f7   : > { %v3282_v29 = vpop.f32.mrb[27].mxu0 }
 0x1fc   : > { %v1573_v32 = vpop.f32.mrb[28].mxu0 }
 0x1fd   : > { %v3293_v43 = vpop.f32.mrb[29].mxu0  ;;  %v1579_v25 = vsel %vm1377_vm3, %v1573_v32, -inf }
 0x1fe   : > { %1580 = vmax.xlane.f32.xlu1 %v1579_v25  ;;  %v1576_v44 = vpop.f32.mrb[30].mxu0 }
 0x1ff   : > { %v3294_v45 = vpop.f32.mrb[31].mxu0 }
 0x204   : > { %v4069_v39 = vpop.f32.mrb[32].mxu0 }
 0x205   : > { %v3305_v47 = vpop.f32.mrb[33].mxu0  ;;  %v1679_v50 = vsel %vm1377_vm3, %v4069_v39, -inf }
 0x206   : > { %1680 = vmax.xlane.f32.xlu1 %v1679_v50  ;;  %v1676_v53 = vpop.f32.mrb[34].mxu0 }
 0x207   : > { %v3306_v31 = vpop.f32.mrb[35].mxu0  ;;  %v1071_v53 = vpack.c.bf16 %v3973_v51, %v3973_v51  ;;  %v1072_v51 = vpack.c.bf16 %v3978_v54, %v3978_v54  ;;  %v1073_v54 = vpack.c.bf16 %v3999_v9, %v3999_v9  ;;  %v1074_v9 = vpack.c.bf16 %v4006_v14, %v4006_v14  ;;  %v3484_v14 = vld [vmem:[%s4576_s4 + $0x40] sm:$0xff]  }
 0x208   : > { %3161 = vmatprep.subr.bf16.mxu0 %v3484_v14 }
 0x20c   : > { %v4073_v55 = vpop.f32.mrb[36].mxu0 }
 0x20d   : > { %v3317_v48 = vpop.f32.mrb[37].mxu0  ;;  %v1779_v56 = vsel %vm1377_vm3, %v4073_v55, -inf }
 0x20e   : > { %1780 = vmax.xlane.f32.xlu0 %v1779_v56  ;;  %v1776_v33 = vpop.f32.mrb[38].mxu0 }
 0x20f   : > { %v3318_v57 = vpop.f32.mrb[39].mxu0 }
 0x210   : > { %v1793_v57 = vsel %vm1391_vm2, %v1071_v53, 0  ;;  %v4330_v53 = vld [vmem:[%s4576_s4 + $0xf8] sm:$0xff]  }
 0x214   : > { %v4081_v3 = vpop.f32.mrb[40].mxu0 }
 0x215   : > { %v3329_v6 = vpop.f32.mrb[41].mxu0  ;;  %v1879_v7 = vsel %vm1377_vm3, %v4081_v3, -inf }
 0x216   : > { %1880 = vmax.xlane.f32.xlu1 %v1879_v7  ;;  %v1876_v8 = vpop.f32.mrb[42].mxu0 }
 0x217   : > { %v3330_v34 = vpop.f32.mrb[43].mxu0 }
 0x21c   : > { %v4085_v10 = vpop.f32.mrb[44].mxu0 }
 0x21d   : > { %v3341_v11 = vpop.f32.mrb[45].mxu0  ;;  %v1979_v35 = vsel %vm1377_vm3, %v4085_v10, -inf }
 0x21e   : > { %1980 = vmax.xlane.f32.xlu0 %v1979_v35  ;;  %v1976_v37 = vpop.f32.mrb[46].mxu0  ;;  %v1993_v35 = vsel %vm1391_vm2, %v1073_v54, 0 }
 0x21f   : > { %v3342_v49 = vpop.f32.mrb[47].mxu0 }
 0x224   : > { %v4089_v12 = vpop.f32.mrb[48].mxu0 }
 0x225   : > { %v3353_v15 = vpop.f32.mrb[49].mxu0  ;;  %v2079_v30 = vsel %vm1377_vm3, %v4089_v12, -inf }
 0x226   : > { %2080 = vmax.xlane.f32.xlu1 %v2079_v30  ;;  %v2076_v36 = vpop.f32.mrb[50].mxu0  ;;  %v2093_v30 = vsel %vm1391_vm2, %v1074_v9, 0 }
 0x227   : > { %v3354_v52 = vpop.f32.mrb[51].mxu0 }
 0x27b   : > { %v1380_v4 = vpop.xlane.xlu0 %1379 }
 0x27c   : > { %v1381_v40 = vsub.f32 %v1371_v19, %v1380_v4 }
 0x27e   : > { %v1382_v5 = vmul.f32 1.442695, %v1381_v40  ;;  %v4159_v40 = vld [vmem:[%s4576_s4] sm:$0xff]  }
 0x27f   : > { %3162 = vmatpush3.bf16.msra.mxu0 %v4159_v40 }
 0x280   : > { %3530 = vpow2.f32 %v1382_v5  ;;  %v4164_v5 = vld [vmem:[%s4576_s4 + $0x48] sm:$0xff]  }
 0x281   : > { %3163 = vmatprep.subr.bf16.mxu0 %v4164_v5 }
 0x283   : > { %v1481_v16 = vpop.xlane.xlu0 %1480 }
 0x284   : > { %v1482_v17 = vsub.f32 %v1473_v61, %v1481_v16  ;;  %v4170_v16 = vld [vmem:[%s4576_s4 + $0x8] sm:$0xff]  }
 0x285   : > { %3164 = vmatpush3.bf16.msra.mxu0 %v4170_v16 }
 0x286   : > { %v1483_v42 = vmul.f32 1.442695, %v1482_v17  ;;  %v4177_v17 = vld [vmem:[%s4576_s4 + $0x50] sm:$0xff]  }
 0x287   : > { %3165 = vmatprep.subr.bf16.mxu0 %v4177_v17 }
 0x288   : > { %3532 = vpow2.f32 %v1483_v42  ;;  %v4182_v42 = vld [vmem:[%s4576_s4 + $0x10] sm:$0xff]  }
 0x289   : > { %3166 = vmatpush3.bf16.msra.mxu0 %v4182_v42 }
 0x28a   : > { %v3531_v13 = vpop.eup %3530  ;;  %3167 = vmatprep.subr.bf16.mxu0 %v4189_v60 }
 0x28b   : > { %v1581_v18 = vpop.xlane.xlu1 %1580  ;;  %v1384_v59 = vsel %vm1377_vm3, %v3531_v13, 0.0  ;;  %v1387_v62 = vpack.c.bf16 %v3531_v13, %v3531_v13  ;;  %v4194_v13 = vld [vmem:[%s4576_s4 + $0x18] sm:$0xff]  }
 0x28c   : > { %v1582_v20 = vsub.f32 %v1573_v32, %v1581_v18  ;;  %1385 = vadd.xlane.f32.xlu0 %v1384_v59  ;;  %v1336_v32 = vpack.c.bf16 %v4079_v0, %v4079_v0  ;;  %v4201_v18 = vld [vmem:[%s4576_s4 + $0x60] sm:$0xff]  }
 0x28d   : > { %3274 = vmatmul.mubr.msk.bf16.vlgmr.msra.gmra.mrb[28].mxu1 %vm1377_vm3, %v1387_v62  ;;  %3168 = vmatpush3.bf16.msra.mxu0 %v4194_v13  ;;  %v3493_v59 = vld [vmem:[%s4576_s4 + $0xc0] sm:$0xff]  }
 0x28e   : > { %v1583_v19 = vmul.f32 1.442695, %v1582_v20  ;;  %3284 = vmatpush3.bf16.msra.mxu1 %v1493_v21  ;;  %3285 = vmatprep.mubr.msk.bf16.mxu1 %vm3674_vm1, %v3673_v38  ;;  %v1693_v47 = vsel %vm1391_vm2, %v1336_v32, 0  ;;  %v4209_v62 = vld [vmem:[%s4576_s4 + $0x20] sm:$0xff]   ;;  %v4222_v21 = vld [vmem:[%s4576_s4 + $0x68] sm:$0xff]   ;;  %v4280_v32 = vld [vmem:[%s4576_s4 + $0x38] sm:$0xff]  }
 0x28f   : > { %3295 = vmatprep.subr.bf16.mxu1 %v3673_v38  ;;  %v4214_v20 = vld [vmem:[%s4576_s4 + $0x80] sm:$0xff]   ;;  %3169 = vmatprep.subr.bf16.mxu0 %v4201_v18 }
 0x290   : > { %3534 = vpow2.f32 %v1583_v19  ;;  %v4227_v19 = vld [vmem:[%s4576_s4 + $0xc8] sm:$0xff]  }
 0x291   : > { %3170 = vmatpush3.bf16.msra.mxu0 %v4209_v62 }
 0x292   : > { %v3533_v46 = vpop.eup %3532  ;;  %3171 = vmatprep.subr.bf16.mxu0 %v4222_v21 }
 0x293   : > { %v1681_v61 = vpop.xlane.xlu1 %1680  ;;  %v1485_v26 = vsel %vm1377_vm3, %v3533_v46, 0.0  ;;  %v1488_v27 = vpack.c.bf16 %v3533_v46, %v3533_v46  ;;  %v4237_v46 = vld [vmem:[%s4576_s4 + $0x88] sm:$0xff]  }
 0x294   : > { %v1682_v28 = vsub.f32 %v4069_v39, %v1681_v61  ;;  %1486 = vadd.xlane.f32.xlu1 %v1485_v26  ;;  %v4251_v61 = vld [vmem:[%s4576_s4 + $0xd0] sm:$0xff]  }
 0x295   : > { %3286 = vmatmul.mubr.msk.bf16.vlgmr.msra.gmra.mrb[32].mxu1 %vm1377_vm3, %v1488_v27  ;;  %3172 = vmatpush3.bf16.msra.mxu0 %v4232_v22  ;;  %v4256_v26 = vld [vmem:[%s4576_s4 + $0x30] sm:$0xff]  }
 0x296   : > { %v1683_v29 = vmul.f32 1.442695, %v1682_v28  ;;  %3296 = vmatpush3.bf16.msra.mxu1 %v1593_v24  ;;  %3297 = vmatprep.mubr.msk.bf16.mxu1 %vm3674_vm1, %v3673_v38  ;;  %v4246_v24 = vld [vmem:[%s4576_s4 + $0x70] sm:$0xff]   ;;  %v4270_v28 = vld [vmem:[%s4576_s4 + $0x78] sm:$0xff]  }
 0x297   : > { %3307 = vmatprep.subr.bf16.mxu1 %v3673_v38  ;;  %v4261_v27 = vld [vmem:[%s4576_s4 + $0x90] sm:$0xff]   ;;  %3173 = vmatprep.subr.bf16.mxu0 %v4246_v24 }
 0x298   : > { %3536 = vpow2.f32 %v1683_v29  ;;  %v4275_v29 = vld [vmem:[%s4576_s4 + $0xd8] sm:$0xff]  }
 0x299   : > { %3174 = vmatpush3.bf16.msra.mxu0 %v4256_v26 }
 0x29a   : > { %v3535_v43 = vpop.eup %3534  ;;  %3175 = vmatprep.subr.bf16.mxu0 %v4270_v28 }
 0x29b   : > { %v1781_v25 = vpop.xlane.xlu0 %1780  ;;  %v1585_v44 = vsel %vm1377_vm3, %v3535_v43, 0.0  ;;  %v1588_v45 = vpack.c.bf16 %v3535_v43, %v3535_v43  ;;  %v4285_v43 = vld [vmem:[%s4576_s4 + $0x98] sm:$0xff]  }
 0x29c   : > { %v1782_v39 = vsub.f32 %v4073_v55, %v1781_v25  ;;  %1586 = vadd.xlane.f32.xlu0 %v1585_v44  ;;  %v4294_v25 = vld [vmem:[%s4576_s4 + $0xe0] sm:$0xff]  }
 0x29d   : > { %3298 = vmatmul.mubr.msk.bf16.vlgmr.msra.gmra.mrb[36].mxu1 %vm1377_vm3, %v1588_v45  ;;  %3176 = vmatpush3.bf16.msra.mxu0 %v4280_v32  ;;  %v4299_v44 = vld [vmem:[%s4576_s4 + $0xa0] sm:$0xff]   ;;  %v4306_v45 = vld [vmem:[%s4576_s4 + $0xe8] sm:$0xff]  }
 0x29e   : > { %v1783_v50 = vmul.f32 1.442695, %v1782_v39  ;;  %3308 = vmatpush3.bf16.msra.mxu1 %v1693_v47  ;;  %3309 = vmatprep.mubr.msk.bf16.mxu1 %vm3674_vm1, %v3673_v38  ;;  %v4311_v39 = vld [vmem:[%s4576_s4 + $0xa8] sm:$0xff]   ;;  %v4318_v47 = vld [vmem:[%s4576_s4 + $0xf0] sm:$0xff]  }
 0x29f   : > { %3319 = vmatprep.subr.bf16.mxu1 %v3673_v38  ;;  %3205 = vmatprep.subr.bf16.mxu0 %v3484_v14 }
 0x2a0   : > { %3538 = vpow2.f32 %v1783_v50  ;;  %v4323_v50 = vld [vmem:[%s4576_s4 + $0xb0] sm:$0xff]  }
 0x2a2   : > { %v3537_v31 = vpop.eup %3536 }
 0x2a3   : > { %v1881_v48 = vpop.xlane.xlu1 %1880  ;;  %v1685_v55 = vsel %vm1377_vm3, %v3537_v31, 0.0  ;;  %v1688_v56 = vpack.c.bf16 %v3537_v31, %v3537_v31  ;;  %v4335_v31 = vld [vmem:[%s4576_s4 + $0xb8] sm:$0xff]  }
 0x2a4   : > { %v1882_v33 = vsub.f32 %v4081_v3, %v1881_v48  ;;  %1686 = vadd.xlane.f32.xlu1 %v1685_v55  ;;  %v1893_v3 = vsel %vm1391_vm2, %v1072_v51, 0  ;;  %v4340_v48 = vld [vmem:[%s3847_s18] sm:$0xff]  ;;  %s4493_s18 = scalar_lea.hbm %s4586_s14, %s4594_s27 }
 0x2a5   : > { %3310 = vmatmul.mubr.msk.bf16.vlgmr.msra.gmra.mrb[40].mxu1 %vm1377_vm3, %v1688_v56  ;;  %v2574_v55 = vsel %vm813_vm0, %v4340_v48, 0.0  ;;  %v2757_v56 = vsel %vm813_vm0, %v3901_v23, 0.0 }
 0x2a6   : > { %v1883_v58 = vmul.f32 1.442695, %v1882_v33  ;;  %3320 = vmatpush3.bf16.msra.mxu1 %v1793_v57  ;;  %3321 = vmatprep.mubr.msk.bf16.mxu1 %vm3674_vm1, %v3673_v38 }
 0x2a7   : > { %3331 = vmatprep.subr.bf16.mxu1 %v3673_v38 }
 0x2a8   : > { %3540 = vpow2.f32 %v1883_v58 }
 0x2aa   : > { %v3539_v63 = vpop.eup %3538 }
 0x2ab   : > { %v1981_v41 = vpop.xlane.xlu0 %1980  ;;  %v1785_v0 = vsel %vm1377_vm3, %v3539_v63, 0.0  ;;  %v1788_v1 = vpack.c.bf16 %v3539_v63, %v3539_v63 }
 0x2ac   : > { %v1982_v2 = vsub.f32 %v4085_v10, %v1981_v41  ;;  %1786 = vadd.xlane.f32.xlu0 %v1785_v0 }
 0x2ad   : > { %3322 = vmatmul.mubr.msk.bf16.vlgmr.msra.gmra.mrb[44].mxu1 %vm1377_vm3, %v1788_v1 }
 0x2ae   : > { %v1983_v6 = vmul.f32 1.442695, %v1982_v2  ;;  %3332 = vmatpush3.bf16.msra.mxu1 %v1893_v3  ;;  %3333 = vmatprep.mubr.msk.bf16.mxu1 %vm3674_vm1, %v3673_v38 }
 0x2af   : > { %3343 = vmatprep.subr.bf16.mxu1 %v3673_v38 }
 0x2b0   : > { %3542 = vpow2.f32 %v1983_v6 }
 0x2b2   : > { %v3541_v7 = vpop.eup %3540 }
 0x2b3   : > { %v2081_v8 = vpop.xlane.xlu1 %2080  ;;  %v1885_v34 = vsel %vm1377_vm3, %v3541_v7, 0.0  ;;  %v1888_v10 = vpack.c.bf16 %v3541_v7, %v3541_v7 }
 0x2b4   : > { %v2082_v11 = vsub.f32 %v4089_v12, %v2081_v8  ;;  %1886 = vadd.xlane.f32.xlu1 %v1885_v34 }
 0x2b5   : > { %3334 = vmatmul.mubr.msk.bf16.vlgmr.msra.gmra.mrb[48].mxu1 %vm1377_vm3, %v1888_v10 }
 0x2b6   : > { %v2083_v37 = vmul.f32 1.442695, %v2082_v11  ;;  %3344 = vmatpush3.bf16.msra.mxu1 %v1993_v35  ;;  %3345 = vmatprep.mubr.msk.bf16.mxu1 %vm3674_vm1, %v3673_v38 }
 0x2b7   : > { %3355 = vmatprep.subr.bf16.mxu1 %v3673_v38 }
 0x2b8   : > { %3544 = vpow2.f32 %v2083_v37 }
 0x2ba   : > { %v3543_v49 = vpop.eup %3542 }
 0x2bb   : > { %v1985_v15 = vsel %vm1377_vm3, %v3543_v49, 0.0  ;;  %v1988_v12 = vpack.c.bf16 %v3543_v49, %v3543_v49 }
 0x2bc   : > { %1986 = vadd.xlane.f32.xlu0 %v1985_v15 }
 0x2bd   : > { %3346 = vmatmul.mubr.msk.bf16.vlgmr.msra.gmra.mrb[52].mxu1 %vm1377_vm3, %v1988_v12 }
 0x2be   : > { %3356 = vmatpush3.bf16.msra.mxu1 %v2093_v30  ;;  %3357 = vmatprep.mubr.msk.bf16.mxu1 %vm3674_vm1, %v3673_v38 }
 0x2bf   : > { %3183 = vmatprep.subr.bf16.mxu1 %v3493_v59 }
 0x2c2   : > { %v3545_v36 = vpop.eup %3544 }
 0x2c3   : > { %v2085_v52 = vsel %vm1377_vm3, %v3545_v36, 0.0  ;;  %v2088_v4 = vpack.c.bf16 %v3545_v36, %v3545_v36 }
 0x2c4   : > { %2086 = vadd.xlane.f32.xlu1 %v2085_v52 }
 0x2c5   : > { %3358 = vmatmul.mubr.msk.bf16.vlgmr.msra.gmra.mrb[56].mxu1 %vm1377_vm3, %v2088_v4 }
 0x2c6   : > { %3184 = vmatpush3.bf16.msra.mxu1 %v4214_v20 }
 0x2c7   : > { %3185 = vmatprep.subr.bf16.mxu1 %v4227_v19 }
 0x2c8   : > { %2575 = vadd.xlane.f32.xlu1 %v2574_v55 }
 0x2ca   : > { %3186 = vmatpush3.bf16.msra.mxu1 %v4237_v46 }
 0x2cb   : > { %3187 = vmatprep.subr.bf16.mxu1 %v4251_v61 }
 0x2cc   : > { %2758 = vadd.xlane.f32.xlu1 %v2757_v56 }
 0x2ce   : > { %3188 = vmatpush3.bf16.msra.mxu1 %v4261_v27 }
 0x2cf   : > { %3189 = vmatprep.subr.bf16.mxu1 %v4275_v29 }
 0x2d2   : > { %3190 = vmatpush3.bf16.msra.mxu1 %v4285_v43 }
 0x2d3   : > { %3191 = vmatprep.subr.bf16.mxu1 %v4294_v25 }
 0x2d6   : > { %3192 = vmatpush3.bf16.msra.mxu1 %v4299_v44 }
 0x2d7   : > { %3193 = vmatprep.subr.bf16.mxu1 %v4306_v45 }
 0x2da   : > { %3194 = vmatpush3.bf16.msra.mxu1 %v4311_v39 }
 0x2db   : > { %3195 = vmatprep.subr.bf16.mxu1 %v4318_v47 }
 0x2de   : > { %3196 = vmatpush3.bf16.msra.mxu1 %v4323_v50 }
 0x2df   : > { %3197 = vmatprep.subr.bf16.mxu1 %v4330_v53 }
 0x2e2   : > { %3198 = vmatpush3.bf16.msra.mxu1 %v4335_v31 }
 0x2e3   : > { %3227 = vmatprep.subr.bf16.mxu1 %v3493_v59 }
 0x319   : > { %v1386_v33 = vpop.xlane.xlu0 %1385 }
 0x31a   : > { %3546 = vrcp.f32 %v1386_v33 }
 0x321   : > { %v1487_v57 = vpop.xlane.xlu1 %1486 }
 0x322   : > { %3548 = vrcp.f32 %v1487_v57 }
 0x324   : > { %v3547_v58 = vpop.eup %3546 }
 0x329   : > { %v1587_v1 = vpop.xlane.xlu0 %1586 }
 0x32a   : > { %3550 = vrcp.f32 %v1587_v1 }
 0x32c   : > { %v3549_v6 = vpop.eup %3548 }
 0x331   : > { %v1687_v34 = vpop.xlane.xlu1 %1686 }
 0x332   : > { %3552 = vrcp.f32 %v1687_v34 }
 0x334   : > { %v3551_v35 = vpop.eup %3550 }
 0x339   : > { %v1787_v12 = vpop.xlane.xlu0 %1786 }
 0x33a   : > { %3554 = vrcp.f32 %v1787_v12 }
 0x33c   : > { %v3553_v59 = vpop.eup %3552 }
 0x360   : > { %v1429_v51 = vpop.f32.mrb[28].mxu1 }
 0x361   : > { %v1436_v63 = vmul.f32 %v3547_v58, %v1429_v51  ;;  %v3275_v41 = vpop.f32.mrb[29].mxu1  ;;  %v1887_v58 = vpop.xlane.xlu1 %1886 }
 0x362   : > { %v1432_v0 = vpop.f32.mrb[30].mxu1  ;;  %3556 = vrcp.f32 %v1887_v58  ;;  %v3555_v41 = vpop.eup %3554 }
 0x363   : > { %v1437_v2 = vpack.c.bf16 %v1436_v63, %v1436_v63  ;;  %v3276_v3 = vpop.f32.mrb[31].mxu1 }
 0x365   : > { %1438 = vst [vmem:[#allocation2] sm:$0xf] %v1437_v2 }
 0x368   : > { %v1529_v54 = vpop.f32.mrb[32].mxu1 }
 0x369   : > { %v1536_v7 = vmul.f32 %v3549_v6, %v1529_v54  ;;  %v3287_v8 = vpop.f32.mrb[33].mxu1 }
 0x36a   : > { %v1532_v23 = vpop.f32.mrb[34].mxu1 }
 0x36b   : > { %v1537_v10 = vpack.c.bf16 %v1536_v7, %v1536_v7  ;;  %v3288_v11 = vpop.f32.mrb[35].mxu1 }
 0x36d   : > { %1538 = vst [vmem:[#allocation2 + $0x4] sm:$0xf] %v1537_v10 }
 0x370   : > { %v1629_v37 = vpop.f32.mrb[36].mxu1 }
 0x371   : > { %v1636_v9 = vmul.f32 %v3551_v35, %v1629_v37  ;;  %v3299_v49 = vpop.f32.mrb[37].mxu1 }
 0x372   : > { %v1632_v15 = vpop.f32.mrb[38].mxu1  ;;  %v3575_v49 = vld [vmem:[%s3889_s24] sm:$0xff]  ;;  %s4478_s24 = sand.u32 1, %s3662_s19  }
 0x373   : > { %v1637_v30 = vpack.c.bf16 %v1636_v9, %v1636_v9  ;;  %v3300_v36 = vpop.f32.mrb[39].mxu1  ;;  %s4593_s23 = sshll.u32 %s4478_s24, 3  ;;  %s2880_s17 = scalar_lea.sflag [#allocation5], %s4478_s24 }
 0x374   : > { %v2139_v52 = vld [vmem:[#allocation2] sm:$0xff]  ;;  %s502_s20 = scalar_lea.vmem [#allocation4], %s4593_s23  ;;  %s3580_s23 = sshll.u32 %s3675_s26, 4  ;;  %s3581_s23 = int_to_ptr.vmem [resolvable:$false] %s3580_s23 }
 0x375   : > { %1638 = vst [vmem:[#allocation2 + $0x8] sm:$0xf] %v1637_v30  ;;  %v3067_v4 = vcombine.low %v2139_v52, %v2139_v52  ;;  %v3068_v14 = vcombine.high %v2139_v52, %v2139_v52  ;;  %s2898_s30 = sshll.u32 %s502_s20, 4  ;;  %s3582_s0 = scalar_lea.vmem %s3581_s23, 256  ;;  %s4495_s30 = int_to_ptr.vmem [resolvable:$true] %s2898_s30 }
 0x376   : > { %s3576_s25 = scalar_lea.vmem %s4495_s30, 128  ;;  %p3583_p0 = scmp.lt.s32.totalorder %s4495_s30, %s3581_s23 }
 0x377   : > { %2387 = vmatprep.mubr.bf16.mxu0 %v3068_v14  ;;  %p3577_p11 = scmp.ne.s32.totalorder %s4495_s30, %s3576_s25  ;;  %p3584_p1 = scmp.lt.s32.totalorder %s3582_s0, %s3576_s25 }
 0x378   : > { %v1729_v55 = vpop.f32.mrb[40].mxu1  ;;  %2388 = vmatmul.mubr.bf16.vlgmr.msra.gmra.mrb[52].mxu0 %v3067_v4 }
 0x379   : > { %v1736_v56 = vmul.f32 %v3553_v59, %v1729_v55  ;;  %v3311_v33 = vpop.f32.mrb[41].mxu1  ;;  %3206 = vmatpush3.bf16.msra.mxu0 %v4159_v40  ;;  %v1987_v40 = vpop.xlane.xlu0 %1986  ;;  %v3066_v55 = vld [vmem:[%s4577_s5] ss:$0 sm:$0xff]  ;;  %p3578_p12 = pnand %p3577_p11, %p3795_p5  ;;  %p3585_p2 = por %p3584_p1, %p3583_p0 }
 0x37a   : > { %v1732_v57 = vpop.f32.mrb[42].mxu1  ;;  %3207 = vmatprep.subr.bf16.mxu0 %v4164_v5  ;;  %3558 = vrcp.f32 %v1987_v40 }
 0x37b   : > { %v1737_v51 = vpack.c.bf16 %v1736_v56, %v1736_v56  ;;  %v3312_v63 = vpop.f32.mrb[43].mxu1  ;;  %p3579_p13 = pneg %p3578_p12 }
 0x37d   : > { %1738 = vst [vmem:[#allocation2 + $0xc] sm:$0xf] %v1737_v51  ;;  %3208 = vmatpush3.bf16.msra.mxu0 %v4170_v16  ;;  %p3586_p3 = pnand %p3585_p2, %p3579_p13 }
 0x37e   : > { %3209 = vmatprep.subr.bf16.mxu0 %v4177_v17  ;;  %v3557_v17 = vpop.eup %3556 }
 0x380   : > { %v1829_v0 = vpop.f32.mrb[44].mxu1 }
 0x381   : > { %v1836_v1 = vmul.f32 %v3555_v41, %v1829_v0  ;;  %v3323_v2 = vpop.f32.mrb[45].mxu1  ;;  %3210 = vmatpush3.bf16.msra.mxu0 %v4182_v42 }
 0x382   : > { %v1832_v3 = vpop.f32.mrb[46].mxu1  ;;  %3211 = vmatprep.subr.bf16.mxu0 %v4189_v60 }
 0x383   : > { %v1837_v5 = vpack.c.bf16 %v1836_v1, %v1836_v1  ;;  %v3324_v6 = vpop.f32.mrb[47].mxu1 }
 0x384   : > { %v2140_v54 = vld [vmem:[#allocation2 + $0x8] sm:$0xff] }
 0x385   : > { %1838 = vst [vmem:[#allocation3] sm:$0xf] %v1837_v5  ;;  %3212 = vmatpush3.bf16.msra.mxu0 %v4194_v13  ;;  %v3069_v16 = vcombine.low %v2140_v54, %v2140_v54  ;;  %v3070_v7 = vcombine.high %v2140_v54, %v2140_v54  ;;  %v2087_v13 = vpop.xlane.xlu1 %2086 }
 0x386   : > { %3213 = vmatprep.subr.bf16.mxu0 %v4201_v18  ;;  %3560 = vrcp.f32 %v2087_v13  ;;  %v3559_v18 = vpop.eup %3558 }
 0x387   : > { %2427 = vmatprep.mubr.bf16.mxu1 %v3070_v7 }
 0x388   : > { %v1929_v8 = vpop.f32.mrb[48].mxu1  ;;  %2428 = vmatmul.mubr.bf16.vlgmr.msra.gmra.mrb[60].mxu1 %v3069_v16 }
 0x389   : > { %v1936_v42 = vmul.f32 %v3557_v17, %v1929_v8  ;;  %v3335_v23 = vpop.f32.mrb[49].mxu1  ;;  %3214 = vmatpush3.bf16.msra.mxu0 %v4209_v62  ;;  %3228 = vmatpush3.bf16.msra.mxu1 %v4214_v20 }
 0x38a   : > { %v1932_v60 = vpop.f32.mrb[50].mxu1  ;;  %3215 = vmatprep.subr.bf16.mxu0 %v4222_v21  ;;  %3229 = vmatprep.subr.bf16.mxu1 %v4227_v19 }
 0x38b   : > { %v1937_v34 = vpack.c.bf16 %v1936_v42, %v1936_v42  ;;  %v3336_v10 = vpop.f32.mrb[51].mxu1 }
 0x38d   : > { %1938 = vst [vmem:[#allocation3 + $0x4] sm:$0xf] %v1937_v34  ;;  %3216 = vmatpush3.bf16.msra.mxu0 %v4232_v22  ;;  %3230 = vmatpush3.bf16.msra.mxu1 %v4237_v46 }
 0x38e   : > { %3217 = vmatprep.subr.bf16.mxu0 %v4246_v24  ;;  %3231 = vmatprep.subr.bf16.mxu1 %v4251_v61 }
 0x390   : > { %v2029_v62 = vpop.f32.mrb[52].mxu1 }
 0x391   : > { %v2036_v20 = vmul.f32 %v3559_v18, %v2029_v62  ;;  %v3347_v11 = vpop.f32.mrb[53].mxu1  ;;  %3218 = vmatpush3.bf16.msra.mxu0 %v4256_v26  ;;  %3232 = vmatpush3.bf16.msra.mxu1 %v4261_v27  ;;  %v3561_v26 = vpop.eup %3560 }
 0x392   : > { %v2032_v21 = vpop.f32.mrb[54].mxu1  ;;  %3219 = vmatprep.subr.bf16.mxu0 %v4270_v28  ;;  %3233 = vmatprep.subr.bf16.mxu1 %v4275_v29 }
 0x393   : > { %v2037_v19 = vpack.c.bf16 %v2036_v20, %v2036_v20  ;;  %v3348_v22 = vpop.f32.mrb[55].mxu1 }
 0x394   : > { %v2141_v46 = vld [vmem:[#allocation3] sm:$0xff] }
 0x395   : > { %2038 = vst [vmem:[#allocation3 + $0x8] sm:$0xf] %v2037_v19  ;;  %3220 = vmatpush3.bf16.msra.mxu0 %v4280_v32  ;;  %3234 = vmatpush3.bf16.msra.mxu1 %v4285_v43  ;;  %v3105_v24 = vcombine.low %v2141_v46, %v2141_v46  ;;  %v3106_v61 = vcombine.high %v2141_v46, %v2141_v46 }
 0x396   : > { %3235 = vmatprep.subr.bf16.mxu1 %v4294_v25  ;;  %3361 = vmatprep.subr.bf16.mxu0 %v3673_v38 }
 0x397   : > { %2510 = vmatprep.mubr.bf16.mxu0 %v3106_v61 }
 0x398   : > { %v2129_v27 = vpop.f32.mrb[56].mxu1  ;;  %2511 = vmatmul.mubr.bf16.vlgmr.msra.gmra.mrb[56].mxu0 %v3105_v24 }
 0x399   : > { %v2136_v28 = vmul.f32 %v3561_v26, %v2129_v27  ;;  %v3359_v29 = vpop.f32.mrb[57].mxu1  ;;  %3236 = vmatpush3.bf16.msra.mxu1 %v4299_v44  ;;  %3365 = vmatprep.mubr.msk.bf16.mxu0 %vm3674_vm1, %v3673_v38 }
 0x39a   : > { %v2132_v32 = vpop.f32.mrb[58].mxu1  ;;  %3237 = vmatprep.subr.bf16.mxu1 %v4306_v45  ;;  %v2576_v45 = vpop.xlane.xlu1 %2575 }
 0x39b   : > { %v2137_v43 = vpack.c.bf16 %v2136_v28, %v2136_v28  ;;  %v3360_v35 = vpop.f32.mrb[59].mxu1 }
 0x39d   : > { %2138 = vst [vmem:[#allocation3 + $0xc] sm:$0xf] %v2137_v43  ;;  %3238 = vmatpush3.bf16.msra.mxu1 %v4311_v39  ;;  %v2577_v39 = vmul.f32 0.03125, %v2576_v45  ;;  %v4406_v43 = vld [vmem:[%s4580_s8] ss:$0 sm:$0xff] }
 0x39e   : > { %3239 = vmatprep.subr.bf16.mxu1 %v4318_v47  ;;  %v3104_v45 = vld [vmem:[%s4579_s7] ss:$0 sm:$0xff] }
 0x39f   : > { %v4383_v47 = vsub.f32 %v4340_v48, %v2577_v39  ;;  %v4418_v39 = vld [vmem:[%s4581_s9] ss:$0 sm:$0xff] }
 0x3a1   : > { %3240 = vmatpush3.bf16.msra.mxu1 %v4323_v50  ;;  %v2579_v50 = vmul.f32 %v4383_v47, %v4383_v47 }
 0x3a2   : > { %3241 = vmatprep.subr.bf16.mxu1 %v4330_v53  ;;  %v2759_v53 = vpop.xlane.xlu1 %2758 }
 0x3a3   : > { %v2760_v9 = vmul.f32 0.03125, %v2759_v53 }
 0x3a4   : > { %v2142_v25 = vld [vmem:[#allocation3 + $0x8] sm:$0xff] }
 0x3a5   : > { %3242 = vmatpush3.bf16.msra.mxu1 %v4335_v31  ;;  %v3107_v44 = vcombine.low %v2142_v25, %v2142_v25  ;;  %v3108_v37 = vcombine.high %v2142_v25, %v2142_v25  ;;  %v2580_v31 = vsel %vm813_vm0, %v2579_v50, 0.0  ;;  %v4389_v15 = vsub.f32 %v3575_v49, %v2760_v9  ;;  %v3103_v25 = vld [vmem:[%s4578_s6] ss:$0 sm:$0xff] }
 0x3a6   : > { %3369 = vmatprep.subr.bf16.mxu1 %v3673_v38  ;;  %2581 = vadd.xlane.f32.xlu1 %v2580_v31 }
 0x3a7   : > { %2550 = vmatprep.mubr.bf16.mxu1 %v3108_v37  ;;  %v2762_v12 = vmul.f32 %v4389_v15, %v4389_v15 }
 0x3a8   : > { %2551 = vmatmul.mubr.bf16.vlgmr.msra.gmra.mrb[64].mxu1 %v3107_v44 }
 0x3a9   : > { %3377 = vmatprep.mubr.msk.bf16.mxu1 %vm3674_vm1, %v3673_v38  ;;  %v2763_v30 = vsel %vm813_vm0, %v2762_v12, 0.0 }
 0x3aa   : > { %2764 = vadd.xlane.f32.xlu1 %v2763_v30 }
 0x433   : > { %v2582_v46 = vpop.xlane.xlu1 %2581 }
 0x434   : > { %v2583_v24 = vmul.f32 0.03125, %v2582_v46 }
 0x436   : > { %v2584_v61 = vadd.f32 1e-05, %v2583_v24 }
 0x437   : > { %v2765_v50 = vpop.xlane.xlu1 %2764 }
 0x438   : > { %3562 = vrsqrt.f32 %v2584_v61 }
 0x442   : > { %v3563_v29 = vpop.eup %3562 }
 0x443   : > { %v2586_v32 = vmul.f32 %v3563_v29, %v4383_v47 }
 0x445   : > { %v2593_v37 = vmul.f32 %v4406_v43, %v2586_v32 }
 0x447   : > { %v2600_v9 = vadd.f32 %v4418_v39, %v2593_v37 }
 0x44b   : > { %v3177_v36 = vpop.f32.mrb[52].mxu0 }
 0x44c   : > { %v3178_v52 = vpop.f32.mrb[53].mxu0 }
 0x44d   : > { %v3179_v4 = vadd.f32 %v3178_v52, %v3177_v36  ;;  %v3180_v14 = vpop.f32.mrb[54].mxu0 }
 0x44e   : > { %v3181_v59 = vpop.f32.mrb[55].mxu0 }
 0x44f   : > { %v2390_v57 = vadd.f32 %v3179_v4, %v3066_v55 }
 0x45b   : > { %v3199_v56 = vpop.f32.mrb[60].mxu1 }
 0x45c   : > { %v3200_v33 = vpop.f32.mrb[61].mxu1 }
 0x45d   : > { %v3201_v58 = vadd.f32 %v3200_v33, %v3199_v56  ;;  %v3202_v51 = vpop.f32.mrb[62].mxu1 }
 0x45e   : > { %v3203_v63 = vpop.f32.mrb[63].mxu1 }
 0x45f   : > { %v2430_v41 = vadd.f32 %v3201_v58, %v2390_v57 }
 0x461   : > { %v2435_v0 = vadd.f32 %v4340_v48, %v2430_v41 }
 0x463   : > { %v2436_v1 = vsel %vm813_vm0, %v2435_v0, 0.0 }
 0x464   : > { %2437 = vadd.xlane.f32.xlu0 %v2436_v1 }
 0x46b   : > { %v3221_v2 = vpop.f32.mrb[56].mxu0 }
 0x46c   : > { %v3222_v3 = vpop.f32.mrb[57].mxu0 }
 0x46d   : > { %v3223_v40 = vadd.f32 %v3222_v3, %v3221_v2  ;;  %v3224_v5 = vpop.f32.mrb[58].mxu0 }
 0x46e   : > { %v3225_v6 = vpop.f32.mrb[59].mxu0 }
 0x46f   : > { %v2513_v7 = vadd.f32 %v3223_v40, %v3066_v55 }
 0x47b   : > { %v3243_v54 = vpop.f32.mrb[64].mxu1 }
 0x47c   : > { %v3244_v16 = vpop.f32.mrb[65].mxu1 }
 0x47d   : > { %v3245_v17 = vadd.f32 %v3244_v16, %v3243_v54  ;;  %v3246_v8 = vpop.f32.mrb[66].mxu1  ;;  %v3524_v16 = vld [vmem:[%s4582_s10] sm:$0xff]  }
 0x47e   : > { %v3247_v42 = vpop.f32.mrb[67].mxu1  ;;  %3362 = vmatpush3.bf16.msra.mxu0 %v3524_v16  ;;  %v3526_v8 = vld [vmem:[%s4584_s12] sm:$0xff]  }
 0x47f   : > { %v2553_v23 = vadd.f32 %v3245_v17, %v2513_v7  ;;  %v3525_v17 = vld [vmem:[%s4582_s10 + $0x8] sm:$0xff]   ;;  %3363 = vmatprep.subr.bf16.mxu0 %v3673_v38  ;;  %3370 = vmatpush3.bf16.msra.mxu1 %v3526_v8 }
 0x480   : > { %v3527_v42 = vld [vmem:[%s4584_s12 + $0x8] sm:$0xff]   ;;  %3371 = vmatprep.subr.bf16.mxu1 %v3673_v38 }
 0x481   : > { %v2558_v60 = vadd.f32 %v3575_v49, %v2553_v23  ;;  %v2766_v49 = vmul.f32 0.03125, %v2765_v50 }
 0x482   : > { %3364 = vmatpush3.bf16.msra.mxu0 %v3525_v17 }
 0x483   : > { %v2559_v13 = vsel %vm813_vm0, %v2558_v60, 0.0  ;;  %v2767_v30 = vadd.f32 1e-05, %v2766_v49  ;;  %3381 = vmatprep.subr.bf16.mxu0 %v3673_v38  ;;  %3372 = vmatpush3.bf16.msra.mxu1 %v3527_v42  ;;  %v3115_v49 = vld [vmem:[%s4585_s13] ss:$0 sm:$0xff] }
 0x484   : > { %2560 = vadd.xlane.f32.xlu0 %v2559_v13  ;;  %3373 = vmatprep.subr.bf16.mxu1 %v3673_v38 }
 0x4f1   : > { %v2438_v48 = vpop.xlane.xlu0 %2437 }
 0x4f2   : > { %v2440_v34 = vmul.f32 0.03125, %v2438_v48 }
 0x4f4   : > { %v2441_v10 = vsub.f32 %v2435_v0, %v2440_v34 }
 0x4f6   : > { %v2442_v18 = vmul.f32 %v2441_v10, %v2441_v10 }
 0x4f8   : > { %v2443_v62 = vsel %vm813_vm0, %v2442_v18, 0.0 }
 0x4f9   : > { %2444 = vadd.xlane.f32.xlu0 %v2443_v62 }
 0x511   : > { %v2561_v20 = vpop.xlane.xlu0 %2560 }
 0x512   : > { %v2562_v11 = vmul.f32 0.03125, %v2561_v20 }
 0x514   : > { %v2563_v21 = vsub.f32 %v2558_v60, %v2562_v11 }
 0x516   : > { %v2564_v19 = vmul.f32 %v2563_v21, %v2563_v21 }
 0x518   : > { %v2565_v22 = vsel %vm813_vm0, %v2564_v19, 0.0 }
 0x519   : > { %2566 = vadd.xlane.f32.xlu0 %v2565_v22 }
 0x586   : > { %v2445_v26 = vpop.xlane.xlu0 %2444 }
 0x587   : > { %v2446_v27 = vmul.f32 0.03125, %v2445_v26  ;;  %v3528_v26 = vld [vmem:[%s4584_s12 + $0x10] sm:$0xff]  }
 0x588   : > { %3374 = vmatpush3.bf16.msra.mxu1 %v3528_v26 }
 0x589   : > { %v2447_v28 = vadd.f32 1e-05, %v2446_v27  ;;  %3375 = vmatprep.subr.bf16.mxu1 %v3673_v38  ;;  %v3529_v27 = vld [vmem:[%s4584_s12 + $0x18] sm:$0xff]  }
 0x58b   : > { %3564 = vrsqrt.f32 %v2447_v28  ;;  %v3111_v28 = vld [vmem:[%s4583_s11] ss:$0 sm:$0xff] }
 0x58c   : > { %3566 = vrsqrt.f32 %v2767_v30  ;;  %3376 = vmatpush3.bf16.msra.mxu1 %v3529_v27 }
 0x595   : > { %v3565_v35 = vpop.eup %3564 }
 0x596   : > { %v2449_v44 = vmul.f32 %v3565_v35, %v2441_v10  ;;  %v3567_v14 = vpop.eup %3566 }
 0x597   : > { %v2769_v59 = vmul.f32 %v3567_v14, %v4389_v15 }
 0x598   : > { %v2456_v47 = vmul.f32 %v3103_v25, %v2449_v44 }
 0x599   : > { %v2770_v33 = vmul.f32 %v4406_v43, %v2769_v59 }
 0x59a   : > { %v2463_v53 = vadd.f32 %v3104_v45, %v2456_v47 }
 0x59b   : > { %v2771_v51 = vadd.f32 %v4418_v39, %v2770_v33 }
 0x59c   : > { %v4421_v31 = vadd.f32 %v2600_v9, %v2463_v53 }
 0x59e   : > { %v2602_v12 = vsel %vm813_vm0, %v4421_v31, 0.0 }
 0x59f   : > { %2603 = vadd.xlane.f32.xlu0 %v2602_v12 }
 0x5a6   : > { %v2567_v36 = vpop.xlane.xlu0 %2566 }
 0x5a7   : > { %v2568_v52 = vmul.f32 0.03125, %v2567_v36 }
 0x5a9   : > { %v2569_v4 = vadd.f32 1e-05, %v2568_v52 }
 0x5ab   : > { %3568 = vrsqrt.f32 %v2569_v4 }
 0x5b5   : > { %v3569_v55 = vpop.eup %3568 }
 0x5b6   : > { %v2571_v56 = vmul.f32 %v3569_v55, %v2563_v21 }
 0x5b8   : > { %v2572_v57 = vmul.f32 %v3103_v25, %v2571_v56 }
 0x5ba   : > { %v2573_v58 = vadd.f32 %v3104_v45, %v2572_v57 }
 0x5bc   : > { %v4428_v63 = vadd.f32 %v2771_v51, %v2573_v58 }
 0x5be   : > { %v2773_v41 = vsel %vm813_vm0, %v4428_v63, 0.0 }
 0x5bf   : > { %2774 = vadd.xlane.f32.xlu1 %v2773_v41 }
 0x62c   : > { %v2604_v0 = vpop.xlane.xlu0 %2603 }
 0x62d   : > { %v2605_v1 = vmul.f32 0.03125, %v2604_v0 }
 0x62f   : > { %v2606_v2 = vsub.f32 %v4421_v31, %v2605_v1 }
 0x631   : > { %v2607_v3 = vmul.f32 %v2606_v2, %v2606_v2 }
 0x633   : > { %v2608_v15 = vsel %vm813_vm0, %v2607_v3, 0.0 }
 0x634   : > { %2609 = vadd.xlane.f32.xlu0 %v2608_v15 }
 0x64c   : > { %v2775_v40 = vpop.xlane.xlu1 %2774 }
 0x64d   : > { %v2776_v5 = vmul.f32 0.03125, %v2775_v40 }
 0x64f   : > { %v2777_v6 = vsub.f32 %v4428_v63, %v2776_v5 }
 0x651   : > { %v2778_v54 = vmul.f32 %v2777_v6, %v2777_v6 }
 0x653   : > { %v2779_v7 = vsel %vm813_vm0, %v2778_v54, 0.0 }
 0x654   : > { %2780 = vadd.xlane.f32.xlu1 %v2779_v7 }
 0x6c1   : > { %v2610_v23 = vpop.xlane.xlu0 %2609 }
 0x6c2   : > { %v2611_v60 = vmul.f32 0.03125, %v2610_v23 }
 0x6c4   : > { %v2612_v13 = vadd.f32 1e-05, %v2611_v60 }
 0x6c6   : > { %3570 = vrsqrt.f32 %v2612_v13 }
 0x6d0   : > { %v3571_v48 = vpop.eup %3570 }
 0x6d1   : > { %v2614_v34 = vmul.f32 %v3571_v48, %v2606_v2 }
 0x6d3   : > { %v2615_v10 = vmul.f32 %v4406_v43, %v2614_v34 }
 0x6d5   : > { %v2616_v18 = vadd.f32 %v4418_v39, %v2615_v10 }
 0x6d7   : > { %v2617_v62 = vpack.c.bf16 %v2616_v18, %v2616_v18 }
 0x6d9   : > { %3366 = vmatmul.mubr.msk.bf16.vlgmr.msra.gmra.mrb[60].mxu0 %vm813_vm0, %v2617_v62 }
 0x6da   : > { %3382 = vmatpush3.bf16.msra.mxu0 %v3524_v16  ;;  %3385 = vmatprep.mubr.msk.bf16.mxu0 %vm3674_vm1, %v3673_v38 }
 0x6db   : > { %3383 = vmatprep.subr.bf16.mxu0 %v3673_v38 }
 0x6de   : > { %3384 = vmatpush3.bf16.msra.mxu0 %v3525_v17 }
 0x6df   : > { %3389 = vmatprep.subr.bf16.mxu0 %v3673_v38 }
 0x6e1   : > { %v2781_v20 = vpop.xlane.xlu1 %2780 }
 0x6e2   : > { %v2782_v11 = vmul.f32 0.03125, %v2781_v20 }
 0x6e4   : > { %v2783_v21 = vadd.f32 1e-05, %v2782_v11 }
 0x6e6   : > { %3572 = vrsqrt.f32 %v2783_v21 }
 0x6f0   : > { %v3573_v19 = vpop.eup %3572 }
 0x6f1   : > { %v2785_v22 = vmul.f32 %v3573_v19, %v2777_v6 }
 0x6f3   : > { %v2786_v46 = vmul.f32 %v4406_v43, %v2785_v22 }
 0x6f5   : > { %v2787_v24 = vadd.f32 %v4418_v39, %v2786_v46 }
 0x6f7   : > { %v2788_v61 = vpack.c.bf16 %v2787_v24, %v2787_v24 }
 0x6f9   : > { %3386 = vmatmul.mubr.msk.bf16.vlgmr.msra.gmra.mrb[64].mxu0 %vm813_vm0, %v2788_v61 }
 0x6fa   : > { %3390 = vmatpush3.bf16.msra.mxu0 %v3526_v8  ;;  %3397 = vmatprep.mubr.msk.bf16.mxu0 %vm3674_vm1, %v3673_v38 }
 0x6fb   : > { %3391 = vmatprep.subr.bf16.mxu0 %v3673_v38 }
 0x6fe   : > { %3392 = vmatpush3.bf16.msra.mxu0 %v3527_v42 }
 0x6ff   : > { %3393 = vmatprep.subr.bf16.mxu0 %v3673_v38 }
 0x702   : > { %3394 = vmatpush3.bf16.msra.mxu0 %v3528_v26 }
 0x703   : > { %3395 = vmatprep.subr.bf16.mxu0 %v3673_v38 }
 0x706   : > { %3396 = vmatpush3.bf16.msra.mxu0 %v3529_v27 }
 0x7ac   : > { %v2673_v29 = vpop.f32.mrb[60].mxu0 }
 0x7ad   : > { %v2674_v32 = vadd.f32 %v3111_v28, %v2673_v29  ;;  %v3367_v43 = vpop.f32.mrb[61].mxu0 }
 0x7ae   : > { %v2676_v35 = vpop.f32.mrb[62].mxu0 }
 0x7af   : > { %v2679_v25 = vmax.f32 %v2674_v32, 0.0  ;;  %v3368_v44 = vpop.f32.mrb[63].mxu0 }
 0x7b1   : > { %v2680_v38 = vpack.c.bf16 %v2679_v25, %v2679_v25 }
 0x7b3   : > { %3378 = vmatmul.mubr.msk.bf16.vlgmr.msra.gmra.mrb[68].mxu1 %vm2711_vm4, %v2680_v38 }
 0x7cc   : > { %v2826_v37 = vpop.f32.mrb[64].mxu0 }
 0x7cd   : > { %v2827_v45 = vadd.f32 %v3111_v28, %v2826_v37  ;;  %v3387_v39 = vpop.f32.mrb[65].mxu0 }
 0x7ce   : > { %v2829_v47 = vpop.f32.mrb[66].mxu0 }
 0x7cf   : > { %v2832_v50 = vmax.f32 %v2827_v45, 0.0  ;;  %v3388_v53 = vpop.f32.mrb[67].mxu0 }
 0x7d1   : > { %v2833_v9 = vpack.c.bf16 %v2832_v50, %v2832_v50 }
 0x7d3   : > { %3398 = vmatmul.mubr.msk.bf16.vlgmr.msra.gmra.mrb[68].mxu0 %vm2711_vm4, %v2833_v9 }
 0x886   : > { %v2749_v12 = vpop.f32.mrb[68].mxu1 }
 0x887   : > { %v2750_v30 = vadd.f32 %v3115_v49, %v2749_v12  ;;  %v3379_v36 = vpop.f32.mrb[69].mxu1 }
 0x888   : > { %v2752_v52 = vpop.f32.mrb[70].mxu1 }
 0x889   : > { %v2755_v4 = vadd.f32 %v2750_v30, %v4421_v31  ;;  %v3380_v14 = vpop.f32.mrb[71].mxu1 }
 0x88b   : > { %2756 = vst.msk [vmem:[%s502_s20] sm:$0xff] %vm813_vm0, %v2755_v4 }
 0x88c   : > { %3589 = shalt.err (!%p3586_p3)
}
 0x88d   : > { %s3590_s20 = scalar_lea.hbm %s4493_s18, 128  ;;  %s3594_s26 = scalar_lea.hbm %s4586_s14, 256 }
 0x88e   : > { %p3591_p4 = scmp.ne.s32.totalorder %s4493_s18, %s3590_s20  ;;  %p3595_p9 = scmp.lt.u32.totalorder %s4493_s18, %s4586_s14 }
 0x88f   : > { %p3596_p10 = scmp.lt.u32.totalorder %s3594_s26, %s3590_s20  ;;  %p3598_p12 = scmp.lt.u32.totalorder %s3590_s20, %s4493_s18 }
 0x890   : > { %p3592_p7 = pnand %p3591_p4, %p3795_p5 }
 0x891   : > { %p3597_p11 = por %p3596_p10, %p3595_p9 }
 0x892   : > { %p3593_p8 = pneg %p3592_p7 }
 0x893   : > { %p3599_p13 = por %p3598_p12, %p3597_p11 }
 0x895   : > { %p3600_p0 = pnand %p3599_p13, %p3593_p8 }
 0x897   : > { %3603 = shalt.err (!%p3600_p0)
}
 0x898   : > { %3401 = dma.vmem_to_hbm [thread:$0]  (%p3795_p5), %s4495_s30, 128, %s4493_s18, %s2880_s17  }
 0x899   : > { %s4604_s0 = sshll.u32 %s4478_s24, 3  ;;  %s4605_s20 = sshll.u32 %s3778_s22, 7 }
 0x89a   : > { %s509_s25 = scalar_lea.vmem [#allocation6], %s4604_s0  ;;  %s4528_s26 = scalar_lea.hbm %s4587_s15, %s4605_s20 }
 0x89b   : > { %s2911_s27 = sshll.u32 %s509_s25, 4  ;;  %s2885_s30 = scalar_lea.sflag [#allocation7], %s4478_s24  ;;  %s4530_s27 = int_to_ptr.vmem [resolvable:$true] %s2911_s27 }
 0x89c   : > { %s3604_s18 = scalar_lea.vmem %s4530_s27, 128  ;;  %s3676_s17 = smov [#allocation6]  }
 0x89d   : > { %p3605_p1 = scmp.ne.s32.totalorder %s4530_s27, %s3604_s18  ;;  %s3608_s22 = sshll.u32 %s3676_s17, 4  ;;  %s3609_s22 = int_to_ptr.vmem [resolvable:$false] %s3608_s22 }
 0x89e   : > { %s3610_s23 = scalar_lea.vmem %s3609_s22, 256  ;;  %p3611_p4 = scmp.lt.s32.totalorder %s4530_s27, %s3609_s22 }
 0x89f   : > { %p3606_p2 = pnand %p3605_p1, %p3795_p5  ;;  %p3612_p7 = scmp.lt.s32.totalorder %s3610_s23, %s3604_s18 }
 0x8a1   : > { %p3607_p3 = pneg %p3606_p2  ;;  %p3613_p8 = por %p3612_p7, %p3611_p4 }
 0x8a3   : > { %p3614_p9 = pnand %p3613_p8, %p3607_p3 }
 0x8a6   : > { %v2871_v31 = vpop.f32.mrb[68].mxu0 }
 0x8a7   : > { %v2872_v59 = vadd.f32 %v3115_v49, %v2871_v31  ;;  %v3399_v55 = vpop.f32.mrb[69].mxu0 }
 0x8a8   : > { %v2874_v56 = vpop.f32.mrb[70].mxu0 }
 0x8a9   : > { %v2877_v33 = vadd.f32 %v2872_v59, %v4428_v63  ;;  %v3400_v57 = vpop.f32.mrb[71].mxu0 }
 0x8ab   : > { %2878 = vst.msk [vmem:[%s509_s25] sm:$0xff] %vm813_vm0, %v2877_v33 }
 0x8ac   : > { %3617 = shalt.err (!%p3614_p9)
}
 0x8ad   : > { %s3618_s24 = scalar_lea.hbm %s4528_s26, 128  ;;  %s3622_s20 = scalar_lea.hbm %s4587_s15, 256 }
 0x8ae   : > { %p3619_p10 = scmp.ne.s32.totalorder %s4528_s26, %s3618_s24  ;;  %p3623_p13 = scmp.lt.u32.totalorder %s4528_s26, %s4587_s15 }
 0x8af   : > { %p3624_p0 = scmp.lt.u32.totalorder %s3622_s20, %s3618_s24  ;;  %p3626_p2 = scmp.lt.u32.totalorder %s3618_s24, %s4528_s26 }
 0x8b0   : > { %p3620_p11 = pnand %p3619_p10, %p3795_p5 }
 0x8b1   : > { %p3625_p1 = por %p3624_p0, %p3623_p13 }
 0x8b2   : > { %p3621_p12 = pneg %p3620_p11 }
 0x8b3   : > { %p3627_p3 = por %p3626_p2, %p3625_p1 }
 0x8b5   : > { %p3628_p4 = pnand %p3627_p3, %p3621_p12 }
 0x8b7   : > { %3631 = shalt.err (!%p3628_p4)
}
 0x8b8   : > { %3402 = dma.vmem_to_hbm [thread:$0]  (%p3795_p5), %s4530_s27, 128, %s4528_s26, %s2885_s30  }
 0x8b9 PF: > { %s4606_s18 = sld [smem:[#allocation10_spill]]  ;;  %p3412_p7 = scmp.ge.s32.totalorder %s3670_s21, 2 }
 0x8bb   : > { %p3406_p8 = pnand %p3412_p7, %p3799_p6 }
 0x8bf   : > { %s2923_s22 = sand.u32 1, %s4606_s18  }
 0x8c0   : > { %s2924_s23 = scalar_lea.sflag [#allocation5], %s2923_s22 }
 0x8c1   : > { %3649 = dma.done.wait (!%p3406_p8), %s2924_s23, 128  }
 0x8c2   : > { %3651 = vsyncadd (!%p3406_p8), %s2924_s23, 4294967168  ;;  %s2933_s24 = scalar_lea.sflag [#allocation7], %s2923_s22 }
 0x8c3   : > { %3653 = dma.done.wait (!%p3406_p8), %s2933_s24, 128  }
 0x8c4   : > { %3655 = vsyncadd (!%p3406_p8), %s2933_s24, 4294967168  ;;  %s4608_s21 = sld [smem:[#allocation12_spill]]  ;;  %s4609_s28 = sld [smem:[#allocation11_spill]] }
 0x8c5   : > { %s4610_s20 = sld [smem:[#allocation13_spill]]  ;;  %s4611_s18 = smov %s3662_s19 }
 0x8ca   : > { %p29_p5 = scmp.ge.s32.totalorder %s4608_s21, 4   ;;  %s4612_s19 = smov %s4609_s28 }
 0x8cc   :  { %31 = sbr.rel (!%p29_p5) target bundleno = 7 (0x7), region = 131 }
 0x8d3   :  { %2938 = vsyncpa [#allocation5], 1 }
 0x8d4   :  { %2940 = vsyncpa [#allocation5 + $0x1], 1 }
 0x8d5   :  { %2941 = vsyncpa [#allocation7], 1 }
 0x8d6   :  { %2943 = vsyncpa [#allocation7 + $0x1], 1 }

// kernel: tpu_custom_call.1
= control target key start
LH: loop header
LB: loop body
LE: loop exit
PB: predicated region body
PF: predicated region fallthrough
CT: control target
= control target key end

     0   :  { %s4572_s0 = inlined_call_operand.vmem [shape: f32[2,8,32], index: 0, kind: input, shape index: {}]   ;;  %s4573_s1 = inlined_call_operand.vmem [shape: f32[2,8,32], index: 1, kind: input, shape index: {}]   ;;  %s4574_s2 = inlined_call_operand.vmem [shape: bf16[32,1536], index: 2, kind: input, shape index: {}]   ;;  %s4575_s3 = inlined_call_operand.vmem [shape: f32[1,1536], index: 3, kind: input, shape index: {}]   ;;  %s4576_s4 = inlined_call_operand.vmem [shape: bf16[512,32], index: 4, kind: input, shape index: {}]   ;;  %s4577_s5 = inlined_call_operand.vmem [shape: f32[1,32], index: 5, kind: input, shape index: {}]   ;;  %s4578_s6 = inlined_call_operand.vmem [shape: f32[1,32], index: 6, kind: input, shape index: {}]   ;;  %s4579_s7 = inlined_call_operand.vmem [shape: f32[1,32], index: 7, kind: input, shape index: {}]   ;;  %s4580_s8 = inlined_call_operand.vmem [shape: f32[1,32], index: 8, kind: input, shape index: {}]   ;;  %s4581_s9 = inlined_call_operand.vmem [shape: f32[1,32], index: 9, kind: input, shape index: {}]   ;;  %s4582_s10 = inlined_call_operand.vmem [shape: bf16[32,64], index: 10, kind: input, shape index: {}]   ;;  %s4583_s11 = inlined_call_operand.vmem [shape: f32[1,64], index: 11, kind: input, shape index: {}]   ;;  %s4584_s12 = inlined_call_operand.vmem [shape: bf16[64,32], index: 12, kind: input, shape index: {}]   ;;  %s4585_s13 = inlined_call_operand.vmem [shape: f32[1,32], index: 13, kind: input, shape index: {}]   ;;  %s4586_s14 = inlined_call_operand.hbm [shape: f32[2,8,32], index: 14, kind: output, shape index: {0}]   ;;  %s4587_s15 = inlined_call_operand.hbm [shape: f32[2,8,32], index: 15, kind: output, shape index: {1}]  }
   0x1   :  { %4595 = sst [smem:[#allocation15_spill]] %s4572_s0 }
   0x2   :  { %21 = vsyncpa [#allocation5], 0 }
   0x3   :  { %23 = vsyncpa [#allocation5 + $0x1], 0 }
   0x4   :  { %24 = vsyncpa [#allocation7], 0 }
   0x5   :  { %26 = vsyncpa [#allocation7 + $0x1], 0  ;;  %s3757_s18 = smov 0   ;;  %s3759_s19 = smov 0  }
   0x6   :  { %s3761_s20 = smov 0   ;;  %s3763_s21 = smov 0  }
   0x7 LB: > { %4596 = sst [smem:[#allocation10_spill]] %s3658_s18  ;;  %s3778_s22 = sadd.s32 4294967295, %s3670_s21   ;;  %s3670_s21 = sphi %s3763_s21, %s4608_s21   ;;  %s3666_s20 = sphi %s3761_s20, %s4610_s20   ;;  %s3662_s19 = sphi %s3759_s19, %s4612_s19   ;;  %s3658_s18 = sphi %s3757_s18, %s4611_s18  }
   0x8   : > { %4597 = sst [smem:[#allocation11_spill]] %s3666_s20  ;;  %s3014_s23 = sadd.s32 4294967294, %s3670_s21  }
   0x9   : > { %s3782_s24 = sadd.s32 1, %s3670_s21   ;;  %s343_s25 = sadd.s32 1, %s3666_s20 }
   0xa   : > { %4598 = sst [smem:[#allocation12_spill]] %s3782_s24  ;;  %s340_s26 = ssub.s32 %s3670_s21, %s3782_s24 }
   0xb   : > { %p353_p0 = scmp.ne.s32.totalorder %s3666_s20, %s3662_s19  ;;  %p341_p1 = scmp.eq.s32.totalorder %s340_s26, 0 }
   0xc   : > { %p354_p2 = scmp.eq.s32.totalorder %s3778_s22, 1  ;;  %p359_p3 = scmp.ne.s32.totalorder %s3662_s19, %s3658_s18 }
   0xd   : > { %p360_p4 = scmp.eq.s32.totalorder %s3014_s23, 1  ;;  %p3017_p7 = scmp.ge.s32.totalorder %s3670_s21, 1 }
   0xe   : > { %s3793_s27 = scalar_select %p341_p1, %s3666_s20, %s343_s25  }
   0xf   : > { %p3795_p5 = por %p354_p2, %p353_p0  ;;  %p3799_p6 = por %p360_p4, %p359_p3 }
  0x10   : > { %4599 = sst [smem:[#allocation13_spill]] %s3793_s27  ;;  %p454_p8 = scmp.lt.s32.totalorder %s3670_s21, 3 }
  0x11   : > { %s4601_s29 = scalar_select %p3799_p6, 1, 0 }
  0x12   : > { %p455_p9 = pnand %p3017_p7, %p454_p8 }
  0x13   : > { %4602 = sst [smem:[#allocation14_spill]] %s4601_s29  ;;  %v3448_v0 = vld [vmem:[%s4574_s2 + $0x4] ss:$48 sps:$4 sm:$0xff] (!%p455_p9)   ;;  %p510_p10 = scmp.lt.s32.totalorder (!%p455_p9), %s3778_s22, 1  ;;  %v3672_v2 = vmov (!%p455_p9), 0   ;;  %vm813_vm0 = vcmask (!%p455_p9), 261120   ;;  %v633_v29 = vlaneseq (!%p455_p9) }
  0x14   : > { %458 = sbr.rel (%p455_p9) target bundleno = 2233 (0x8b9), region = 76  ;;  %v3812_v1 = vld [vmem:[%s4574_s2 + $0x14] ss:$48 sps:$4 sm:$0xff] (!%p455_p9)   ;;  %849 = vmatprep.mubr.bf16.mxu1 (!%p455_p9), %v3672_v2  ;;  %931 = vmatprep.mubr.bf16.mxu0 (!%p455_p9), %v3672_v2  ;;  %v3452_v3 = vld [vmem:[%s4574_s2] ss:$48 sps:$4 sm:$0xff] (!%p455_p9)   ;;  %s4603_s0 = sld [smem:[#allocation15_spill]] (!%p455_p9) }
  0x15   : > { %817 = vmatprep.subr.bf16.mxu1 (!%p455_p9), %v3448_v0  ;;  %v3822_v4 = vld [vmem:[%s4574_s2 + $0x10] ss:$48 sps:$4 sm:$0xff] (!%p455_p9)   ;;  %899 = vmatprep.subr.bf16.mxu0 (!%p455_p9), %v3812_v1  ;;  %v3454_v5 = vld [vmem:[%s4574_s2 + $0x64] ss:$48 sps:$4 sm:$0xff] (!%p455_p9)   ;;  %v3853_v10 = vld [vmem:[%s4574_s2 + $0x8] ss:$48 sps:$4 sm:$0xff] (!%p455_p9)  }
  0x16   : > { %818 = vmatpush1.bf16.msra.mxu1 (!%p455_p9), %v3452_v3  ;;  %900 = vmatpush1.bf16.msra.mxu0 (!%p455_p9), %v3822_v4  ;;  %v3456_v6 = vld [vmem:[%s4574_s2 + $0x74] ss:$48 sps:$4 sm:$0xff] (!%p455_p9)   ;;  %v3458_v7 = vld [vmem:[%s4574_s2 + $0x60] ss:$48 sps:$4 sm:$0xff] (!%p455_p9)   ;;  %v3462_v11 = vld [vmem:[%s4574_s2 + $0xc] ss:$48 sps:$4 sm:$0xff] (!%p455_p9)  }
  0x17   : > { %819 = vmatprep.subr.bf16.mxu1 (!%p455_p9), %v3454_v5  ;;  %v3459_v8 = vld [vmem:[%s4574_s2 + $0x70] ss:$48 sps:$4 sm:$0xff] (!%p455_p9)   ;;  %901 = vmatprep.subr.bf16.mxu0 (!%p455_p9), %v3456_v6  ;;  %v3465_v14 = vld [vmem:[%s4574_s2 + $0x24] ss:$48 sps:$4 sm:$0xff] (!%p455_p9)   ;;  %v3468_v15 = vld [vmem:[%s4574_s2 + $0x6c] ss:$48 sps:$4 sm:$0xff] (!%p455_p9)  }
  0x18   : > { %v3463_v13 = vld [vmem:[%s4574_s2 + $0x20] ss:$48 sps:$4 sm:$0xff] (!%p455_p9)   ;;  %v3471_v16 = vld [vmem:[%s4574_s2 + $0x84] ss:$48 sps:$4 sm:$0xff] (!%p455_p9)   ;;  %v3466_v17 = vld [vmem:[%s4574_s2 + $0x68] ss:$48 sps:$4 sm:$0xff] (!%p455_p9)  }
  0x19   : > { %v3469_v18 = vld [vmem:[%s4574_s2 + $0x80] ss:$48 sps:$4 sm:$0xff] (!%p455_p9)   ;;  %v3474_v19 = vld [vmem:[%s4574_s2 + $0x1c] ss:$48 sps:$4 sm:$0xff] (!%p455_p9)   ;;  %v3472_v20 = vld [vmem:[%s4574_s2 + $0x18] ss:$48 sps:$4 sm:$0xff] (!%p455_p9)  }
  0x1a   : > { %820 = vmatpush1.bf16.msra.mxu1 (!%p455_p9), %v3458_v7  ;;  %902 = vmatpush1.bf16.msra.mxu0 (!%p455_p9), %v3459_v8  ;;  %v3477_v21 = vld [vmem:[%s4574_s2 + $0x7c] ss:$48 sps:$4 sm:$0xff] (!%p455_p9)   ;;  %v3475_v22 = vld [vmem:[%s4574_s2 + $0x78] ss:$48 sps:$4 sm:$0xff] (!%p455_p9)   ;;  %v3938_v30 = vshrl.u32 (!%p455_p9), %v633_v29, 7  ;;  %v3673_v38 = vmov (!%p455_p9), 0.0  }
  0x1b   : > { %s3825_s27 = scalar_select %p510_p10, %s3778_s22, 1  ;;  %858 = vmatprep.subr.bf16.mxu1 %v3462_v11  ;;  %981 = vmatprep.subr.bf16.mxu0 %v3465_v14  ;;  %v3480_v24 = vld [vmem:[%s4574_s2 + $0x2c] ss:$48 sps:$4 sm:$0xff]   ;;  %v3478_v25 = vld [vmem:[%s4574_s2 + $0x28] ss:$48 sps:$4 sm:$0xff]   ;;  %vm3674_vm1 = vmmov 0  }
  0x1c   : > { %v3483_v27 = vld [vmem:[%s4574_s2 + $0x8c] ss:$48 sps:$4 sm:$0xff]   ;;  %v3481_v28 = vld [vmem:[%s4574_s2 + $0x88] ss:$48 sps:$4 sm:$0xff]   ;;  %v639_v31 = vsub.s32 1, %v3938_v30  ;;  %v643_v34 = vsub.s32 2, %v3938_v30 }
  0x1d   : > { %s3020_s20 = sshll.u32 %s3825_s27, 3  ;;  %v546_v32 = vld [vmem:[%s4575_s3 + $0x8] sm:$0xf]  ;;  %v647_v36 = vsub.s32 3, %v3938_v30  ;;  %v635_v45 = vsub.s32 0, %v3938_v30  ;;  %vm1391_vm2 = vcmask 1043456  }
  0x1e   : > { %s3847_s18 = scalar_lea.vmem %s4603_s0, %s3020_s20  ;;  %s3889_s24 = scalar_lea.vmem %s4573_s1, %s3020_s20  ;;  %v3946_v33 = vrot.slane %v546_v32, %v639_v31  ;;  %v3951_v35 = vrot.slane %v546_v32, %v643_v34  ;;  %vm1377_vm3 = vcmask 64512   ;;  %vm2711_vm4 = vcmask 523264  }
  0x1f   : > { %v519_v9 = vld [vmem:[%s3847_s18] sm:$0xff]  ;;  %v3956_v37 = vrot.slane %v546_v32, %v647_v36  ;;  %v668_v48 = vrot.slane %v546_v32, %v635_v45  ;;  %v659_v32 = vsub.s32 6, %v3938_v30  ;;  %s4594_s27 = sshll.u32 %s3778_s22, 7  ;;  %s3675_s26 = smov [#allocation4]  }
  0x20   : > { %v630_v12 = vpack.c.bf16 %v519_v9, %v519_v9  ;;  %v3901_v23 = vld [vmem:[%s3889_s24] sm:$0xff] }
  0x21   : > { %v1075_v26 = vpack.c.bf16 %v3901_v23, %v3901_v23 }
  0x22   : > { %3046 = vmatmul.mubr.msk.bf16.vlgmr.msra.gmra.mrb[0].mxu1 %vm813_vm0, %v630_v12  ;;  %3048 = vmatmul.mubr.msk.bf16.vlgmr.msra.gmra.mrb[0].mxu0 %vm813_vm0, %v630_v12 }
  0x23   : > { %859 = vmatpush1.bf16.msra.mxu1 %v3853_v10  ;;  %982 = vmatpush1.bf16.msra.mxu0 %v3463_v13 }
  0x24   : > { %860 = vmatprep.subr.bf16.mxu1 %v3468_v15  ;;  %983 = vmatprep.subr.bf16.mxu0 %v3471_v16 }
  0x25   : > { %890 = vmatprep.mubr.bf16.mxu1 %v3672_v2  ;;  %1013 = vmatprep.mubr.bf16.mxu0 %v3672_v2 }
  0x27   : > { %861 = vmatpush1.bf16.msra.mxu1 %v3466_v17  ;;  %984 = vmatpush1.bf16.msra.mxu0 %v3469_v18 }
  0x28   : > { %940 = vmatprep.subr.bf16.mxu1 %v3474_v19  ;;  %1079 = vmatprep.subr.bf16.mxu0 %v3448_v0 }
  0x2a   : > { %3047 = vmatmul.mubr.msk.bf16.vlgmr.msra.gmra.mrb[4].mxu1 %vm813_vm0, %v630_v12  ;;  %3050 = vmatmul.mubr.msk.bf16.vlgmr.msra.gmra.mrb[4].mxu0 %vm813_vm0, %v630_v12 }
  0x2b   : > { %941 = vmatpush1.bf16.msra.mxu1 %v3472_v20  ;;  %1080 = vmatpush1.bf16.msra.mxu0 %v3452_v3 }
  0x2c   : > { %942 = vmatprep.subr.bf16.mxu1 %v3477_v21  ;;  %1081 = vmatprep.subr.bf16.mxu0 %v3454_v5 }
  0x2d   : > { %972 = vmatprep.mubr.bf16.mxu1 %v3672_v2  ;;  %1111 = vmatprep.mubr.bf16.mxu0 %v3672_v2 }
  0x2f   : > { %943 = vmatpush1.bf16.msra.mxu1 %v3475_v22  ;;  %1082 = vmatpush1.bf16.msra.mxu0 %v3458_v7 }
  0x30   : > { %1022 = vmatprep.subr.bf16.mxu1 %v3480_v24  ;;  %1161 = vmatprep.subr.bf16.mxu0 %v3812_v1  ;;  %v651_v1 = vsub.s32 4, %v3938_v30 }
  0x32   : > { %3049 = vmatmul.mubr.msk.bf16.vlgmr.msra.gmra.mrb[8].mxu1 %vm813_vm0, %v630_v12  ;;  %3052 = vmatmul.mubr.msk.bf16.vlgmr.msra.gmra.mrb[8].mxu0 %vm813_vm0, %v1075_v26 }
  0x33   : > { %1023 = vmatpush1.bf16.msra.mxu1 %v3478_v25  ;;  %1162 = vmatpush1.bf16.msra.mxu0 %v3822_v4  ;;  %v3992_v4 = vld [vmem:[%s4575_s3] sm:$0xff] }
  0x34   : > { %1024 = vmatprep.subr.bf16.mxu1 %v3483_v27  ;;  %1163 = vmatprep.subr.bf16.mxu0 %v3456_v6  ;;  %v3995_v5 = vrot.slane %v3992_v4, %v651_v1 }
  0x35   : > { %1054 = vmatprep.mubr.bf16.mxu1 %v3672_v2  ;;  %1193 = vmatprep.mubr.bf16.mxu0 %v3672_v2 }
  0x37   : > { %1025 = vmatpush1.bf16.msra.mxu1 %v3481_v28  ;;  %1164 = vmatpush1.bf16.msra.mxu0 %v3459_v8  ;;  %v655_v8 = vsub.s32 5, %v3938_v30 }
  0x38   : > { %1120 = vmatprep.subr.bf16.mxu1 %v3462_v11  ;;  %1243 = vmatprep.subr.bf16.mxu0 %v3465_v14 }
  0x3a   : > { %3051 = vmatmul.mubr.msk.bf16.vlgmr.msra.gmra.mrb[12].mxu1 %vm813_vm0, %v630_v12  ;;  %3054 = vmatmul.mubr.msk.bf16.vlgmr.msra.gmra.mrb[12].mxu0 %vm813_vm0, %v1075_v26 }
  0x3b   : > { %1121 = vmatpush1.bf16.msra.mxu1 %v3853_v10  ;;  %1152 = vmatprep.mubr.bf16.mxu1 %v3672_v2 }
  0x3c   : > { %1122 = vmatprep.subr.bf16.mxu1 %v3468_v15  ;;  %1244 = vmatpush1.bf16.msra.mxu0 %v3463_v13  ;;  %v4003_v13 = vrot.slane %v3992_v4, %v635_v45 }
  0x3d   : > { %1245 = vmatprep.subr.bf16.mxu0 %v3471_v16  ;;  %1275 = vmatprep.mubr.bf16.mxu0 %v3672_v2 }
  0x3f   : > { %1123 = vmatpush1.bf16.msra.mxu1 %v3466_v17 }
  0x40   : > { %1202 = vmatprep.subr.bf16.mxu1 %v3474_v19  ;;  %1246 = vmatpush1.bf16.msra.mxu0 %v3469_v18 }
  0x41   : > { %3265 = vmatprep.subr.bf16.mxu0 %v3673_v38 }
  0x42   : > { %3053 = vmatmul.mubr.msk.bf16.vlgmr.msra.gmra.mrb[16].mxu1 %vm813_vm0, %v1075_v26 }
  0x43   : > { %1203 = vmatpush1.bf16.msra.mxu1 %v3472_v20  ;;  %1234 = vmatprep.mubr.bf16.mxu1 %v3672_v2  ;;  %v656_v20 = vrot.slane %v3992_v4, %v655_v8 }
  0x44   : > { %1204 = vmatprep.subr.bf16.mxu1 %v3477_v21  ;;  %3056 = vmatmul.mubr.msk.bf16.vlgmr.msra.gmra.mrb[16].mxu0 %vm813_vm0, %v1075_v26 }
  0x45   : > { %3267 = vmatprep.mubr.msk.bf16.mxu0 %vm3674_vm1, %v3673_v38 }
  0x47   : > { %1205 = vmatpush1.bf16.msra.mxu1 %v3475_v22 }
  0x48   : > { %1284 = vmatprep.subr.bf16.mxu1 %v3480_v24 }
  0x4a   : > { %3055 = vmatmul.mubr.msk.bf16.vlgmr.msra.gmra.mrb[20].mxu1 %vm813_vm0, %v1075_v26 }
  0x4b   : > { %1285 = vmatpush1.bf16.msra.mxu1 %v3478_v25  ;;  %1316 = vmatprep.mubr.bf16.mxu1 %v3672_v2 }
  0x4c   : > { %1286 = vmatprep.subr.bf16.mxu1 %v3483_v27  ;;  %v640_v27 = vrot.slane %v3992_v4, %v639_v31 }
  0x4f   : > { %1287 = vmatpush1.bf16.msra.mxu1 %v3481_v28 }
  0x50   : > { %3271 = vmatprep.subr.bf16.mxu1 %v3673_v38 }
  0x52   : > { %3057 = vmatmul.mubr.msk.bf16.vlgmr.msra.gmra.mrb[24].mxu1 %vm813_vm0, %v1075_v26 }
  0x53   : > { %3273 = vmatprep.mubr.msk.bf16.mxu1 %vm3674_vm1, %v3673_v38 }
  0xf5   : > { %v851_v39 = vpop.f32.mrb[0].mxu1  ;;  %v3964_v40 = vpop.f32.mrb[0].mxu0 }
  0xf6   : > { %v3966_v41 = vpop.f32.mrb[1].mxu1  ;;  %v3968_v42 = vpop.f32.mrb[1].mxu0  ;;  %v852_v21 = vadd.f32 %v851_v39, %v4003_v13 }
  0xf7   : > { %v855_v43 = vpop.f32.mrb[2].mxu1  ;;  %v937_v44 = vpop.f32.mrb[2].mxu0  ;;  %v854_v31 = vadd.f32 %v3966_v41, %v640_v27  ;;  %v644_v41 = vrot.slane %v3992_v4, %v643_v34  ;;  %v648_v34 = vrot.slane %v3992_v4, %v647_v36  ;;  %v936_v36 = vadd.f32 %v3968_v42, %v656_v20 }
  0xf8   : > { %v856_v46 = vpop.f32.mrb[3].mxu1  ;;  %v938_v47 = vpop.f32.mrb[3].mxu0  ;;  %v1063_v26 = vpack.c.bf16 %v852_v21, %v852_v21 }
  0xfd   : > { %v3971_v49 = vpop.f32.mrb[4].mxu1  ;;  %v1015_v50 = vpop.f32.mrb[4].mxu0 }
  0xfe   : > { %v3973_v51 = vadd.f32 %v1015_v50, %v668_v48  ;;  %v3975_v52 = vpop.f32.mrb[5].mxu1  ;;  %v1017_v53 = vpop.f32.mrb[5].mxu0 }
  0xff   : > { %v3978_v54 = vadd.f32 %v1017_v53, %v3946_v33  ;;  %v896_v55 = vpop.f32.mrb[6].mxu1  ;;  %v1019_v56 = vpop.f32.mrb[6].mxu0 }
 0x100   : > { %v897_v57 = vpop.f32.mrb[7].mxu1  ;;  %v1020_v58 = vpop.f32.mrb[7].mxu0  ;;  %v660_v55 = vrot.slane %v3992_v4, %v659_v32 }
 0x105   : > { %v3980_v59 = vpop.f32.mrb[8].mxu1  ;;  %v3982_v60 = vpop.f32.mrb[8].mxu0 }
 0x106   : > { %v3984_v61 = vpop.f32.mrb[9].mxu1  ;;  %v3986_v62 = vpop.f32.mrb[9].mxu0 }
 0x107   : > { %v978_v63 = vpop.f32.mrb[10].mxu1  ;;  %v1117_v0 = vpop.f32.mrb[10].mxu0 }
 0x108   : > { %v979_v2 = vpop.f32.mrb[11].mxu1  ;;  %v1118_v3 = vpop.f32.mrb[11].mxu0  ;;  %v1064_v63 = vpack.c.bf16 %v854_v31, %v854_v31 }
 0x10d   : > { %v1056_v6 = vpop.f32.mrb[12].mxu1  ;;  %v1195_v7 = vpop.f32.mrb[12].mxu0 }
 0x10e   : > { %v3999_v9 = vadd.f32 %v1056_v6, %v3951_v35  ;;  %v1196_v10 = vadd.f32 %v1195_v7, %v3995_v5  ;;  %v1058_v11 = vpop.f32.mrb[13].mxu1  ;;  %v1197_v12 = vpop.f32.mrb[13].mxu0  ;;  %v893_v6 = vadd.f32 %v3971_v49, %v644_v41  ;;  %v934_v49 = vadd.f32 %v3964_v40, %v3995_v5 }
 0x10f   : > { %v4006_v14 = vadd.f32 %v1058_v11, %v3956_v37  ;;  %v1060_v15 = vpop.f32.mrb[14].mxu1  ;;  %v1199_v16 = vpop.f32.mrb[14].mxu0  ;;  %v1198_v22 = vadd.f32 %v1197_v12, %v656_v20  ;;  %v895_v11 = vadd.f32 %v3975_v52, %v648_v34  ;;  %v1116_v40 = vadd.f32 %v3986_v62, %v640_v27 }
 0x110   : > { %v1329_v17 = vpack.c.bf16 %v1196_v10, %v1196_v10  ;;  %v1061_v18 = vpop.f32.mrb[15].mxu1  ;;  %v1200_v19 = vpop.f32.mrb[15].mxu0  ;;  %v1065_v8 = vpack.c.bf16 %v893_v6, %v893_v6  ;;  %v1067_v15 = vpack.c.bf16 %v934_v49, %v934_v49  ;;  %v975_v5 = vadd.f32 %v3980_v59, %v660_v55 }
 0x111   : > { %v1330_v43 = vpack.c.bf16 %v1198_v22, %v1198_v22  ;;  %v1066_v12 = vpack.c.bf16 %v895_v11, %v895_v11  ;;  %v1326_v16 = vpack.c.bf16 %v1116_v40, %v1116_v40 }
 0x112   : > { %3266 = vmatpush3.bf16.xpose.msra.mxu0 %v1329_v17  ;;  %v1069_v17 = vpack.c.bf16 %v975_v5, %v975_v5 }
 0x113   : > { %3277 = vmatprep.subr.bf16.mxu0 %v3673_v38 }
 0x115   : > { %v4011_v24 = vpop.f32.mrb[16].mxu1 }
 0x116   : > { %v4013_v25 = vpop.f32.mrb[17].mxu1  ;;  %v1155_v42 = vadd.f32 %v4011_v24, %v644_v41 }
 0x117   : > { %v1158_v28 = vpop.f32.mrb[18].mxu1  ;;  %v1277_v29 = vpop.f32.mrb[16].mxu0  ;;  %v1157_v59 = vadd.f32 %v4013_v25, %v648_v34 }
 0x118   : > { %v1159_v44 = vpop.f32.mrb[19].mxu1  ;;  %v1278_v45 = vadd.f32 %v1277_v29, %v668_v48  ;;  %v1279_v39 = vpop.f32.mrb[17].mxu0 }
 0x119   : > { %3268 = vmatmul.mubr.bf16.vlgmr.msra.gmra.mrb[20].mxu0 %v1063_v26  ;;  %v4020_v46 = vadd.f32 %v1279_v39, %v3946_v33  ;;  %v1281_v47 = vpop.f32.mrb[18].mxu0  ;;  %v663_v33 = vsub.s32 7, %v3938_v30  ;;  %v1114_v30 = vadd.f32 %v3982_v60, %v4003_v13  ;;  %v1327_v13 = vpack.c.bf16 %v1155_v42, %v1155_v42 }
 0x11a   : > { %3278 = vmatpush3.bf16.xpose.msra.mxu0 %v1330_v43  ;;  %3279 = vmatprep.mubr.msk.bf16.mxu0 %vm3674_vm1, %v3673_v38  ;;  %v1333_v50 = vpack.c.bf16 %v1278_v45, %v1278_v45  ;;  %v1282_v53 = vpop.f32.mrb[19].mxu0  ;;  %v1328_v62 = vpack.c.bf16 %v1157_v59, %v1157_v59 }
 0x11b   : > { %3289 = vmatprep.subr.bf16.mxu0 %v3673_v38  ;;  %v664_v3 = vrot.slane %v3992_v4, %v663_v33  ;;  %v1325_v52 = vpack.c.bf16 %v1114_v30, %v1114_v30  ;;  %v1068_v4 = vpack.c.bf16 %v936_v36, %v936_v36 }
 0x11c   : > { %v1393_v48 = vsel %vm1391_vm2, %v1333_v50, 0 }
 0x11d   : > { %v1236_v56 = vpop.f32.mrb[20].mxu1  ;;  %3272 = vmatpush3.bf16.msra.mxu1 %v1393_v48  ;;  %v977_v60 = vadd.f32 %v3984_v61, %v664_v3 }
 0x11e   : > { %v1237_v57 = vadd.f32 %v1236_v56, %v660_v55  ;;  %v1238_v58 = vpop.f32.mrb[21].mxu1  ;;  %3283 = vmatprep.subr.bf16.mxu1 %v3673_v38 }
 0x11f   : > { %v1240_v0 = vpop.f32.mrb[22].mxu1  ;;  %v1239_v7 = vadd.f32 %v1238_v58, %v664_v3  ;;  %v1070_v18 = vpack.c.bf16 %v977_v60, %v977_v60  ;;  %v1334_v60 = vpack.c.bf16 %v4020_v46, %v4020_v46 }
 0x120   : > { %v1331_v1 = vpack.c.bf16 %v1237_v57, %v1237_v57  ;;  %v1241_v2 = vpop.f32.mrb[23].mxu1 }
 0x121   : > { %3280 = vmatmul.mubr.bf16.vlgmr.msra.gmra.mrb[24].mxu0 %v1064_v63  ;;  %v1332_v10 = vpack.c.bf16 %v1239_v7, %v1239_v7 }
 0x122   : > { %3290 = vmatpush3.bf16.xpose.msra.mxu0 %v1331_v1  ;;  %3291 = vmatprep.mubr.msk.bf16.mxu0 %vm3674_vm1, %v3673_v38 }
 0x123   : > { %3301 = vmatprep.subr.bf16.mxu0 %v3673_v38 }
 0x125   : > { %v1318_v58 = vpop.f32.mrb[24].mxu1 }
 0x126   : > { %v1319_v63 = vadd.f32 %v1318_v58, %v3951_v35  ;;  %v1320_v41 = vpop.f32.mrb[25].mxu1 }
 0x127   : > { %v4079_v0 = vadd.f32 %v1320_v41, %v3956_v37  ;;  %v1322_v1 = vpop.f32.mrb[26].mxu1 }
 0x128   : > { %v1323_v2 = vpop.f32.mrb[27].mxu1 }
 0x129   : > { %3292 = vmatmul.mubr.bf16.vlgmr.msra.gmra.mrb[28].mxu0 %v1065_v8 }
 0x12a   : > { %3302 = vmatpush3.bf16.xpose.msra.mxu0 %v1332_v10  ;;  %3303 = vmatprep.mubr.msk.bf16.mxu0 %vm3674_vm1, %v3673_v38 }
 0x12b   : > { %3313 = vmatprep.subr.bf16.mxu0 %v3673_v38 }
 0x131   : > { %3304 = vmatmul.mubr.bf16.vlgmr.msra.gmra.mrb[32].mxu0 %v1066_v12 }
 0x132   : > { %3314 = vmatpush3.bf16.xpose.msra.mxu0 %v1067_v15  ;;  %3315 = vmatprep.mubr.msk.bf16.mxu0 %vm3674_vm1, %v3673_v38 }
 0x133   : > { %3325 = vmatprep.subr.bf16.mxu0 %v3673_v38 }
 0x139   : > { %3316 = vmatmul.mubr.bf16.vlgmr.msra.gmra.mrb[36].mxu0 %v1325_v52 }
 0x13a   : > { %3326 = vmatpush3.bf16.xpose.msra.mxu0 %v1068_v4  ;;  %3327 = vmatprep.mubr.msk.bf16.mxu0 %vm3674_vm1, %v3673_v38 }
 0x13b   : > { %3337 = vmatprep.subr.bf16.mxu0 %v3673_v38 }
 0x141   : > { %3328 = vmatmul.mubr.bf16.vlgmr.msra.gmra.mrb[40].mxu0 %v1326_v16 }
 0x142   : > { %3338 = vmatpush3.bf16.xpose.msra.mxu0 %v1069_v17  ;;  %3339 = vmatprep.mubr.msk.bf16.mxu0 %vm3674_vm1, %v3673_v38 }
 0x143   : > { %3349 = vmatprep.subr.bf16.mxu0 %v3673_v38 }
 0x149   : > { %3340 = vmatmul.mubr.bf16.vlgmr.msra.gmra.mrb[44].mxu0 %v1327_v13 }
 0x14a   : > { %3350 = vmatpush3.bf16.xpose.msra.mxu0 %v1070_v18  ;;  %3351 = vmatprep.mubr.msk.bf16.mxu0 %vm3674_vm1, %v3673_v38 }
 0x151   : > { %3352 = vmatmul.mubr.bf16.vlgmr.msra.gmra.mrb[48].mxu0 %v1328_v62 }
 0x1ec   : > { %v1371_v19 = vpop.f32.mrb[20].mxu0 }
 0x1ed   : > { %v3269_v20 = vpop.f32.mrb[21].mxu0  ;;  %v1378_v21 = vsel %vm1377_vm3, %v1371_v19, -inf }
 0x1ee   : > { %1379 = vmax.xlane.f32.xlu0 %v1378_v21  ;;  %v1374_v22 = vpop.f32.mrb[22].mxu0  ;;  %v1493_v21 = vsel %vm1391_vm2, %v1334_v60, 0  ;;  %v4189_v60 = vld [vmem:[%s4576_s4 + $0x58] sm:$0xff]  }
 0x1ef   : > { %v3270_v24 = vpop.f32.mrb[23].mxu0  ;;  %v1335_v22 = vpack.c.bf16 %v1319_v63, %v1319_v63 }
 0x1f1   : > { %v1593_v24 = vsel %vm1391_vm2, %v1335_v22, 0  ;;  %v4232_v22 = vld [vmem:[%s4576_s4 + $0x28] sm:$0xff]  }
 0x1f4   : > { %v1473_v61 = vpop.f32.mrb[24].mxu0 }
 0x1f5   : > { %v3281_v26 = vpop.f32.mrb[25].mxu0  ;;  %v1479_v27 = vsel %vm1377_vm3, %v1473_v61, -inf }
 0x1f6   : > { %1480 = vmax.xlane.f32.xlu0 %v1479_v27  ;;  %v1476_v28 = vpop.f32.mrb[26].mxu0 }
 0x1f7   : > { %v3282_v29 = vpop.f32.mrb[27].mxu0 }
 0x1fc   : > { %v1573_v32 = vpop.f32.mrb[28].mxu0 }
 0x1fd   : > { %v3293_v43 = vpop.f32.mrb[29].mxu0  ;;  %v1579_v25 = vsel %vm1377_vm3, %v1573_v32, -inf }
 0x1fe   : > { %1580 = vmax.xlane.f32.xlu1 %v1579_v25  ;;  %v1576_v44 = vpop.f32.mrb[30].mxu0 }
 0x1ff   : > { %v3294_v45 = vpop.f32.mrb[31].mxu0 }
 0x204   : > { %v4069_v39 = vpop.f32.mrb[32].mxu0 }
 0x205   : > { %v3305_v47 = vpop.f32.mrb[33].mxu0  ;;  %v1679_v50 = vsel %vm1377_vm3, %v4069_v39, -inf }
 0x206   : > { %1680 = vmax.xlane.f32.xlu1 %v1679_v50  ;;  %v1676_v53 = vpop.f32.mrb[34].mxu0 }
 0x207   : > { %v3306_v31 = vpop.f32.mrb[35].mxu0  ;;  %v1071_v53 = vpack.c.bf16 %v3973_v51, %v3973_v51  ;;  %v1072_v51 = vpack.c.bf16 %v3978_v54, %v3978_v54  ;;  %v1073_v54 = vpack.c.bf16 %v3999_v9, %v3999_v9  ;;  %v1074_v9 = vpack.c.bf16 %v4006_v14, %v4006_v14  ;;  %v3484_v14 = vld [vmem:[%s4576_s4 + $0x40] sm:$0xff]  }
 0x208   : > { %3161 = vmatprep.subr.bf16.mxu0 %v3484_v14 }
 0x20c   : > { %v4073_v55 = vpop.f32.mrb[36].mxu0 }
 0x20d   : > { %v3317_v48 = vpop.f32.mrb[37].mxu0  ;;  %v1779_v56 = vsel %vm1377_vm3, %v4073_v55, -inf }
 0x20e   : > { %1780 = vmax.xlane.f32.xlu0 %v1779_v56  ;;  %v1776_v33 = vpop.f32.mrb[38].mxu0 }
 0x20f   : > { %v3318_v57 = vpop.f32.mrb[39].mxu0 }
 0x210   : > { %v1793_v57 = vsel %vm1391_vm2, %v1071_v53, 0  ;;  %v4330_v53 = vld [vmem:[%s4576_s4 + $0xf8] sm:$0xff]  }
 0x214   : > { %v4081_v3 = vpop.f32.mrb[40].mxu0 }
 0x215   : > { %v3329_v6 = vpop.f32.mrb[41].mxu0  ;;  %v1879_v7 = vsel %vm1377_vm3, %v4081_v3, -inf }
 0x216   : > { %1880 = vmax.xlane.f32.xlu1 %v1879_v7  ;;  %v1876_v8 = vpop.f32.mrb[42].mxu0 }
 0x217   : > { %v3330_v34 = vpop.f32.mrb[43].mxu0 }
 0x21c   : > { %v4085_v10 = vpop.f32.mrb[44].mxu0 }
 0x21d   : > { %v3341_v11 = vpop.f32.mrb[45].mxu0  ;;  %v1979_v35 = vsel %vm1377_vm3, %v4085_v10, -inf }
 0x21e   : > { %1980 = vmax.xlane.f32.xlu0 %v1979_v35  ;;  %v1976_v37 = vpop.f32.mrb[46].mxu0  ;;  %v1993_v35 = vsel %vm1391_vm2, %v1073_v54, 0 }
 0x21f   : > { %v3342_v49 = vpop.f32.mrb[47].mxu0 }
 0x224   : > { %v4089_v12 = vpop.f32.mrb[48].mxu0 }
 0x225   : > { %v3353_v15 = vpop.f32.mrb[49].mxu0  ;;  %v2079_v30 = vsel %vm1377_vm3, %v4089_v12, -inf }
 0x226   : > { %2080 = vmax.xlane.f32.xlu1 %v2079_v30  ;;  %v2076_v36 = vpop.f32.mrb[50].mxu0  ;;  %v2093_v30 = vsel %vm1391_vm2, %v1074_v9, 0 }
 0x227   : > { %v3354_v52 = vpop.f32.mrb[51].mxu0 }
 0x27b   : > { %v1380_v4 = vpop.xlane.xlu0 %1379 }
 0x27c   : > { %v1381_v40 = vsub.f32 %v1371_v19, %v1380_v4 }
 0x27e   : > { %v1382_v5 = vmul.f32 1.442695, %v1381_v40  ;;  %v4159_v40 = vld [vmem:[%s4576_s4] sm:$0xff]  }
 0x27f   : > { %3162 = vmatpush3.bf16.msra.mxu0 %v4159_v40 }
 0x280   : > { %3530 = vpow2.f32 %v1382_v5  ;;  %v4164_v5 = vld [vmem:[%s4576_s4 + $0x48] sm:$0xff]  }
 0x281   : > { %3163 = vmatprep.subr.bf16.mxu0 %v4164_v5 }
 0x283   : > { %v1481_v16 = vpop.xlane.xlu0 %1480 }
 0x284   : > { %v1482_v17 = vsub.f32 %v1473_v61, %v1481_v16  ;;  %v4170_v16 = vld [vmem:[%s4576_s4 + $0x8] sm:$0xff]  }
 0x285   : > { %3164 = vmatpush3.bf16.msra.mxu0 %v4170_v16 }
 0x286   : > { %v1483_v42 = vmul.f32 1.442695, %v1482_v17  ;;  %v4177_v17 = vld [vmem:[%s4576_s4 + $0x50] sm:$0xff]  }
 0x287   : > { %3165 = vmatprep.subr.bf16.mxu0 %v4177_v17 }
 0x288   : > { %3532 = vpow2.f32 %v1483_v42  ;;  %v4182_v42 = vld [vmem:[%s4576_s4 + $0x10] sm:$0xff]  }
 0x289   : > { %3166 = vmatpush3.bf16.msra.mxu0 %v4182_v42 }
 0x28a   : > { %v3531_v13 = vpop.eup %3530  ;;  %3167 = vmatprep.subr.bf16.mxu0 %v4189_v60 }
 0x28b   : > { %v1581_v18 = vpop.xlane.xlu1 %1580  ;;  %v1384_v59 = vsel %vm1377_vm3, %v3531_v13, 0.0  ;;  %v1387_v62 = vpack.c.bf16 %v3531_v13, %v3531_v13  ;;  %v4194_v13 = vld [vmem:[%s4576_s4 + $0x18] sm:$0xff]  }
 0x28c   : > { %v1582_v20 = vsub.f32 %v1573_v32, %v1581_v18  ;;  %1385 = vadd.xlane.f32.xlu0 %v1384_v59  ;;  %v1336_v32 = vpack.c.bf16 %v4079_v0, %v4079_v0  ;;  %v4201_v18 = vld [vmem:[%s4576_s4 + $0x60] sm:$0xff]  }
 0x28d   : > { %3274 = vmatmul.mubr.msk.bf16.vlgmr.msra.gmra.mrb[28].mxu1 %vm1377_vm3, %v1387_v62  ;;  %3168 = vmatpush3.bf16.msra.mxu0 %v4194_v13  ;;  %v3493_v59 = vld [vmem:[%s4576_s4 + $0xc0] sm:$0xff]  }
 0x28e   : > { %v1583_v19 = vmul.f32 1.442695, %v1582_v20  ;;  %3284 = vmatpush3.bf16.msra.mxu1 %v1493_v21  ;;  %3285 = vmatprep.mubr.msk.bf16.mxu1 %vm3674_vm1, %v3673_v38  ;;  %v1693_v47 = vsel %vm1391_vm2, %v1336_v32, 0  ;;  %v4209_v62 = vld [vmem:[%s4576_s4 + $0x20] sm:$0xff]   ;;  %v4222_v21 = vld [vmem:[%s4576_s4 + $0x68] sm:$0xff]   ;;  %v4280_v32 = vld [vmem:[%s4576_s4 + $0x38] sm:$0xff]  }
 0x28f   : > { %3295 = vmatprep.subr.bf16.mxu1 %v3673_v38  ;;  %v4214_v20 = vld [vmem:[%s4576_s4 + $0x80] sm:$0xff]   ;;  %3169 = vmatprep.subr.bf16.mxu0 %v4201_v18 }
 0x290   : > { %3534 = vpow2.f32 %v1583_v19  ;;  %v4227_v19 = vld [vmem:[%s4576_s4 + $0xc8] sm:$0xff]  }
 0x291   : > { %3170 = vmatpush3.bf16.msra.mxu0 %v4209_v62 }
 0x292   : > { %v3533_v46 = vpop.eup %3532  ;;  %3171 = vmatprep.subr.bf16.mxu0 %v4222_v21 }
 0x293   : > { %v1681_v61 = vpop.xlane.xlu1 %1680  ;;  %v1485_v26 = vsel %vm1377_vm3, %v3533_v46, 0.0  ;;  %v1488_v27 = vpack.c.bf16 %v3533_v46, %v3533_v46  ;;  %v4237_v46 = vld [vmem:[%s4576_s4 + $0x88] sm:$0xff]  }
 0x294   : > { %v1682_v28 = vsub.f32 %v4069_v39, %v1681_v61  ;;  %1486 = vadd.xlane.f32.xlu1 %v1485_v26  ;;  %v4251_v61 = vld [vmem:[%s4576_s4 + $0xd0] sm:$0xff]  }
 0x295   : > { %3286 = vmatmul.mubr.msk.bf16.vlgmr.msra.gmra.mrb[32].mxu1 %vm1377_vm3, %v1488_v27  ;;  %3172 = vmatpush3.bf16.msra.mxu0 %v4232_v22  ;;  %v4256_v26 = vld [vmem:[%s4576_s4 + $0x30] sm:$0xff]  }
 0x296   : > { %v1683_v29 = vmul.f32 1.442695, %v1682_v28  ;;  %3296 = vmatpush3.bf16.msra.mxu1 %v1593_v24  ;;  %3297 = vmatprep.mubr.msk.bf16.mxu1 %vm3674_vm1, %v3673_v38  ;;  %v4246_v24 = vld [vmem:[%s4576_s4 + $0x70] sm:$0xff]   ;;  %v4270_v28 = vld [vmem:[%s4576_s4 + $0x78] sm:$0xff]  }
 0x297   : > { %3307 = vmatprep.subr.bf16.mxu1 %v3673_v38  ;;  %v4261_v27 = vld [vmem:[%s4576_s4 + $0x90] sm:$0xff]   ;;  %3173 = vmatprep.subr.bf16.mxu0 %v4246_v24 }
 0x298   : > { %3536 = vpow2.f32 %v1683_v29  ;;  %v4275_v29 = vld [vmem:[%s4576_s4 + $0xd8] sm:$0xff]  }
 0x299   : > { %3174 = vmatpush3.bf16.msra.mxu0 %v4256_v26 }
 0x29a   : > { %v3535_v43 = vpop.eup %3534  ;;  %3175 = vmatprep.subr.bf16.mxu0 %v4270_v28 }
 0x29b   : > { %v1781_v25 = vpop.xlane.xlu0 %1780  ;;  %v1585_v44 = vsel %vm1377_vm3, %v3535_v43, 0.0  ;;  %v1588_v45 = vpack.c.bf16 %v3535_v43, %v3535_v43  ;;  %v4285_v43 = vld [vmem:[%s4576_s4 + $0x98] sm:$0xff]  }
 0x29c   : > { %v1782_v39 = vsub.f32 %v4073_v55, %v1781_v25  ;;  %1586 = vadd.xlane.f32.xlu0 %v1585_v44  ;;  %v4294_v25 = vld [vmem:[%s4576_s4 + $0xe0] sm:$0xff]  }
 0x29d   : > { %3298 = vmatmul.mubr.msk.bf16.vlgmr.msra.gmra.mrb[36].mxu1 %vm1377_vm3, %v1588_v45  ;;  %3176 = vmatpush3.bf16.msra.mxu0 %v4280_v32  ;;  %v4299_v44 = vld [vmem:[%s4576_s4 + $0xa0] sm:$0xff]   ;;  %v4306_v45 = vld [vmem:[%s4576_s4 + $0xe8] sm:$0xff]  }
 0x29e   : > { %v1783_v50 = vmul.f32 1.442695, %v1782_v39  ;;  %3308 = vmatpush3.bf16.msra.mxu1 %v1693_v47  ;;  %3309 = vmatprep.mubr.msk.bf16.mxu1 %vm3674_vm1, %v3673_v38  ;;  %v4311_v39 = vld [vmem:[%s4576_s4 + $0xa8] sm:$0xff]   ;;  %v4318_v47 = vld [vmem:[%s4576_s4 + $0xf0] sm:$0xff]  }
 0x29f   : > { %3319 = vmatprep.subr.bf16.mxu1 %v3673_v38  ;;  %3205 = vmatprep.subr.bf16.mxu0 %v3484_v14 }
 0x2a0   : > { %3538 = vpow2.f32 %v1783_v50  ;;  %v4323_v50 = vld [vmem:[%s4576_s4 + $0xb0] sm:$0xff]  }
 0x2a2   : > { %v3537_v31 = vpop.eup %3536 }
 0x2a3   : > { %v1881_v48 = vpop.xlane.xlu1 %1880  ;;  %v1685_v55 = vsel %vm1377_vm3, %v3537_v31, 0.0  ;;  %v1688_v56 = vpack.c.bf16 %v3537_v31, %v3537_v31  ;;  %v4335_v31 = vld [vmem:[%s4576_s4 + $0xb8] sm:$0xff]  }
 0x2a4   : > { %v1882_v33 = vsub.f32 %v4081_v3, %v1881_v48  ;;  %1686 = vadd.xlane.f32.xlu1 %v1685_v55  ;;  %v1893_v3 = vsel %vm1391_vm2, %v1072_v51, 0  ;;  %v4340_v48 = vld [vmem:[%s3847_s18] sm:$0xff]  ;;  %s4493_s18 = scalar_lea.hbm %s4586_s14, %s4594_s27 }
 0x2a5   : > { %3310 = vmatmul.mubr.msk.bf16.vlgmr.msra.gmra.mrb[40].mxu1 %vm1377_vm3, %v1688_v56  ;;  %v2574_v55 = vsel %vm813_vm0, %v4340_v48, 0.0  ;;  %v2757_v56 = vsel %vm813_vm0, %v3901_v23, 0.0 }
 0x2a6   : > { %v1883_v58 = vmul.f32 1.442695, %v1882_v33  ;;  %3320 = vmatpush3.bf16.msra.mxu1 %v1793_v57  ;;  %3321 = vmatprep.mubr.msk.bf16.mxu1 %vm3674_vm1, %v3673_v38 }
 0x2a7   : > { %3331 = vmatprep.subr.bf16.mxu1 %v3673_v38 }
 0x2a8   : > { %3540 = vpow2.f32 %v1883_v58 }
 0x2aa   : > { %v3539_v63 = vpop.eup %3538 }
 0x2ab   : > { %v1981_v41 = vpop.xlane.xlu0 %1980  ;;  %v1785_v0 = vsel %vm1377_vm3, %v3539_v63, 0.0  ;;  %v1788_v1 = vpack.c.bf16 %v3539_v63, %v3539_v63 }
 0x2ac   : > { %v1982_v2 = vsub.f32 %v4085_v10, %v1981_v41  ;;  %1786 = vadd.xlane.f32.xlu0 %v1785_v0 }
 0x2ad   : > { %3322 = vmatmul.mubr.msk.bf16.vlgmr.msra.gmra.mrb[44].mxu1 %vm1377_vm3, %v1788_v1 }
 0x2ae   : > { %v1983_v6 = vmul.f32 1.442695, %v1982_v2  ;;  %3332 = vmatpush3.bf16.msra.mxu1 %v1893_v3  ;;  %3333 = vmatprep.mubr.msk.bf16.mxu1 %vm3674_vm1, %v3673_v38 }
 0x2af   : > { %3343 = vmatprep.subr.bf16.mxu1 %v3673_v38 }
 0x2b0   : > { %3542 = vpow2.f32 %v1983_v6 }
 0x2b2   : > { %v3541_v7 = vpop.eup %3540 }
 0x2b3   : > { %v2081_v8 = vpop.xlane.xlu1 %2080  ;;  %v1885_v34 = vsel %vm1377_vm3, %v3541_v7, 0.0  ;;  %v1888_v10 = vpack.c.bf16 %v3541_v7, %v3541_v7 }
 0x2b4   : > { %v2082_v11 = vsub.f32 %v4089_v12, %v2081_v8  ;;  %1886 = vadd.xlane.f32.xlu1 %v1885_v34 }
 0x2b5   : > { %3334 = vmatmul.mubr.msk.bf16.vlgmr.msra.gmra.mrb[48].mxu1 %vm1377_vm3, %v1888_v10 }
 0x2b6   : > { %v2083_v37 = vmul.f32 1.442695, %v2082_v11  ;;  %3344 = vmatpush3.bf16.msra.mxu1 %v1993_v35  ;;  %3345 = vmatprep.mubr.msk.bf16.mxu1 %vm3674_vm1, %v3673_v38 }
 0x2b7   : > { %3355 = vmatprep.subr.bf16.mxu1 %v3673_v38 }
 0x2b8   : > { %3544 = vpow2.f32 %v2083_v37 }
 0x2ba   : > { %v3543_v49 = vpop.eup %3542 }
 0x2bb   : > { %v1985_v15 = vsel %vm1377_vm3, %v3543_v49, 0.0  ;;  %v1988_v12 = vpack.c.bf16 %v3543_v49, %v3543_v49 }
 0x2bc   : > { %1986 = vadd.xlane.f32.xlu0 %v1985_v15 }
 0x2bd   : > { %3346 = vmatmul.mubr.msk.bf16.vlgmr.msra.gmra.mrb[52].mxu1 %vm1377_vm3, %v1988_v12 }
 0x2be   : > { %3356 = vmatpush3.bf16.msra.mxu1 %v2093_v30  ;;  %3357 = vmatprep.mubr.msk.bf16.mxu1 %vm3674_vm1, %v3673_v38 }
 0x2bf   : > { %3183 = vmatprep.subr.bf16.mxu1 %v3493_v59 }
 0x2c2   : > { %v3545_v36 = vpop.eup %3544 }
 0x2c3   : > { %v2085_v52 = vsel %vm1377_vm3, %v3545_v36, 0.0  ;;  %v2088_v4 = vpack.c.bf16 %v3545_v36, %v3545_v36 }
 0x2c4   : > { %2086 = vadd.xlane.f32.xlu1 %v2085_v52 }
 0x2c5   : > { %3358 = vmatmul.mubr.msk.bf16.vlgmr.msra.gmra.mrb[56].mxu1 %vm1377_vm3, %v2088_v4 }
 0x2c6   : > { %3184 = vmatpush3.bf16.msra.mxu1 %v4214_v20 }
 0x2c7   : > { %3185 = vmatprep.subr.bf16.mxu1 %v4227_v19 }
 0x2c8   : > { %2575 = vadd.xlane.f32.xlu1 %v2574_v55 }
 0x2ca   : > { %3186 = vmatpush3.bf16.msra.mxu1 %v4237_v46 }
 0x2cb   : > { %3187 = vmatprep.subr.bf16.mxu1 %v4251_v61 }
 0x2cc   : > { %2758 = vadd.xlane.f32.xlu1 %v2757_v56 }
 0x2ce   : > { %3188 = vmatpush3.bf16.msra.mxu1 %v4261_v27 }
 0x2cf   : > { %3189 = vmatprep.subr.bf16.mxu1 %v4275_v29 }
 0x2d2   : > { %3190 = vmatpush3.bf16.msra.mxu1 %v4285_v43 }
 0x2d3   : > { %3191 = vmatprep.subr.bf16.mxu1 %v4294_v25 }
 0x2d6   : > { %3192 = vmatpush3.bf16.msra.mxu1 %v4299_v44 }
 0x2d7   : > { %3193 = vmatprep.subr.bf16.mxu1 %v4306_v45 }
 0x2da   : > { %3194 = vmatpush3.bf16.msra.mxu1 %v4311_v39 }
 0x2db   : > { %3195 = vmatprep.subr.bf16.mxu1 %v4318_v47 }
 0x2de   : > { %3196 = vmatpush3.bf16.msra.mxu1 %v4323_v50 }
 0x2df   : > { %3197 = vmatprep.subr.bf16.mxu1 %v4330_v53 }
 0x2e2   : > { %3198 = vmatpush3.bf16.msra.mxu1 %v4335_v31 }
 0x2e3   : > { %3227 = vmatprep.subr.bf16.mxu1 %v3493_v59 }
 0x319   : > { %v1386_v33 = vpop.xlane.xlu0 %1385 }
 0x31a   : > { %3546 = vrcp.f32 %v1386_v33 }
 0x321   : > { %v1487_v57 = vpop.xlane.xlu1 %1486 }
 0x322   : > { %3548 = vrcp.f32 %v1487_v57 }
 0x324   : > { %v3547_v58 = vpop.eup %3546 }
 0x329   : > { %v1587_v1 = vpop.xlane.xlu0 %1586 }
 0x32a   : > { %3550 = vrcp.f32 %v1587_v1 }
 0x32c   : > { %v3549_v6 = vpop.eup %3548 }
 0x331   : > { %v1687_v34 = vpop.xlane.xlu1 %1686 }
 0x332   : > { %3552 = vrcp.f32 %v1687_v34 }
 0x334   : > { %v3551_v35 = vpop.eup %3550 }
 0x339   : > { %v1787_v12 = vpop.xlane.xlu0 %1786 }
 0x33a   : > { %3554 = vrcp.f32 %v1787_v12 }
 0x33c   : > { %v3553_v59 = vpop.eup %3552 }
 0x360   : > { %v1429_v51 = vpop.f32.mrb[28].mxu1 }
 0x361   : > { %v1436_v63 = vmul.f32 %v3547_v58, %v1429_v51  ;;  %v3275_v41 = vpop.f32.mrb[29].mxu1  ;;  %v1887_v58 = vpop.xlane.xlu1 %1886 }
 0x362   : > { %v1432_v0 = vpop.f32.mrb[30].mxu1  ;;  %3556 = vrcp.f32 %v1887_v58  ;;  %v3555_v41 = vpop.eup %3554 }
 0x363   : > { %v1437_v2 = vpack.c.bf16 %v1436_v63, %v1436_v63  ;;  %v3276_v3 = vpop.f32.mrb[31].mxu1 }
 0x365   : > { %1438 = vst [vmem:[#allocation2] sm:$0xf] %v1437_v2 }
 0x368   : > { %v1529_v54 = vpop.f32.mrb[32].mxu1 }
 0x369   : > { %v1536_v7 = vmul.f32 %v3549_v6, %v1529_v54  ;;  %v3287_v8 = vpop.f32.mrb[33].mxu1 }
 0x36a   : > { %v1532_v23 = vpop.f32.mrb[34].mxu1 }
 0x36b   : > { %v1537_v10 = vpack.c.bf16 %v1536_v7, %v1536_v7  ;;  %v3288_v11 = vpop.f32.mrb[35].mxu1 }
 0x36d   : > { %1538 = vst [vmem:[#allocation2 + $0x4] sm:$0xf] %v1537_v10 }
 0x370   : > { %v1629_v37 = vpop.f32.mrb[36].mxu1 }
 0x371   : > { %v1636_v9 = vmul.f32 %v3551_v35, %v1629_v37  ;;  %v3299_v49 = vpop.f32.mrb[37].mxu1 }
 0x372   : > { %v1632_v15 = vpop.f32.mrb[38].mxu1  ;;  %v3575_v49 = vld [vmem:[%s3889_s24] sm:$0xff]  ;;  %s4478_s24 = sand.u32 1, %s3662_s19  }
 0x373   : > { %v1637_v30 = vpack.c.bf16 %v1636_v9, %v1636_v9  ;;  %v3300_v36 = vpop.f32.mrb[39].mxu1  ;;  %s4593_s23 = sshll.u32 %s4478_s24, 3  ;;  %s2880_s17 = scalar_lea.sflag [#allocation5], %s4478_s24 }
 0x374   : > { %v2139_v52 = vld [vmem:[#allocation2] sm:$0xff]  ;;  %s502_s20 = scalar_lea.vmem [#allocation4], %s4593_s23  ;;  %s3580_s23 = sshll.u32 %s3675_s26, 4  ;;  %s3581_s23 = int_to_ptr.vmem [resolvable:$false] %s3580_s23 }
 0x375   : > { %1638 = vst [vmem:[#allocation2 + $0x8] sm:$0xf] %v1637_v30  ;;  %v3067_v4 = vcombine.low %v2139_v52, %v2139_v52  ;;  %v3068_v14 = vcombine.high %v2139_v52, %v2139_v52  ;;  %s2898_s30 = sshll.u32 %s502_s20, 4  ;;  %s3582_s0 = scalar_lea.vmem %s3581_s23, 256  ;;  %s4495_s30 = int_to_ptr.vmem [resolvable:$true] %s2898_s30 }
 0x376   : > { %s3576_s25 = scalar_lea.vmem %s4495_s30, 128  ;;  %p3583_p0 = scmp.lt.s32.totalorder %s4495_s30, %s3581_s23 }
 0x377   : > { %2387 = vmatprep.mubr.bf16.mxu0 %v3068_v14  ;;  %p3577_p11 = scmp.ne.s32.totalorder %s4495_s30, %s3576_s25  ;;  %p3584_p1 = scmp.lt.s32.totalorder %s3582_s0, %s3576_s25 }
 0x378   : > { %v1729_v55 = vpop.f32.mrb[40].mxu1  ;;  %2388 = vmatmul.mubr.bf16.vlgmr.msra.gmra.mrb[52].mxu0 %v3067_v4 }
 0x379   : > { %v1736_v56 = vmul.f32 %v3553_v59, %v1729_v55  ;;  %v3311_v33 = vpop.f32.mrb[41].mxu1  ;;  %3206 = vmatpush3.bf16.msra.mxu0 %v4159_v40  ;;  %v1987_v40 = vpop.xlane.xlu0 %1986  ;;  %v3066_v55 = vld [vmem:[%s4577_s5] ss:$0 sm:$0xff]  ;;  %p3578_p12 = pnand %p3577_p11, %p3795_p5  ;;  %p3585_p2 = por %p3584_p1, %p3583_p0 }
 0x37a   : > { %v1732_v57 = vpop.f32.mrb[42].mxu1  ;;  %3207 = vmatprep.subr.bf16.mxu0 %v4164_v5  ;;  %3558 = vrcp.f32 %v1987_v40 }
 0x37b   : > { %v1737_v51 = vpack.c.bf16 %v1736_v56, %v1736_v56  ;;  %v3312_v63 = vpop.f32.mrb[43].mxu1  ;;  %p3579_p13 = pneg %p3578_p12 }
 0x37d   : > { %1738 = vst [vmem:[#allocation2 + $0xc] sm:$0xf] %v1737_v51  ;;  %3208 = vmatpush3.bf16.msra.mxu0 %v4170_v16  ;;  %p3586_p3 = pnand %p3585_p2, %p3579_p13 }
 0x37e   : > { %3209 = vmatprep.subr.bf16.mxu0 %v4177_v17  ;;  %v3557_v17 = vpop.eup %3556 }
 0x380   : > { %v1829_v0 = vpop.f32.mrb[44].mxu1 }
 0x381   : > { %v1836_v1 = vmul.f32 %v3555_v41, %v1829_v0  ;;  %v3323_v2 = vpop.f32.mrb[45].mxu1  ;;  %3210 = vmatpush3.bf16.msra.mxu0 %v4182_v42 }
 0x382   : > { %v1832_v3 = vpop.f32.mrb[46].mxu1  ;;  %3211 = vmatprep.subr.bf16.mxu0 %v4189_v60 }
 0x383   : > { %v1837_v5 = vpack.c.bf16 %v1836_v1, %v1836_v1  ;;  %v3324_v6 = vpop.f32.mrb[47].mxu1 }
 0x384   : > { %v2140_v54 = vld [vmem:[#allocation2 + $0x8] sm:$0xff] }
 0x385   : > { %1838 = vst [vmem:[#allocation3] sm:$0xf] %v1837_v5  ;;  %3212 = vmatpush3.bf16.msra.mxu0 %v4194_v13  ;;  %v3069_v16 = vcombine.low %v2140_v54, %v2140_v54  ;;  %v3070_v7 = vcombine.high %v2140_v54, %v2140_v54  ;;  %v2087_v13 = vpop.xlane.xlu1 %2086 }
 0x386   : > { %3213 = vmatprep.subr.bf16.mxu0 %v4201_v18  ;;  %3560 = vrcp.f32 %v2087_v13  ;;  %v3559_v18 = vpop.eup %3558 }
 0x387   : > { %2427 = vmatprep.mubr.bf16.mxu1 %v3070_v7 }
 0x388   : > { %v1929_v8 = vpop.f32.mrb[48].mxu1  ;;  %2428 = vmatmul.mubr.bf16.vlgmr.msra.gmra.mrb[60].mxu1 %v3069_v16 }
 0x389   : > { %v1936_v42 = vmul.f32 %v3557_v17, %v1929_v8  ;;  %v3335_v23 = vpop.f32.mrb[49].mxu1  ;;  %3214 = vmatpush3.bf16.msra.mxu0 %v4209_v62  ;;  %3228 = vmatpush3.bf16.msra.mxu1 %v4214_v20 }
 0x38a   : > { %v1932_v60 = vpop.f32.mrb[50].mxu1  ;;  %3215 = vmatprep.subr.bf16.mxu0 %v4222_v21  ;;  %3229 = vmatprep.subr.bf16.mxu1 %v4227_v19 }
 0x38b   : > { %v1937_v34 = vpack.c.bf16 %v1936_v42, %v1936_v42  ;;  %v3336_v10 = vpop.f32.mrb[51].mxu1 }
 0x38d   : > { %1938 = vst [vmem:[#allocation3 + $0x4] sm:$0xf] %v1937_v34  ;;  %3216 = vmatpush3.bf16.msra.mxu0 %v4232_v22  ;;  %3230 = vmatpush3.bf16.msra.mxu1 %v4237_v46 }
 0x38e   : > { %3217 = vmatprep.subr.bf16.mxu0 %v4246_v24  ;;  %3231 = vmatprep.subr.bf16.mxu1 %v4251_v61 }
 0x390   : > { %v2029_v62 = vpop.f32.mrb[52].mxu1 }
 0x391   : > { %v2036_v20 = vmul.f32 %v3559_v18, %v2029_v62  ;;  %v3347_v11 = vpop.f32.mrb[53].mxu1  ;;  %3218 = vmatpush3.bf16.msra.mxu0 %v4256_v26  ;;  %3232 = vmatpush3.bf16.msra.mxu1 %v4261_v27  ;;  %v3561_v26 = vpop.eup %3560 }
 0x392   : > { %v2032_v21 = vpop.f32.mrb[54].mxu1  ;;  %3219 = vmatprep.subr.bf16.mxu0 %v4270_v28  ;;  %3233 = vmatprep.subr.bf16.mxu1 %v4275_v29 }
 0x393   : > { %v2037_v19 = vpack.c.bf16 %v2036_v20, %v2036_v20  ;;  %v3348_v22 = vpop.f32.mrb[55].mxu1 }
 0x394   : > { %v2141_v46 = vld [vmem:[#allocation3] sm:$0xff] }
 0x395   : > { %2038 = vst [vmem:[#allocation3 + $0x8] sm:$0xf] %v2037_v19  ;;  %3220 = vmatpush3.bf16.msra.mxu0 %v4280_v32  ;;  %3234 = vmatpush3.bf16.msra.mxu1 %v4285_v43  ;;  %v3105_v24 = vcombine.low %v2141_v46, %v2141_v46  ;;  %v3106_v61 = vcombine.high %v2141_v46, %v2141_v46 }
 0x396   : > { %3235 = vmatprep.subr.bf16.mxu1 %v4294_v25  ;;  %3361 = vmatprep.subr.bf16.mxu0 %v3673_v38 }
 0x397   : > { %2510 = vmatprep.mubr.bf16.mxu0 %v3106_v61 }
 0x398   : > { %v2129_v27 = vpop.f32.mrb[56].mxu1  ;;  %2511 = vmatmul.mubr.bf16.vlgmr.msra.gmra.mrb[56].mxu0 %v3105_v24 }
 0x399   : > { %v2136_v28 = vmul.f32 %v3561_v26, %v2129_v27  ;;  %v3359_v29 = vpop.f32.mrb[57].mxu1  ;;  %3236 = vmatpush3.bf16.msra.mxu1 %v4299_v44  ;;  %3365 = vmatprep.mubr.msk.bf16.mxu0 %vm3674_vm1, %v3673_v38 }
 0x39a   : > { %v2132_v32 = vpop.f32.mrb[58].mxu1  ;;  %3237 = vmatprep.subr.bf16.mxu1 %v4306_v45  ;;  %v2576_v45 = vpop.xlane.xlu1 %2575 }
 0x39b   : > { %v2137_v43 = vpack.c.bf16 %v2136_v28, %v2136_v28  ;;  %v3360_v35 = vpop.f32.mrb[59].mxu1 }
 0x39d   : > { %2138 = vst [vmem:[#allocation3 + $0xc] sm:$0xf] %v2137_v43  ;;  %3238 = vmatpush3.bf16.msra.mxu1 %v4311_v39  ;;  %v2577_v39 = vmul.f32 0.03125, %v2576_v45  ;;  %v4406_v43 = vld [vmem:[%s4580_s8] ss:$0 sm:$0xff] }
 0x39e   : > { %3239 = vmatprep.subr.bf16.mxu1 %v4318_v47  ;;  %v3104_v45 = vld [vmem:[%s4579_s7] ss:$0 sm:$0xff] }
 0x39f   : > { %v4383_v47 = vsub.f32 %v4340_v48, %v2577_v39  ;;  %v4418_v39 = vld [vmem:[%s4581_s9] ss:$0 sm:$0xff] }
 0x3a1   : > { %3240 = vmatpush3.bf16.msra.mxu1 %v4323_v50  ;;  %v2579_v50 = vmul.f32 %v4383_v47, %v4383_v47 }
 0x3a2   : > { %3241 = vmatprep.subr.bf16.mxu1 %v4330_v53  ;;  %v2759_v53 = vpop.xlane.xlu1 %2758 }
 0x3a3   : > { %v2760_v9 = vmul.f32 0.03125, %v2759_v53 }
 0x3a4   : > { %v2142_v25 = vld [vmem:[#allocation3 + $0x8] sm:$0xff] }
 0x3a5   : > { %3242 = vmatpush3.bf16.msra.mxu1 %v4335_v31  ;;  %v3107_v44 = vcombine.low %v2142_v25, %v2142_v25  ;;  %v3108_v37 = vcombine.high %v2142_v25, %v2142_v25  ;;  %v2580_v31 = vsel %vm813_vm0, %v2579_v50, 0.0  ;;  %v4389_v15 = vsub.f32 %v3575_v49, %v2760_v9  ;;  %v3103_v25 = vld [vmem:[%s4578_s6] ss:$0 sm:$0xff] }
 0x3a6   : > { %3369 = vmatprep.subr.bf16.mxu1 %v3673_v38  ;;  %2581 = vadd.xlane.f32.xlu1 %v2580_v31 }
 0x3a7   : > { %2550 = vmatprep.mubr.bf16.mxu1 %v3108_v37  ;;  %v2762_v12 = vmul.f32 %v4389_v15, %v4389_v15 }
 0x3a8   : > { %2551 = vmatmul.mubr.bf16.vlgmr.msra.gmra.mrb[64].mxu1 %v3107_v44 }
 0x3a9   : > { %3377 = vmatprep.mubr.msk.bf16.mxu1 %vm3674_vm1, %v3673_v38  ;;  %v2763_v30 = vsel %vm813_vm0, %v2762_v12, 0.0 }
 0x3aa   : > { %2764 = vadd.xlane.f32.xlu1 %v2763_v30 }
 0x433   : > { %v2582_v46 = vpop.xlane.xlu1 %2581 }
 0x434   : > { %v2583_v24 = vmul.f32 0.03125, %v2582_v46 }
 0x436   : > { %v2584_v61 = vadd.f32 1e-05, %v2583_v24 }
 0x437   : > { %v2765_v50 = vpop.xlane.xlu1 %2764 }
 0x438   : > { %3562 = vrsqrt.f32 %v2584_v61 }
 0x442   : > { %v3563_v29 = vpop.eup %3562 }
 0x443   : > { %v2586_v32 = vmul.f32 %v3563_v29, %v4383_v47 }
 0x445   : > { %v2593_v37 = vmul.f32 %v4406_v43, %v2586_v32 }
 0x447   : > { %v2600_v9 = vadd.f32 %v4418_v39, %v2593_v37 }
 0x44b   : > { %v3177_v36 = vpop.f32.mrb[52].mxu0 }
 0x44c   : > { %v3178_v52 = vpop.f32.mrb[53].mxu0 }
 0x44d   : > { %v3179_v4 = vadd.f32 %v3178_v52, %v3177_v36  ;;  %v3180_v14 = vpop.f32.mrb[54].mxu0 }
 0x44e   : > { %v3181_v59 = vpop.f32.mrb[55].mxu0 }
 0x44f   : > { %v2390_v57 = vadd.f32 %v3179_v4, %v3066_v55 }
 0x45b   : > { %v3199_v56 = vpop.f32.mrb[60].mxu1 }
 0x45c   : > { %v3200_v33 = vpop.f32.mrb[61].mxu1 }
 0x45d   : > { %v3201_v58 = vadd.f32 %v3200_v33, %v3199_v56  ;;  %v3202_v51 = vpop.f32.mrb[62].mxu1 }
 0x45e   : > { %v3203_v63 = vpop.f32.mrb[63].mxu1 }
 0x45f   : > { %v2430_v41 = vadd.f32 %v3201_v58, %v2390_v57 }
 0x461   : > { %v2435_v0 = vadd.f32 %v4340_v48, %v2430_v41 }
 0x463   : > { %v2436_v1 = vsel %vm813_vm0, %v2435_v0, 0.0 }
 0x464   : > { %2437 = vadd.xlane.f32.xlu0 %v2436_v1 }
 0x46b   : > { %v3221_v2 = vpop.f32.mrb[56].mxu0 }
 0x46c   : > { %v3222_v3 = vpop.f32.mrb[57].mxu0 }
 0x46d   : > { %v3223_v40 = vadd.f32 %v3222_v3, %v3221_v2  ;;  %v3224_v5 = vpop.f32.mrb[58].mxu0 }
 0x46e   : > { %v3225_v6 = vpop.f32.mrb[59].mxu0 }
 0x46f   : > { %v2513_v7 = vadd.f32 %v3223_v40, %v3066_v55 }
 0x47b   : > { %v3243_v54 = vpop.f32.mrb[64].mxu1 }
 0x47c   : > { %v3244_v16 = vpop.f32.mrb[65].mxu1 }
 0x47d   : > { %v3245_v17 = vadd.f32 %v3244_v16, %v3243_v54  ;;  %v3246_v8 = vpop.f32.mrb[66].mxu1  ;;  %v3524_v16 = vld [vmem:[%s4582_s10] sm:$0xff]  }
 0x47e   : > { %v3247_v42 = vpop.f32.mrb[67].mxu1  ;;  %3362 = vmatpush3.bf16.msra.mxu0 %v3524_v16  ;;  %v3526_v8 = vld [vmem:[%s4584_s12] sm:$0xff]  }
 0x47f   : > { %v2553_v23 = vadd.f32 %v3245_v17, %v2513_v7  ;;  %v3525_v17 = vld [vmem:[%s4582_s10 + $0x8] sm:$0xff]   ;;  %3363 = vmatprep.subr.bf16.mxu0 %v3673_v38  ;;  %3370 = vmatpush3.bf16.msra.mxu1 %v3526_v8 }
 0x480   : > { %v3527_v42 = vld [vmem:[%s4584_s12 + $0x8] sm:$0xff]   ;;  %3371 = vmatprep.subr.bf16.mxu1 %v3673_v38 }
 0x481   : > { %v2558_v60 = vadd.f32 %v3575_v49, %v2553_v23  ;;  %v2766_v49 = vmul.f32 0.03125, %v2765_v50 }
 0x482   : > { %3364 = vmatpush3.bf16.msra.mxu0 %v3525_v17 }
 0x483   : > { %v2559_v13 = vsel %vm813_vm0, %v2558_v60, 0.0  ;;  %v2767_v30 = vadd.f32 1e-05, %v2766_v49  ;;  %3381 = vmatprep.subr.bf16.mxu0 %v3673_v38  ;;  %3372 = vmatpush3.bf16.msra.mxu1 %v3527_v42  ;;  %v3115_v49 = vld [vmem:[%s4585_s13] ss:$0 sm:$0xff] }
 0x484   : > { %2560 = vadd.xlane.f32.xlu0 %v2559_v13  ;;  %3373 = vmatprep.subr.bf16.mxu1 %v3673_v38 }
 0x4f1   : > { %v2438_v48 = vpop.xlane.xlu0 %2437 }
 0x4f2   : > { %v2440_v34 = vmul.f32 0.03125, %v2438_v48 }
 0x4f4   : > { %v2441_v10 = vsub.f32 %v2435_v0, %v2440_v34 }
 0x4f6   : > { %v2442_v18 = vmul.f32 %v2441_v10, %v2441_v10 }
 0x4f8   : > { %v2443_v62 = vsel %vm813_vm0, %v2442_v18, 0.0 }
 0x4f9   : > { %2444 = vadd.xlane.f32.xlu0 %v2443_v62 }
 0x511   : > { %v2561_v20 = vpop.xlane.xlu0 %2560 }
 0x512   : > { %v2562_v11 = vmul.f32 0.03125, %v2561_v20 }
 0x514   : > { %v2563_v21 = vsub.f32 %v2558_v60, %v2562_v11 }
 0x516   : > { %v2564_v19 = vmul.f32 %v2563_v21, %v2563_v21 }
 0x518   : > { %v2565_v22 = vsel %vm813_vm0, %v2564_v19, 0.0 }
 0x519   : > { %2566 = vadd.xlane.f32.xlu0 %v2565_v22 }
 0x586   : > { %v2445_v26 = vpop.xlane.xlu0 %2444 }
 0x587   : > { %v2446_v27 = vmul.f32 0.03125, %v2445_v26  ;;  %v3528_v26 = vld [vmem:[%s4584_s12 + $0x10] sm:$0xff]  }
 0x588   : > { %3374 = vmatpush3.bf16.msra.mxu1 %v3528_v26 }
 0x589   : > { %v2447_v28 = vadd.f32 1e-05, %v2446_v27  ;;  %3375 = vmatprep.subr.bf16.mxu1 %v3673_v38  ;;  %v3529_v27 = vld [vmem:[%s4584_s12 + $0x18] sm:$0xff]  }
 0x58b   : > { %3564 = vrsqrt.f32 %v2447_v28  ;;  %v3111_v28 = vld [vmem:[%s4583_s11] ss:$0 sm:$0xff] }
 0x58c   : > { %3566 = vrsqrt.f32 %v2767_v30  ;;  %3376 = vmatpush3.bf16.msra.mxu1 %v3529_v27 }
 0x595   : > { %v3565_v35 = vpop.eup %3564 }
 0x596   : > { %v2449_v44 = vmul.f32 %v3565_v35, %v2441_v10  ;;  %v3567_v14 = vpop.eup %3566 }
 0x597   : > { %v2769_v59 = vmul.f32 %v3567_v14, %v4389_v15 }
 0x598   : > { %v2456_v47 = vmul.f32 %v3103_v25, %v2449_v44 }
 0x599   : > { %v2770_v33 = vmul.f32 %v4406_v43, %v2769_v59 }
 0x59a   : > { %v2463_v53 = vadd.f32 %v3104_v45, %v2456_v47 }
 0x59b   : > { %v2771_v51 = vadd.f32 %v4418_v39, %v2770_v33 }
 0x59c   : > { %v4421_v31 = vadd.f32 %v2600_v9, %v2463_v53 }
 0x59e   : > { %v2602_v12 = vsel %vm813_vm0, %v4421_v31, 0.0 }
 0x59f   : > { %2603 = vadd.xlane.f32.xlu0 %v2602_v12 }
 0x5a6   : > { %v2567_v36 = vpop.xlane.xlu0 %2566 }
 0x5a7   : > { %v2568_v52 = vmul.f32 0.03125, %v2567_v36 }
 0x5a9   : > { %v2569_v4 = vadd.f32 1e-05, %v2568_v52 }
 0x5ab   : > { %3568 = vrsqrt.f32 %v2569_v4 }
 0x5b5   : > { %v3569_v55 = vpop.eup %3568 }
 0x5b6   : > { %v2571_v56 = vmul.f32 %v3569_v55, %v2563_v21 }
 0x5b8   : > { %v2572_v57 = vmul.f32 %v3103_v25, %v2571_v56 }
 0x5ba   : > { %v2573_v58 = vadd.f32 %v3104_v45, %v2572_v57 }
 0x5bc   : > { %v4428_v63 = vadd.f32 %v2771_v51, %v2573_v58 }
 0x5be   : > { %v2773_v41 = vsel %vm813_vm0, %v4428_v63, 0.0 }
 0x5bf   : > { %2774 = vadd.xlane.f32.xlu1 %v2773_v41 }
 0x62c   : > { %v2604_v0 = vpop.xlane.xlu0 %2603 }
 0x62d   : > { %v2605_v1 = vmul.f32 0.03125, %v2604_v0 }
 0x62f   : > { %v2606_v2 = vsub.f32 %v4421_v31, %v2605_v1 }
 0x631   : > { %v2607_v3 = vmul.f32 %v2606_v2, %v2606_v2 }
 0x633   : > { %v2608_v15 = vsel %vm813_vm0, %v2607_v3, 0.0 }
 0x634   : > { %2609 = vadd.xlane.f32.xlu0 %v2608_v15 }
 0x64c   : > { %v2775_v40 = vpop.xlane.xlu1 %2774 }
 0x64d   : > { %v2776_v5 = vmul.f32 0.03125, %v2775_v40 }
 0x64f   : > { %v2777_v6 = vsub.f32 %v4428_v63, %v2776_v5 }
 0x651   : > { %v2778_v54 = vmul.f32 %v2777_v6, %v2777_v6 }
 0x653   : > { %v2779_v7 = vsel %vm813_vm0, %v2778_v54, 0.0 }
 0x654   : > { %2780 = vadd.xlane.f32.xlu1 %v2779_v7 }
 0x6c1   : > { %v2610_v23 = vpop.xlane.xlu0 %2609 }
 0x6c2   : > { %v2611_v60 = vmul.f32 0.03125, %v2610_v23 }
 0x6c4   : > { %v2612_v13 = vadd.f32 1e-05, %v2611_v60 }
 0x6c6   : > { %3570 = vrsqrt.f32 %v2612_v13 }
 0x6d0   : > { %v3571_v48 = vpop.eup %3570 }
 0x6d1   : > { %v2614_v34 = vmul.f32 %v3571_v48, %v2606_v2 }
 0x6d3   : > { %v2615_v10 = vmul.f32 %v4406_v43, %v2614_v34 }
 0x6d5   : > { %v2616_v18 = vadd.f32 %v4418_v39, %v2615_v10 }
 0x6d7   : > { %v2617_v62 = vpack.c.bf16 %v2616_v18, %v2616_v18 }
 0x6d9   : > { %3366 = vmatmul.mubr.msk.bf16.vlgmr.msra.gmra.mrb[60].mxu0 %vm813_vm0, %v2617_v62 }
 0x6da   : > { %3382 = vmatpush3.bf16.msra.mxu0 %v3524_v16  ;;  %3385 = vmatprep.mubr.msk.bf16.mxu0 %vm3674_vm1, %v3673_v38 }
 0x6db   : > { %3383 = vmatprep.subr.bf16.mxu0 %v3673_v38 }
 0x6de   : > { %3384 = vmatpush3.bf16.msra.mxu0 %v3525_v17 }
 0x6df   : > { %3389 = vmatprep.subr.bf16.mxu0 %v3673_v38 }
 0x6e1   : > { %v2781_v20 = vpop.xlane.xlu1 %2780 }
 0x6e2   : > { %v2782_v11 = vmul.f32 0.03125, %v2781_v20 }
 0x6e4   : > { %v2783_v21 = vadd.f32 1e-05, %v2782_v11 }
 0x6e6   : > { %3572 = vrsqrt.f32 %v2783_v21 }
 0x6f0   : > { %v3573_v19 = vpop.eup %3572 }
 0x6f1   : > { %v2785_v22 = vmul.f32 %v3573_v19, %v2777_v6 }
 0x6f3   : > { %v2786_v46 = vmul.f32 %v4406_v43, %v2785_v22 }
 0x6f5   : > { %v2787_v24 = vadd.f32 %v4418_v39, %v2786_v46 }
 0x6f7   : > { %v2788_v61 = vpack.c.bf16 %v2787_v24, %v2787_v24 }
 0x6f9   : > { %3386 = vmatmul.mubr.msk.bf16.vlgmr.msra.gmra.mrb[64].mxu0 %vm813_vm0, %v2788_v61 }
 0x6fa   : > { %3390 = vmatpush3.bf16.msra.mxu0 %v3526_v8  ;;  %3397 = vmatprep.mubr.msk.bf16.mxu0 %vm3674_vm1, %v3673_v38 }
 0x6fb   : > { %3391 = vmatprep.subr.bf16.mxu0 %v3673_v38 }
 0x6fe   : > { %3392 = vmatpush3.bf16.msra.mxu0 %v3527_v42 }
 0x6ff   : > { %3393 = vmatprep.subr.bf16.mxu0 %v3673_v38 }
 0x702   : > { %3394 = vmatpush3.bf16.msra.mxu0 %v3528_v26 }
 0x703   : > { %3395 = vmatprep.subr.bf16.mxu0 %v3673_v38 }
 0x706   : > { %3396 = vmatpush3.bf16.msra.mxu0 %v3529_v27 }
 0x7ac   : > { %v2673_v29 = vpop.f32.mrb[60].mxu0 }
 0x7ad   : > { %v2674_v32 = vadd.f32 %v3111_v28, %v2673_v29  ;;  %v3367_v43 = vpop.f32.mrb[61].mxu0 }
 0x7ae   : > { %v2676_v35 = vpop.f32.mrb[62].mxu0 }
 0x7af   : > { %v2679_v25 = vmax.f32 %v2674_v32, 0.0  ;;  %v3368_v44 = vpop.f32.mrb[63].mxu0 }
 0x7b1   : > { %v2680_v38 = vpack.c.bf16 %v2679_v25, %v2679_v25 }
 0x7b3   : > { %3378 = vmatmul.mubr.msk.bf16.vlgmr.msra.gmra.mrb[68].mxu1 %vm2711_vm4, %v2680_v38 }
 0x7cc   : > { %v2826_v37 = vpop.f32.mrb[64].mxu0 }
 0x7cd   : > { %v2827_v45 = vadd.f32 %v3111_v28, %v2826_v37  ;;  %v3387_v39 = vpop.f32.mrb[65].mxu0 }
 0x7ce   : > { %v2829_v47 = vpop.f32.mrb[66].mxu0 }
 0x7cf   : > { %v2832_v50 = vmax.f32 %v2827_v45, 0.0  ;;  %v3388_v53 = vpop.f32.mrb[67].mxu0 }
 0x7d1   : > { %v2833_v9 = vpack.c.bf16 %v2832_v50, %v2832_v50 }
 0x7d3   : > { %3398 = vmatmul.mubr.msk.bf16.vlgmr.msra.gmra.mrb[68].mxu0 %vm2711_vm4, %v2833_v9 }
 0x886   : > { %v2749_v12 = vpop.f32.mrb[68].mxu1 }
 0x887   : > { %v2750_v30 = vadd.f32 %v3115_v49, %v2749_v12  ;;  %v3379_v36 = vpop.f32.mrb[69].mxu1 }
 0x888   : > { %v2752_v52 = vpop.f32.mrb[70].mxu1 }
 0x889   : > { %v2755_v4 = vadd.f32 %v2750_v30, %v4421_v31  ;;  %v3380_v14 = vpop.f32.mrb[71].mxu1 }
 0x88b   : > { %2756 = vst.msk [vmem:[%s502_s20] sm:$0xff] %vm813_vm0, %v2755_v4 }
 0x88c   : > { %3589 = shalt.err (!%p3586_p3)
}
 0x88d   : > { %s3590_s20 = scalar_lea.hbm %s4493_s18, 128  ;;  %s3594_s26 = scalar_lea.hbm %s4586_s14, 256 }
 0x88e   : > { %p3591_p4 = scmp.ne.s32.totalorder %s4493_s18, %s3590_s20  ;;  %p3595_p9 = scmp.lt.u32.totalorder %s4493_s18, %s4586_s14 }
 0x88f   : > { %p3596_p10 = scmp.lt.u32.totalorder %s3594_s26, %s3590_s20  ;;  %p3598_p12 = scmp.lt.u32.totalorder %s3590_s20, %s4493_s18 }
 0x890   : > { %p3592_p7 = pnand %p3591_p4, %p3795_p5 }
 0x891   : > { %p3597_p11 = por %p3596_p10, %p3595_p9 }
 0x892   : > { %p3593_p8 = pneg %p3592_p7 }
 0x893   : > { %p3599_p13 = por %p3598_p12, %p3597_p11 }
 0x895   : > { %p3600_p0 = pnand %p3599_p13, %p3593_p8 }
 0x897   : > { %3603 = shalt.err (!%p3600_p0)
}
 0x898   : > { %3401 = dma.vmem_to_hbm [thread:$0]  (%p3795_p5), %s4495_s30, 128, %s4493_s18, %s2880_s17  }
 0x899   : > { %s4604_s0 = sshll.u32 %s4478_s24, 3  ;;  %s4605_s20 = sshll.u32 %s3778_s22, 7 }
 0x89a   : > { %s509_s25 = scalar_lea.vmem [#allocation6], %s4604_s0  ;;  %s4528_s26 = scalar_lea.hbm %s4587_s15, %s4605_s20 }
 0x89b   : > { %s2911_s27 = sshll.u32 %s509_s25, 4  ;;  %s2885_s30 = scalar_lea.sflag [#allocation7], %s4478_s24  ;;  %s4530_s27 = int_to_ptr.vmem [resolvable:$true] %s2911_s27 }
 0x89c   : > { %s3604_s18 = scalar_lea.vmem %s4530_s27, 128  ;;  %s3676_s17 = smov [#allocation6]  }
 0x89d   : > { %p3605_p1 = scmp.ne.s32.totalorder %s4530_s27, %s3604_s18  ;;  %s3608_s22 = sshll.u32 %s3676_s17, 4  ;;  %s3609_s22 = int_to_ptr.vmem [resolvable:$false] %s3608_s22 }
 0x89e   : > { %s3610_s23 = scalar_lea.vmem %s3609_s22, 256  ;;  %p3611_p4 = scmp.lt.s32.totalorder %s4530_s27, %s3609_s22 }
 0x89f   : > { %p3606_p2 = pnand %p3605_p1, %p3795_p5  ;;  %p3612_p7 = scmp.lt.s32.totalorder %s3610_s23, %s3604_s18 }
 0x8a1   : > { %p3607_p3 = pneg %p3606_p2  ;;  %p3613_p8 = por %p3612_p7, %p3611_p4 }
 0x8a3   : > { %p3614_p9 = pnand %p3613_p8, %p3607_p3 }
 0x8a6   : > { %v2871_v31 = vpop.f32.mrb[68].mxu0 }
 0x8a7   : > { %v2872_v59 = vadd.f32 %v3115_v49, %v2871_v31  ;;  %v3399_v55 = vpop.f32.mrb[69].mxu0 }
 0x8a8   : > { %v2874_v56 = vpop.f32.mrb[70].mxu0 }
 0x8a9   : > { %v2877_v33 = vadd.f32 %v2872_v59, %v4428_v63  ;;  %v3400_v57 = vpop.f32.mrb[71].mxu0 }
 0x8ab   : > { %2878 = vst.msk [vmem:[%s509_s25] sm:$0xff] %vm813_vm0, %v2877_v33 }
 0x8ac   : > { %3617 = shalt.err (!%p3614_p9)
}
 0x8ad   : > { %s3618_s24 = scalar_lea.hbm %s4528_s26, 128  ;;  %s3622_s20 = scalar_lea.hbm %s4587_s15, 256 }
 0x8ae   : > { %p3619_p10 = scmp.ne.s32.totalorder %s4528_s26, %s3618_s24  ;;  %p3623_p13 = scmp.lt.u32.totalorder %s4528_s26, %s4587_s15 }
 0x8af   : > { %p3624_p0 = scmp.lt.u32.totalorder %s3622_s20, %s3618_s24  ;;  %p3626_p2 = scmp.lt.u32.totalorder %s3618_s24, %s4528_s26 }
 0x8b0   : > { %p3620_p11 = pnand %p3619_p10, %p3795_p5 }
 0x8b1   : > { %p3625_p1 = por %p3624_p0, %p3623_p13 }
 0x8b2   : > { %p3621_p12 = pneg %p3620_p11 }
 0x8b3   : > { %p3627_p3 = por %p3626_p2, %p3625_p1 }
 0x8b5   : > { %p3628_p4 = pnand %p3627_p3, %p3621_p12 }
 0x8b7   : > { %3631 = shalt.err (!%p3628_p4)
}
 0x8b8   : > { %3402 = dma.vmem_to_hbm [thread:$0]  (%p3795_p5), %s4530_s27, 128, %s4528_s26, %s2885_s30  }
 0x8b9 PF: > { %s4606_s18 = sld [smem:[#allocation10_spill]]  ;;  %p3412_p7 = scmp.ge.s32.totalorder %s3670_s21, 2 }
 0x8bb   : > { %p3406_p8 = pnand %p3412_p7, %p3799_p6 }
 0x8bf   : > { %s2923_s22 = sand.u32 1, %s4606_s18  }
 0x8c0   : > { %s2924_s23 = scalar_lea.sflag [#allocation5], %s2923_s22 }
 0x8c1   : > { %3649 = dma.done.wait (!%p3406_p8), %s2924_s23, 128  }
 0x8c2   : > { %3651 = vsyncadd (!%p3406_p8), %s2924_s23, 4294967168  ;;  %s2933_s24 = scalar_lea.sflag [#allocation7], %s2923_s22 }
 0x8c3   : > { %3653 = dma.done.wait (!%p3406_p8), %s2933_s24, 128  }
 0x8c4   : > { %3655 = vsyncadd (!%p3406_p8), %s2933_s24, 4294967168  ;;  %s4608_s21 = sld [smem:[#allocation12_spill]]  ;;  %s4609_s28 = sld [smem:[#allocation11_spill]] }
 0x8c5   : > { %s4610_s20 = sld [smem:[#allocation13_spill]]  ;;  %s4611_s18 = smov %s3662_s19 }
 0x8ca   : > { %p29_p5 = scmp.ge.s32.totalorder %s4608_s21, 4   ;;  %s4612_s19 = smov %s4609_s28 }
 0x8cc   :  { %31 = sbr.rel (!%p29_p5) target bundleno = 7 (0x7), region = 131 }
 0x8d3   :  { %2938 = vsyncpa [#allocation5], 1 }
 0x8d4   :  { %2940 = vsyncpa [#allocation5 + $0x1], 1 }
 0x8d5   :  { %2941 = vsyncpa [#allocation7], 1 }
 0x8d6   :  { %2943 = vsyncpa [#allocation7 + $0x1], 1 }

</bundles_post_ra>
